<compile_context>
chip_gen: v5e
topology: v5e:2x2
jax: 0.10.0
libtpu: 0.0.40
codegen_flags: <defaults>
</compile_context>

<pallas_src>
import math
import functools

import jax
import jax.numpy as jnp
from jax.experimental import pallas as pl
from jax.experimental.pallas import tpu as pltpu

MAX_LENGTH = 1000
ENC_OUT = 32            # encoder_output_size == d_model
N_HEADS = 2             # TransformerDecoder default in the module
N_LAYERS = 2
FFN_DIM = 2048          # torch nn.TransformerDecoderLayer default dim_feedforward
LN_EPS = 1e-5
CONV_MID = 16           # channels of the simplified CNN encoder
ENC_TILE = 256          # hw row tile for the encoder kernel
Q_TILE = 512            # query-tile cap for the fused decoder-layer kernel

LANG_TOKENS = ['<PAD>', '<SOS>', '<EOS>'] + [chr(ord('a') + i) for i in range(26)] + [' ']
VOCAB = len(LANG_TOKENS)
VOCAB_PAD = 32          # pad vocab head to a full lane group, slice afterwards
PAD_ID = 0
SOS_ID = 1


def _layernorm(x, g, b):
    mu = jnp.mean(x, axis=-1, keepdims=True)
    xc = x - mu
    var = jnp.mean(xc * xc, axis=-1, keepdims=True)
    return xc * jax.lax.rsqrt(var + LN_EPS) * g + b


# ---------------------------------------------------------------------------
# Encoder: fused conv(im2col-matmul) + ReLU + mean-pool + FC  (one kernel)
# ---------------------------------------------------------------------------
def _encoder_kernel(patch_ref, cw_ref, cb_ref, fw_ref, fb_ref, o_ref, acc_ref, *, hw):
    j = pl.program_id(1)

    @pl.when(j == 0)
    def _():
        acc_ref[...] = jnp.zeros_like(acc_ref)

    patch = patch_ref[0].astype(jnp.bfloat16)                # [tp, C*9]
    h = jnp.dot(patch, cw_ref[...], preferred_element_type=jnp.float32) + cb_ref[...]
    h = jnp.maximum(h, 0.0)
    tp = h.shape[0]
    row = j * tp + jax.lax.broadcasted_iota(jnp.int32, (tp, 1), 0)
    h = jnp.where(row < hw, h, 0.0)                          # drop padded rows
    acc_ref[...] += jnp.sum(h, axis=0, keepdims=True)        # running sum for mean

    @pl.when(j == pl.num_programs(1) - 1)
    def _():
        pooled = (acc_ref[...] * (1.0 / hw)).astype(jnp.bfloat16)   # [1, CONV_MID]
        ctx = jnp.dot(pooled, fw_ref[...], preferred_element_type=jnp.float32) + fb_ref[...]
        o_ref[0] = ctx.astype(o_ref.dtype)


def im2col_3x3(x):
    # x: [B, C, H, W], 'same' padding, stride 1 -> [B, H*W, C*9]
    # TODO(synk): for large spectrograms replace this XLA patch materialization
    # by in-kernel shifted-accumulation conv (9x HBM traffic saving); irrelevant
    # at 16x16 inputs.
    b, c, h, w = x.shape
    xp = jnp.pad(x, ((0, 0), (0, 0), (1, 1), (1, 1)))
    patches = []
    for di in range(3):
        for dj in range(3):
            patches.append(xp[:, :, di:di + h, dj:dj + w])
    p = jnp.stack(patches, axis=-1)            # [B, C, H, W, 9]
    p = jnp.transpose(p, (0, 2, 3, 1, 4))      # [B, H, W, C, 9]
    return p.reshape(b, h * w, c * 9)


def cnn_encoder(spectrogram, params):
    # TODO(synk): create_cnn_model(resnet34, output_size) is undefined in the
    # reference; replaced by conv3x3+ReLU -> global-avg-pool -> Linear with the
    # same [B, output_size] context contract.
    b, c, h, w = spectrogram.shape
    hw = h * w
    c9 = c * 9
    patches = im2col_3x3(spectrogram)                        # [B, HW, C*9]
    tp = hw if hw <= ENC_TILE else ENC_TILE
    grid = (b, pl.cdiv(hw, tp))
    return pl.pallas_call(
        functools.partial(_encoder_kernel, hw=hw),
        out_shape=jax.ShapeDtypeStruct((b, 1, ENC_OUT), jnp.float32),
        grid_spec=pltpu.PrefetchScalarGridSpec(
            num_scalar_prefetch=0,
            grid=grid,
            in_specs=[
                pl.BlockSpec((1, tp, c9), lambda i, j: (i, j, 0)),
                pl.BlockSpec((c9, CONV_MID), lambda i, j: (0, 0)),
                pl.BlockSpec((1, CONV_MID), lambda i, j: (0, 0)),
                pl.BlockSpec((CONV_MID, ENC_OUT), lambda i, j: (0, 0)),
                pl.BlockSpec((1, ENC_OUT), lambda i, j: (0, 0)),
            ],
            out_specs=pl.BlockSpec((1, 1, ENC_OUT), lambda i, j: (i, 0, 0)),
            scratch_shapes=[pltpu.VMEM((1, CONV_MID), jnp.float32)]),
        compiler_params=pltpu.CompilerParams(
            dimension_semantics=("parallel", "arbitrary")),
    )(patches, params['conv_w'], params['conv_b'], params['fc_w'], params['fc_b'])


# ---------------------------------------------------------------------------
# One fused post-norm decoder layer:
#   [PE add] -> self-attn (per-head) -> +res, LN1 -> cross-attn(value, len-1
#   memory) -> +res, LN2 -> FFN(w1, ReLU, w2) -> +res, LN3 -> [vocab logits]
# grid = (batch, query-tiles); K/V cover the full sequence per step.
# ---------------------------------------------------------------------------
def _decoder_layer_kernel(*args, n_heads, scale, add_pe, emit_logits):
    it = iter(args)
    xq_ref = next(it)
    xkv_ref = next(it)
    pe_ref = next(it) if add_pe else None
    ctx_ref = next(it)
    (wq_ref, wk_ref, wv_ref, bq_ref, bk_ref, bv_ref, wo_ref, bo_ref,
     g1_ref, be1_ref, caw_ref, cab_ref, g2_ref, be2_ref,
     w1_ref, b1_ref, w2_ref, b2_ref, g3_ref, be3_ref) = [next(it) for _ in range(20)]
    if emit_logits:
        vw_ref = next(it)
        vb_ref = next(it)
    out_ref = next(it)

    e = bo_ref.shape[-1]

    xq = xq_ref[0]                                           # [tq, E] f32
    xkv = xkv_ref[0]                                         # [L,  E] f32
    if add_pe:
        pe = pe_ref[0]                                       # [1, E] (per-batch PE row)
        xq = xq + pe
        xkv = xkv + pe
    xq_b = xq.astype(jnp.bfloat16)
    xkv_b = xkv.astype(jnp.bfloat16)

    # --- self-attention; per-head weight slabs => no in-kernel lane slicing ---
    attn = jnp.zeros((xq.shape[0], e), jnp.float32)
    for h in range(n_heads):                                  # static (n_heads=2)
        q = jnp.dot(xq_b, wq_ref[h], preferred_element_type=jnp.float32) + bq_ref[h]
        k = jnp.dot(xkv_b, wk_ref[h], preferred_element_type=jnp.float32) + bk_ref[h]
        v = jnp.dot(xkv_b, wv_ref[h], preferred_element_type=jnp.float32) + bv_ref[h]
        s = jax.lax.dot_general((q * scale).astype(jnp.bfloat16),
                                k.astype(jnp.bfloat16),
                                (((1,), (1,)), ((), ())),
                                preferred_element_type=jnp.float32)      # [tq, L]
        m = jnp.max(s, axis=-1, keepdims=True)
        p = jnp.exp(s - m)
        denom = jnp.sum(p, axis=-1, keepdims=True)
        p = p * pl.reciprocal(denom, approx=True)
        oh = jnp.dot(p.astype(jnp.bfloat16), v.astype(jnp.bfloat16),
                     preferred_element_type=jnp.float32)                  # [tq, dh]
        attn = attn + jnp.dot(oh.astype(jnp.bfloat16), wo_ref[h],
                              preferred_element_type=jnp.float32)
    attn = attn + bo_ref[...]

    x1 = _layernorm(xq + attn, g1_ref[...], be1_ref[...])                # norm1

    # --- cross-attention over a length-1 memory: softmax over one key is the
    #     identity, so the output is context @ (Wv@Wo) + folded bias. ---
    ca = jnp.dot(ctx_ref[0].astype(jnp.bfloat16), caw_ref[...],
                 preferred_element_type=jnp.float32) + cab_ref[...]       # [1, E]
    x2 = _layernorm(x1 + ca, g2_ref[...], be2_ref[...])                   # norm2

    # --- FFN (hidden [tq, 2048] never leaves VMEM) ---
    hdn = jnp.dot(x2.astype(jnp.bfloat16), w1_ref[...],
                  preferred_element_type=jnp.float32) + b1_ref[...]
    hdn = jnp.maximum(hdn, 0.0)
    ff = jnp.dot(hdn.astype(jnp.bfloat16), w2_ref[...],
                 preferred_element_type=jnp.float32) + b2_ref[...]
    x3 = _layernorm(x2 + ff, g3_ref[...], be3_ref[...])                   # norm3

    if emit_logits:
        # TODO(synk): logits last dim is 32 lanes -> masked stores; a lane-dense
        # (rows*32/128, 128) store layout was left out as the model is launch-
        # latency bound at these sizes.
        logits = jnp.dot(x3.astype(jnp.bfloat16), vw_ref[...],
                         preferred_element_type=jnp.float32) + vb_ref[...]
        out_ref[0] = logits.astype(out_ref.dtype)
    else:
        out_ref[0] = x3.astype(out_ref.dtype)


def pallas_decoder_layer(x, context, layer_p, head_w=None, head_b=None, pe=None):
    """One fused decoder layer.  If `pe` is given it is added to x on load
    (layer 0); if `head_w` is given the layer emits vocab logits (last layer)."""
    b, l, e = x.shape
    f = layer_p['w1'].shape[1]
    dh = e // N_HEADS
    add_pe = pe is not None
    emit_logits = head_w is not None
    tq = l if l <= Q_TILE else Q_TILE
    grid = (b, pl.cdiv(l, tq))

    inputs = [x, x]
    in_specs = [
        pl.BlockSpec((1, tq, e), lambda i, j: (i, j, 0)),    # query rows
        pl.BlockSpec((1, l, e), lambda i, j: (i, 0, 0)),     # full-seq K/V source
    ]
    if add_pe:
        inputs.append(pe)
        in_specs.append(pl.BlockSpec((1, 1, e), lambda i, j: (i, 0, 0)))
    inputs.append(context)
    in_specs.append(pl.BlockSpec((1, 1, e), lambda i, j: (i, 0, 0)))

    sa = layer_p['self_attn']
    weights = [sa['wq'], sa['wk'], sa['wv'], sa['bq'], sa['bk'], sa['bv'],
               sa['wo'], sa['bo'],
               layer_p['ln1_g'], layer_p['ln1_b'],
               layer_p['ca_w'], layer_p['ca_b'],
               layer_p['ln2_g'], layer_p['ln2_b'],
               layer_p['w1'], layer_p['b1'], layer_p['w2'], layer_p['b2'],
               layer_p['ln3_g'], layer_p['ln3_b']]
    if emit_logits:
        weights += [head_w, head_b]
    for arr in weights:                                      # VMEM-resident consts
        inputs.append(arr)
        if arr.ndim == 3:
            in_specs.append(pl.BlockSpec(arr.shape, lambda i, j: (0, 0, 0)))
        else:
            in_specs.append(pl.BlockSpec(arr.shape, lambda i, j: (0, 0)))

    if emit_logits:
        out_shape = jax.ShapeDtypeStruct((b, l, VOCAB_PAD), jnp.float32)
        out_specs = pl.BlockSpec((1, tq, VOCAB_PAD), lambda i, j: (i, j, 0))
    else:
        out_shape = jax.ShapeDtypeStruct((b, l, e), jnp.float32)
        out_specs = pl.BlockSpec((1, tq, e), lambda i, j: (i, j, 0))

    kernel = functools.partial(
        _decoder_layer_kernel, n_heads=N_HEADS, scale=1.0 / math.sqrt(dh),
        add_pe=add_pe, emit_logits=emit_logits)

    return pl.pallas_call(
        kernel,
        out_shape=out_shape,
        grid_spec=pltpu.PrefetchScalarGridSpec(
            num_scalar_prefetch=0, grid=grid,
            in_specs=in_specs, out_specs=out_specs),
        compiler_params=pltpu.CompilerParams(
            dimension_semantics=("parallel", "parallel"),
            vmem_limit_bytes=32 * 1024 * 1024),
    )(*inputs)


# ---------------------------------------------------------------------------
# Parameters
# ---------------------------------------------------------------------------
def make_pe(d_model, max_len=MAX_LENGTH):
    position = jnp.arange(max_len, dtype=jnp.float32)[:, None]
    div_term = jnp.exp(jnp.arange(0, d_model, 2, dtype=jnp.float32)
                       * (-math.log(10000.0) / d_model))
    pe = jnp.zeros((max_len, d_model), jnp.float32)
    pe = pe.at[:, 0::2].set(jnp.sin(position * div_term))
    pe = pe.at[:, 1::2].set(jnp.cos(position * div_term))
    return pe[:, None, :]                       # [max_len, 1, d_model]


def init_params(key):
    def nrm(k, shape, scale=0.02):
        return scale * jax.random.normal(k, shape, jnp.float32)

    keys = iter(jax.random.split(key, 64))
    dh = ENC_OUT // N_HEADS
    head_w = nrm(next(keys), (ENC_OUT, VOCAB))
    params = {
        'conv_w': nrm(next(keys), (4 * 9, CONV_MID)).astype(jnp.bfloat16),
        'conv_b': jnp.zeros((1, CONV_MID), jnp.float32),
        'fc_w': nrm(next(keys), (CONV_MID, ENC_OUT)).astype(jnp.bfloat16),
        'fc_b': jnp.zeros((1, ENC_OUT), jnp.float32),
        'embedding': nrm(next(keys), (VOCAB, ENC_OUT), 1.0),
        'pe': make_pe(ENC_OUT),
        'head_w': jnp.pad(head_w, ((0, 0), (0, VOCAB_PAD - VOCAB))).astype(jnp.bfloat16),
        'head_b': jnp.zeros((1, VOCAB_PAD), jnp.float32),
        'decoder_layers': [],
    }

    for _ in range(N_LAYERS):
        wq = nrm(next(keys), (ENC_OUT, ENC_OUT))
        wk = nrm(next(keys), (ENC_OUT, ENC_OUT))
        wv = nrm(next(keys), (ENC_OUT, ENC_OUT))
        wo = nrm(next(keys), (ENC_OUT, ENC_OUT))
        # cross-attn: only Wv/Wo reach the output (len-1 memory) -> fold host-side
        cwv = nrm(next(keys), (ENC_OUT, ENC_OUT))
        cwo = nrm(next(keys), (ENC_OUT, ENC_OUT))
        cbv = jnp.zeros((ENC_OUT,), jnp.float32)
        cbo = jnp.zeros((ENC_OUT,), jnp.float32)
        params['decoder_layers'].append({
            'self_attn': {
                # per-head weight slabs [H, E, dh] / [H, dh, E] (host-side split)
                'wq': wq.reshape(ENC_OUT, N_HEADS, dh).transpose(1, 0, 2).astype(jnp.bfloat16),
                'wk': wk.reshape(ENC_OUT, N_HEADS, dh).transpose(1, 0, 2).astype(jnp.bfloat16),
                'wv': wv.reshape(ENC_OUT, N_HEADS, dh).transpose(1, 0, 2).astype(jnp.bfloat16),
                'bq': jnp.zeros((N_HEADS, 1, dh), jnp.float32),
                'bk': jnp.zeros((N_HEADS, 1, dh), jnp.float32),
                'bv': jnp.zeros((N_HEADS, 1, dh), jnp.float32),
                'wo': wo.reshape(N_HEADS, dh, ENC_OUT).astype(jnp.bfloat16),
                'bo': jnp.zeros((1, ENC_OUT), jnp.float32),
            },
            'ca_w': (cwv @ cwo).astype(jnp.bfloat16),
            'ca_b': (cbv @ cwo + cbo).reshape(1, ENC_OUT),
            'w1': nrm(next(keys), (ENC_OUT, FFN_DIM)).astype(jnp.bfloat16),
            'b1': jnp.zeros((1, FFN_DIM), jnp.float32),
            'w2': nrm(next(keys), (FFN_DIM, ENC_OUT)).astype(jnp.bfloat16),
            'b2': jnp.zeros((1, ENC_OUT), jnp.float32),
            'ln1_g': jnp.ones((1, ENC_OUT), jnp.float32),
            'ln1_b': jnp.zeros((1, ENC_OUT), jnp.float32),
            'ln2_g': jnp.ones((1, ENC_OUT), jnp.float32),
            'ln2_b': jnp.zeros((1, ENC_OUT), jnp.float32),
            'ln3_g': jnp.ones((1, ENC_OUT), jnp.float32),
            'ln3_b': jnp.zeros((1, ENC_OUT), jnp.float32),
        })
    return params


# ---------------------------------------------------------------------------
# Forward pass (3 pallas_calls total: encoder + 2 fused decoder layers)
# ---------------------------------------------------------------------------
@functools.partial(jax.jit, static_argnames=('l',))
def speech_model_forward(params, spectrogram, l=MAX_LENGTH):
    """spectrogram: [B, C, W, H] -> output tokens [B, l, vocab]."""
    b = spectrogram.shape[0]
    context = cnn_encoder(spectrogram, params)               # [B, 1, ENC_OUT]

    input_tokens = jnp.concatenate(
        [jnp.full((b, 1), SOS_ID, jnp.int32),
         jnp.full((b, l - 1), PAD_ID, jnp.int32)], axis=1)   # [B, l]
    embedded = jnp.take(params['embedding'], input_tokens, axis=0)   # [B, l, E]

    # Faithful to the reference: pos_enc is applied to the batch-first
    # embedding, so pe is sliced by the batch dimension and broadcast over l.
    # TODO(synk): dropout (pos-enc p=0.1 and decoder layers) is eval-mode identity.
    pe_b = params['pe'][:b]                                  # [B, 1, E]

    x = embedded
    n_layers = len(params['decoder_layers'])
    for i, layer_p in enumerate(params['decoder_layers']):
        last = (i == n_layers - 1)
        x = pallas_decoder_layer(
            x, context, layer_p,
            head_w=params['head_w'] if last else None,
            head_b=params['head_b'] if last else None,
            pe=pe_b if i == 0 else None)
    # last layer emitted lane-padded logits [B, l, VOCAB_PAD]
    return x[:, :, :VOCAB]


if __name__ == "__main__":
    key = jax.random.PRNGKey(0)
    pkey, xkey = jax.random.split(key)
    params = init_params(pkey)
    spectrogram = jax.random.normal(xkey, (2, 4, 16, 16), jnp.float32)

    out = speech_model_forward(params, spectrogram, l=8)
    out = jax.block_until_ready(out)

    assert out.shape == (2, 8, VOCAB), out.shape
    assert bool(jnp.all(jnp.isfinite(out)))
    print("KERNEL_OK")
</pallas_src>

<mosaic_0001>
module attributes {stable_mosaic.version = 11 : i64} {
  func.func @_encoder_kernel(%arg0: i32, %arg1: i32, %arg2: memref<1x256x36xf32, #tpu.memory_space<vmem>>, %arg3: memref<36x16xbf16, #tpu.memory_space<vmem>>, %arg4: memref<1x16xf32, #tpu.memory_space<vmem>>, %arg5: memref<16x32xbf16, #tpu.memory_space<vmem>>, %arg6: memref<1x32xf32, #tpu.memory_space<vmem>>, %arg7: memref<1x1x32xf32, #tpu.memory_space<vmem>>, %arg8: memref<1x16xf32, #tpu.memory_space<vmem>>) attributes {dimension_semantics = [#tpu.dimension_semantics<parallel>, #tpu.dimension_semantics<arbitrary>], iteration_bounds = array<i64: 2, 1>, scalar_prefetch = 0 : i64, scratch_operands = 1 : i64, tpu.core_type = #tpu.core_type<tc>, window_params = [{transform_indices = @transform_0, window_bounds = array<i64: 1, 256, 36>}, {pipeline_mode = #tpu.pipeline_mode<synchronous>, transform_indices = @transform_1, window_bounds = array<i64: 36, 16>}, {pipeline_mode = #tpu.pipeline_mode<synchronous>, transform_indices = @transform_2, window_bounds = array<i64: 1, 16>}, {pipeline_mode = #tpu.pipeline_mode<synchronous>, transform_indices = @transform_3, window_bounds = array<i64: 16, 32>}, {pipeline_mode = #tpu.pipeline_mode<synchronous>, transform_indices = @transform_4, window_bounds = array<i64: 1, 32>}, {transform_indices = @transform_5, window_bounds = array<i64: 1, 1, 32>}]} {
    %c0_i32 = arith.constant 0 : i32
    %0 = arith.cmpi eq, %arg1, %c0_i32 : i32
    %1 = arith.extui %0 : i1 to i32
    %c0_i32_0 = arith.constant 0 : i32
    %2 = arith.cmpi ne, %1, %c0_i32_0 : i32
    scf.if %2 {
      %cst_17 = arith.constant 0.000000e+00 : f32
      %31 = vector.broadcast %cst_17 : f32 to vector<1x16xf32>
      %c0_18 = arith.constant 0 : index
      %c0_19 = arith.constant 0 : index
      %32 = vector.load %arg8[%c0_18, %c0_19] : memref<1x16xf32, #tpu.memory_space<vmem>>, vector<1x16xf32>
      tpu.vector_store %arg8[%c0_18, %c0_19], %31 {strides = array<i32>} : memref<1x16xf32, #tpu.memory_space<vmem>>, vector<1x16xf32>,
    } else {
    }
    %c0 = arith.constant 0 : index
    %c0_1 = arith.constant 0 : index
    %c0_2 = arith.constant 0 : index
    %3 = vector.load %arg2[%c0, %c0_1, %c0_2] : memref<1x256x36xf32, #tpu.memory_space<vmem>>, vector<1x256x36xf32>
    %4 = vector.shape_cast %3 : vector<1x256x36xf32> to vector<256x36xf32>
    %5 = arith.truncf %4 : vector<256x36xf32> to vector<256x36xbf16>
    %c0_3 = arith.constant 0 : index
    %c0_4 = arith.constant 0 : index
    %6 = vector.load %arg3[%c0_3, %c0_4] : memref<36x16xbf16, #tpu.memory_space<vmem>>, vector<36x16xbf16>
    %cst = arith.constant dense<0.000000e+00> : vector<256x16xf32>
    %7 = tpu.matmul %5, %6, %cst {dimension_numbers = #tpu.dot_dimension_numbers<[1], [0], [0], [1], [0, 0, 1, 1], [], []>} : vector<256x36xbf16>, vector<36x16xbf16>, vector<256x16xf32> -> vector<256x16xf32>
    %c0_5 = arith.constant 0 : index
    %c0_6 = arith.constant 0 : index
    %8 = vector.load %arg4[%c0_5, %c0_6] : memref<1x16xf32, #tpu.memory_space<vmem>>, vector<1x16xf32>
    %9 = vector.broadcast %8 : vector<1x16xf32> to vector<256x16xf32>
    %10 = arith.addf %7, %9 : vector<256x16xf32>
    %cst_7 = arith.constant 0.000000e+00 : f32
    %11 = vector.broadcast %cst_7 : f32 to vector<256x16xf32>
    %12 = arith.maximumf %10, %11 : vector<256x16xf32>
    %c256_i32 = arith.constant 256 : i32
    %13 = arith.muli %arg1, %c256_i32 : i32
    %14 = tpu.iota {dimensions = array<i32: 0>} : vector<256x1xi32>
    %15 = vector.broadcast %13 : i32 to vector<256x1xi32>
    %16 = arith.addi %15, %14 : vector<256x1xi32>
    %c256_i32_8 = arith.constant 256 : i32
    %17 = vector.broadcast %c256_i32_8 : i32 to vector<256x1xi32>
    %18 = arith.cmpi slt, %16, %17 : vector<256x1xi32>
    %cst_9 = arith.constant 0.000000e+00 : f32
    %19 = vector.shape_cast %18 : vector<256x1xi1> to vector<256x1xi1>
    %20 = vector.broadcast %19 : vector<256x1xi1> to vector<256x16xi1>
    %21 = vector.broadcast %cst_9 : f32 to vector<256x16xf32>
    %22 = arith.select %20, %12, %21 : vector<256x16xi1>, vector<256x16xf32>
    %c0_10 = arith.constant 0 : index
    %c0_11 = arith.constant 0 : index
    %23 = vector.load %arg8[%c0_10, %c0_11] : memref<1x16xf32, #tpu.memory_space<vmem>>, vector<1x16xf32>
    %cst_12 = arith.constant dense<0.000000e+00> : vector<16xf32>
    %24 = vector.multi_reduction <add>, %22, %cst_12 [0] : vector<256x16xf32> to vector<16xf32>
    %25 = vector.shape_cast %24 : vector<16xf32> to vector<1x16xf32>
    %26 = arith.addf %23, %25 : vector<1x16xf32>
    %c0_13 = arith.constant 0 : index
    %c0_14 = arith.constant 0 : index
    %27 = vector.load %arg8[%c0_13, %c0_14] : memref<1x16xf32, #tpu.memory_space<vmem>>, vector<1x16xf32>
    tpu.vector_store %arg8[%c0_13, %c0_14], %26 {strides = array<i32>} : memref<1x16xf32, #tpu.memory_space<vmem>>, vector<1x16xf32>,
    %c0_i32_15 = arith.constant 0 : i32
    %28 = arith.cmpi eq, %arg1, %c0_i32_15 : i32
    %29 = arith.extui %28 : i1 to i32
    %c0_i32_16 = arith.constant 0 : i32
    %30 = arith.cmpi ne, %29, %c0_i32_16 : i32
    scf.if %30 {
      %c0_17 = arith.constant 0 : index
      %c0_18 = arith.constant 0 : index
      %31 = vector.load %arg8[%c0_17, %c0_18] : memref<1x16xf32, #tpu.memory_space<vmem>>, vector<1x16xf32>
      %cst_19 = arith.constant 3.906250e-03 : f32
      %32 = vector.broadcast %cst_19 : f32 to vector<1x16xf32>
      %33 = arith.mulf %31, %32 : vector<1x16xf32>
      %34 = arith.truncf %33 : vector<1x16xf32> to vector<1x16xbf16>
      %c0_20 = arith.constant 0 : index
      %c0_21 = arith.constant 0 : index
      %35 = vector.load %arg5[%c0_20, %c0_21] : memref<16x32xbf16, #tpu.memory_space<vmem>>, vector<16x32xbf16>
      %cst_22 = arith.constant dense<0.000000e+00> : vector<1x32xf32>
      %36 = tpu.matmul %34, %35, %cst_22 {dimension_numbers = #tpu.dot_dimension_numbers<[1], [0], [0], [1], [0, 0, 1, 1], [], []>} : vector<1x16xbf16>, vector<16x32xbf16>, vector<1x32xf32> -> vector<1x32xf32>
      %c0_23 = arith.constant 0 : index
      %c0_24 = arith.constant 0 : index
      %37 = vector.load %arg6[%c0_23, %c0_24] : memref<1x32xf32, #tpu.memory_space<vmem>>, vector<1x32xf32>
      %38 = arith.addf %36, %37 : vector<1x32xf32>
      %c0_25 = arith.constant 0 : index
      %c0_26 = arith.constant 0 : index
      %c0_27 = arith.constant 0 : index
      %39 = vector.load %arg7[%c0_25, %c0_26, %c0_27] : memref<1x1x32xf32, #tpu.memory_space<vmem>>, vector<1x1x32xf32>
      %40 = vector.shape_cast %39 : vector<1x1x32xf32> to vector<1x32xf32>
      %41 = vector.shape_cast %38 : vector<1x32xf32> to vector<1x1x32xf32>
      tpu.vector_store %arg7[%c0_25, %c0_26, %c0_27], %41 {strides = array<i32>} : memref<1x1x32xf32, #tpu.memory_space<vmem>>, vector<1x1x32xf32>,
    } else {
    }
    return
  }
  func.func @transform_0(%arg0: i32, %arg1: i32) -> (i32, i32, i32) {
    %c0_i32 = arith.constant 0 : i32
    %c0_i32_0 = arith.constant 0 : i32
    return %arg0, %arg1, %c0_i32 : i32, i32, i32
  }
  func.func @transform_1(%arg0: i32, %arg1: i32) -> (i32, i32) {
    %c0_i32 = arith.constant 0 : i32
    %c0_i32_0 = arith.constant 0 : i32
    %c0_i32_1 = arith.constant 0 : i32
    return %c0_i32, %c0_i32_0 : i32, i32
  }
  func.func @transform_2(%arg0: i32, %arg1: i32) -> (i32, i32) {
    %c0_i32 = arith.constant 0 : i32
    %c0_i32_0 = arith.constant 0 : i32
    %c0_i32_1 = arith.constant 0 : i32
    return %c0_i32, %c0_i32_0 : i32, i32
  }
  func.func @transform_3(%arg0: i32, %arg1: i32) -> (i32, i32) {
    %c0_i32 = arith.constant 0 : i32
    %c0_i32_0 = arith.constant 0 : i32
    %c0_i32_1 = arith.constant 0 : i32
    return %c0_i32, %c0_i32_0 : i32, i32
  }
  func.func @transform_4(%arg0: i32, %arg1: i32) -> (i32, i32) {
    %c0_i32 = arith.constant 0 : i32
    %c0_i32_0 = arith.constant 0 : i32
    %c0_i32_1 = arith.constant 0 : i32
    return %c0_i32, %c0_i32_0 : i32, i32
  }
  func.func @transform_5(%arg0: i32, %arg1: i32) -> (i32, i32, i32) {
    %c0_i32 = arith.constant 0 : i32
    %c0_i32_0 = arith.constant 0 : i32
    %c0_i32_1 = arith.constant 0 : i32
    return %arg0, %c0_i32, %c0_i32_0 : i32, i32, i32
  }
}

module attributes {stable_mosaic.version = 11 : i64} {
  func.func @_decoder_layer_kernel(%arg0: i32, %arg1: i32, %arg2: memref<1x8x32xf32, #tpu.memory_space<vmem>>, %arg3: memref<1x8x32xf32, #tpu.memory_space<vmem>>, %arg4: memref<1x1x32xf32, #tpu.memory_space<vmem>>, %arg5: memref<1x1x32xf32, #tpu.memory_space<vmem>>, %arg6: memref<2x32x16xbf16, #tpu.memory_space<vmem>>, %arg7: memref<2x32x16xbf16, #tpu.memory_space<vmem>>, %arg8: memref<2x32x16xbf16, #tpu.memory_space<vmem>>, %arg9: memref<2x1x16xf32, #tpu.memory_space<vmem>>, %arg10: memref<2x1x16xf32, #tpu.memory_space<vmem>>, %arg11: memref<2x1x16xf32, #tpu.memory_space<vmem>>, %arg12: memref<2x16x32xbf16, #tpu.memory_space<vmem>>, %arg13: memref<1x32xf32, #tpu.memory_space<vmem>>, %arg14: memref<1x32xf32, #tpu.memory_space<vmem>>, %arg15: memref<1x32xf32, #tpu.memory_space<vmem>>, %arg16: memref<32x32xbf16, #tpu.memory_space<vmem>>, %arg17: memref<1x32xf32, #tpu.memory_space<vmem>>, %arg18: memref<1x32xf32, #tpu.memory_space<vmem>>, %arg19: memref<1x32xf32, #tpu.memory_space<vmem>>, %arg20: memref<32x2048xbf16, #tpu.memory_space<vmem>>, %arg21: memref<1x2048xf32, #tpu.memory_space<vmem>>, %arg22: memref<2048x32xbf16, #tpu.memory_space<vmem>>, %arg23: memref<1x32xf32, #tpu.memory_space<vmem>>, %arg24: memref<1x32xf32, #tpu.memory_space<vmem>>, %arg25: memref<1x32xf32, #tpu.memory_space<vmem>>, %arg26: memref<1x8x32xf32, #tpu.memory_space<vmem>>) attributes {dimension_semantics = [#tpu.dimension_semantics<parallel>, #tpu.dimension_semantics<parallel>], iteration_bounds = array<i64: 2, 1>, scalar_prefetch = 0 : i64, scratch_operands = 0 : i64, tpu.core_type = #tpu.core_type<tc>, window_params = [{transform_indices = @transform_0, window_bounds = array<i64: 1, 8, 32>}, {transform_indices = @transform_1, window_bounds = array<i64: 1, 8, 32>}, {transform_indices = @transform_2, window_bounds = array<i64: 1, 1, 32>}, {transform_indices = @transform_3, window_bounds = array<i64: 1, 1, 32>}, {pipeline_mode = #tpu.pipeline_mode<synchronous>, transform_indices = @transform_4, window_bounds = array<i64: 2, 32, 16>}, {pipeline_mode = #tpu.pipeline_mode<synchronous>, transform_indices = @transform_5, window_bounds = array<i64: 2, 32, 16>}, {pipeline_mode = #tpu.pipeline_mode<synchronous>, transform_indices = @transform_6, window_bounds = array<i64: 2, 32, 16>}, {pipeline_mode = #tpu.pipeline_mode<synchronous>, transform_indices = @transform_7, window_bounds = array<i64: 2, 1, 16>}, {pipeline_mode = #tpu.pipeline_mode<synchronous>, transform_indices = @transform_8, window_bounds = array<i64: 2, 1, 16>}, {pipeline_mode = #tpu.pipeline_mode<synchronous>, transform_indices = @transform_9, window_bounds = array<i64: 2, 1, 16>}, {pipeline_mode = #tpu.pipeline_mode<synchronous>, transform_indices = @transform_10, window_bounds = array<i64: 2, 16, 32>}, {pipeline_mode = #tpu.pipeline_mode<synchronous>, transform_indices = @transform_11, window_bounds = array<i64: 1, 32>}, {pipeline_mode = #tpu.pipeline_mode<synchronous>, transform_indices = @transform_12, window_bounds = array<i64: 1, 32>}, {pipeline_mode = #tpu.pipeline_mode<synchronous>, transform_indices = @transform_13, window_bounds = array<i64: 1, 32>}, {pipeline_mode = #tpu.pipeline_mode<synchronous>, transform_indices = @transform_14, window_bounds = array<i64: 32, 32>}, {pipeline_mode = #tpu.pipeline_mode<synchronous>, transform_indices = @transform_15, window_bounds = array<i64: 1, 32>}, {pipeline_mode = #tpu.pipeline_mode<synchronous>, transform_indices = @transform_16, window_bounds = array<i64: 1, 32>}, {pipeline_mode = #tpu.pipeline_mode<synchronous>, transform_indices = @transform_17, window_bounds = array<i64: 1, 32>}, {pipeline_mode = #tpu.pipeline_mode<synchronous>, transform_indices = @transform_18, window_bounds = array<i64: 32, 2048>}, {pipeline_mode = #tpu.pipeline_mode<synchronous>, transform_indices = @transform_19, window_bounds = array<i64: 1, 2048>}, {pipeline_mode = #tpu.pipeline_mode<synchronous>, transform_indices = @transform_20, window_bounds = array<i64: 2048, 32>}, {pipeline_mode = #tpu.pipeline_mode<synchronous>, transform_indices = @transform_21, window_bounds = array<i64: 1, 32>}, {pipeline_mode = #tpu.pipeline_mode<synchronous>, transform_indices = @transform_22, window_bounds = array<i64: 1, 32>}, {pipeline_mode = #tpu.pipeline_mode<synchronous>, transform_indices = @transform_23, window_bounds = array<i64: 1, 32>}, {transform_indices = @transform_24, window_bounds = array<i64: 1, 8, 32>}]} {
    %c0 = arith.constant 0 : index
    %c0_0 = arith.constant 0 : index
    %c0_1 = arith.constant 0 : index
    %0 = vector.load %arg2[%c0, %c0_0, %c0_1] : memref<1x8x32xf32, #tpu.memory_space<vmem>>, vector<1x8x32xf32>
    %1 = vector.shape_cast %0 : vector<1x8x32xf32> to vector<8x32xf32>
    %c0_2 = arith.constant 0 : index
    %c0_3 = arith.constant 0 : index
    %c0_4 = arith.constant 0 : index
    %2 = vector.load %arg3[%c0_2, %c0_3, %c0_4] : memref<1x8x32xf32, #tpu.memory_space<vmem>>, vector<1x8x32xf32>
    %3 = vector.shape_cast %2 : vector<1x8x32xf32> to vector<8x32xf32>
    %c0_5 = arith.constant 0 : index
    %c0_6 = arith.constant 0 : index
    %c0_7 = arith.constant 0 : index
    %4 = vector.load %arg4[%c0_5, %c0_6, %c0_7] : memref<1x1x32xf32, #tpu.memory_space<vmem>>, vector<1x1x32xf32>
    %5 = vector.shape_cast %4 : vector<1x1x32xf32> to vector<1x32xf32>
    %6 = vector.broadcast %5 : vector<1x32xf32> to vector<8x32xf32>
    %7 = arith.addf %1, %6 : vector<8x32xf32>
    %8 = vector.broadcast %5 : vector<1x32xf32> to vector<8x32xf32>
    %9 = arith.addf %3, %8 : vector<8x32xf32>
    %10 = arith.truncf %7 : vector<8x32xf32> to vector<8x32xbf16>
    %11 = arith.truncf %9 : vector<8x32xf32> to vector<8x32xbf16>
    %cst = arith.constant 0.000000e+00 : f32
    %12 = vector.broadcast %cst : f32 to vector<8x32xf32>
    %c0_8 = arith.constant 0 : index
    %c0_9 = arith.constant 0 : index
    %c0_10 = arith.constant 0 : index
    %13 = vector.load %arg6[%c0_8, %c0_9, %c0_10] : memref<2x32x16xbf16, #tpu.memory_space<vmem>>, vector<1x32x16xbf16>
    %14 = vector.shape_cast %13 : vector<1x32x16xbf16> to vector<32x16xbf16>
    %cst_11 = arith.constant dense<0.000000e+00> : vector<8x16xf32>
    %15 = tpu.matmul %10, %14, %cst_11 {dimension_numbers = #tpu.dot_dimension_numbers<[1], [0], [0], [1], [0, 0, 1, 1], [], []>} : vector<8x32xbf16>, vector<32x16xbf16>, vector<8x16xf32> -> vector<8x16xf32>
    %c0_12 = arith.constant 0 : index
    %c0_13 = arith.constant 0 : index
    %c0_14 = arith.constant 0 : index
    %16 = vector.load %arg9[%c0_12, %c0_13, %c0_14] : memref<2x1x16xf32, #tpu.memory_space<vmem>>, vector<1x1x16xf32>
    %17 = vector.shape_cast %16 : vector<1x1x16xf32> to vector<1x16xf32>
    %18 = vector.broadcast %17 : vector<1x16xf32> to vector<8x16xf32>
    %19 = arith.addf %15, %18 : vector<8x16xf32>
    %c0_15 = arith.constant 0 : index
    %c0_16 = arith.constant 0 : index
    %c0_17 = arith.constant 0 : index
    %20 = vector.load %arg7[%c0_15, %c0_16, %c0_17] : memref<2x32x16xbf16, #tpu.memory_space<vmem>>, vector<1x32x16xbf16>
    %21 = vector.shape_cast %20 : vector<1x32x16xbf16> to vector<32x16xbf16>
    %cst_18 = arith.constant dense<0.000000e+00> : vector<8x16xf32>
    %22 = tpu.matmul %11, %21, %cst_18 {dimension_numbers = #tpu.dot_dimension_numbers<[1], [0], [0], [1], [0, 0, 1, 1], [], []>} : vector<8x32xbf16>, vector<32x16xbf16>, vector<8x16xf32> -> vector<8x16xf32>
    %c0_19 = arith.constant 0 : index
    %c0_20 = arith.constant 0 : index
    %c0_21 = arith.constant 0 : index
    %23 = vector.load %arg10[%c0_19, %c0_20, %c0_21] : memref<2x1x16xf32, #tpu.memory_space<vmem>>, vector<1x1x16xf32>
    %24 = vector.shape_cast %23 : vector<1x1x16xf32> to vector<1x16xf32>
    %25 = vector.broadcast %24 : vector<1x16xf32> to vector<8x16xf32>
    %26 = arith.addf %22, %25 : vector<8x16xf32>
    %c0_22 = arith.constant 0 : index
    %c0_23 = arith.constant 0 : index
    %c0_24 = arith.constant 0 : index
    %27 = vector.load %arg8[%c0_22, %c0_23, %c0_24] : memref<2x32x16xbf16, #tpu.memory_space<vmem>>, vector<1x32x16xbf16>
    %28 = vector.shape_cast %27 : vector<1x32x16xbf16> to vector<32x16xbf16>
    %cst_25 = arith.constant dense<0.000000e+00> : vector<8x16xf32>
    %29 = tpu.matmul %11, %28, %cst_25 {dimension_numbers = #tpu.dot_dimension_numbers<[1], [0], [0], [1], [0, 0, 1, 1], [], []>} : vector<8x32xbf16>, vector<32x16xbf16>, vector<8x16xf32> -> vector<8x16xf32>
    %c0_26 = arith.constant 0 : index
    %c0_27 = arith.constant 0 : index
    %c0_28 = arith.constant 0 : index
    %30 = vector.load %arg11[%c0_26, %c0_27, %c0_28] : memref<2x1x16xf32, #tpu.memory_space<vmem>>, vector<1x1x16xf32>
    %31 = vector.shape_cast %30 : vector<1x1x16xf32> to vector<1x16xf32>
    %32 = vector.broadcast %31 : vector<1x16xf32> to vector<8x16xf32>
    %33 = arith.addf %29, %32 : vector<8x16xf32>
    %cst_29 = arith.constant 2.500000e-01 : f32
    %34 = vector.broadcast %cst_29 : f32 to vector<8x16xf32>
    %35 = arith.mulf %19, %34 : vector<8x16xf32>
    %36 = arith.truncf %35 : vector<8x16xf32> to vector<8x16xbf16>
    %37 = arith.truncf %26 : vector<8x16xf32> to vector<8x16xbf16>
    %cst_30 = arith.constant dense<0.000000e+00> : vector<8x8xf32>
    %38 = tpu.matmul %36, %37, %cst_30 {dimension_numbers = #tpu.dot_dimension_numbers<[1], [1], [0], [0], [0, 0, 1, 0], [], []>} : vector<8x16xbf16>, vector<8x16xbf16>, vector<8x8xf32> -> vector<8x8xf32>
    %cst_31 = arith.constant dense<0xFF800000> : vector<8xf32>
    %39 = vector.multi_reduction <maximumf>, %38, %cst_31 [1] : vector<8x8xf32> to vector<8xf32>
    %40 = vector.shape_cast %39 : vector<8xf32> to vector<8x1xf32>
    %41 = vector.broadcast %40 : vector<8x1xf32> to vector<8x8xf32>
    %42 = arith.subf %38, %41 : vector<8x8xf32>
    %43 = math.exp %42 : vector<8x8xf32>
    %cst_32 = arith.constant dense<0.000000e+00> : vector<8xf32>
    %44 = vector.multi_reduction <add>, %43, %cst_32 [1] : vector<8x8xf32> to vector<8xf32>
    %45 = vector.shape_cast %44 : vector<8xf32> to vector<8x1xf32>
    %46 = tpu.reciprocal %45 {approx = true} : vector<8x1xf32> -> vector<8x1xf32>
    %47 = vector.broadcast %46 : vector<8x1xf32> to vector<8x8xf32>
    %48 = arith.mulf %43, %47 : vector<8x8xf32>
    %49 = arith.truncf %48 : vector<8x8xf32> to vector<8x8xbf16>
    %50 = arith.truncf %33 : vector<8x16xf32> to vector<8x16xbf16>
    %cst_33 = arith.constant dense<0.000000e+00> : vector<8x16xf32>
    %51 = tpu.matmul %49, %50, %cst_33 {dimension_numbers = #tpu.dot_dimension_numbers<[1], [0], [0], [1], [0, 0, 1, 1], [], []>} : vector<8x8xbf16>, vector<8x16xbf16>, vector<8x16xf32> -> vector<8x16xf32>
    %52 = arith.truncf %51 : vector<8x16xf32> to vector<8x16xbf16>
    %c0_34 = arith.constant 0 : index
    %c0_35 = arith.constant 0 : index
    %c0_36 = arith.constant 0 : index
    %53 = vector.load %arg12[%c0_34, %c0_35, %c0_36] : memref<2x16x32xbf16, #tpu.memory_space<vmem>>, vector<1x16x32xbf16>
    %54 = vector.shape_cast %53 : vector<1x16x32xbf16> to vector<16x32xbf16>
    %cst_37 = arith.constant dense<0.000000e+00> : vector<8x32xf32>
    %55 = tpu.matmul %52, %54, %cst_37 {dimension_numbers = #tpu.dot_dimension_numbers<[1], [0], [0], [1], [0, 0, 1, 1], [], []>} : vector<8x16xbf16>, vector<16x32xbf16>, vector<8x32xf32> -> vector<8x32xf32>
    %56 = arith.addf %12, %55 : vector<8x32xf32>
    %c1 = arith.constant 1 : index
    %c0_38 = arith.constant 0 : index
    %c0_39 = arith.constant 0 : index
    %57 = vector.load %arg6[%c1, %c0_38, %c0_39] : memref<2x32x16xbf16, #tpu.memory_space<vmem>>, vector<1x32x16xbf16>
    %58 = vector.shape_cast %57 : vector<1x32x16xbf16> to vector<32x16xbf16>
    %cst_40 = arith.constant dense<0.000000e+00> : vector<8x16xf32>
    %59 = tpu.matmul %10, %58, %cst_40 {dimension_numbers = #tpu.dot_dimension_numbers<[1], [0], [0], [1], [0, 0, 1, 1], [], []>} : vector<8x32xbf16>, vector<32x16xbf16>, vector<8x16xf32> -> vector<8x16xf32>
    %c1_41 = arith.constant 1 : index
    %c0_42 = arith.constant 0 : index
    %c0_43 = arith.constant 0 : index
    %60 = vector.load %arg9[%c1_41, %c0_42, %c0_43] : memref<2x1x16xf32, #tpu.memory_space<vmem>>, vector<1x1x16xf32>
    %61 = vector.shape_cast %60 : vector<1x1x16xf32> to vector<1x16xf32>
    %62 = vector.broadcast %61 : vector<1x16xf32> to vector<8x16xf32>
    %63 = arith.addf %59, %62 : vector<8x16xf32>
    %c1_44 = arith.constant 1 : index
    %c0_45 = arith.constant 0 : index
    %c0_46 = arith.constant 0 : index
    %64 = vector.load %arg7[%c1_44, %c0_45, %c0_46] : memref<2x32x16xbf16, #tpu.memory_space<vmem>>, vector<1x32x16xbf16>
    %65 = vector.shape_cast %64 : vector<1x32x16xbf16> to vector<32x16xbf16>
    %cst_47 = arith.constant dense<0.000000e+00> : vector<8x16xf32>
    %66 = tpu.matmul %11, %65, %cst_47 {dimension_numbers = #tpu.dot_dimension_numbers<[1], [0], [0], [1], [0, 0, 1, 1], [], []>} : vector<8x32xbf16>, vector<32x16xbf16>, vector<8x16xf32> -> vector<8x16xf32>
    %c1_48 = arith.constant 1 : index
    %c0_49 = arith.constant 0 : index
    %c0_50 = arith.constant 0 : index
    %67 = vector.load %arg10[%c1_48, %c0_49, %c0_50] : memref<2x1x16xf32, #tpu.memory_space<vmem>>, vector<1x1x16xf32>
    %68 = vector.shape_cast %67 : vector<1x1x16xf32> to vector<1x16xf32>
    %69 = vector.broadcast %68 : vector<1x16xf32> to vector<8x16xf32>
    %70 = arith.addf %66, %69 : vector<8x16xf32>
    %c1_51 = arith.constant 1 : index
    %c0_52 = arith.constant 0 : index
    %c0_53 = arith.constant 0 : index
    %71 = vector.load %arg8[%c1_51, %c0_52, %c0_53] : memref<2x32x16xbf16, #tpu.memory_space<vmem>>, vector<1x32x16xbf16>
    %72 = vector.shape_cast %71 : vector<1x32x16xbf16> to vector<32x16xbf16>
    %cst_54 = arith.constant dense<0.000000e+00> : vector<8x16xf32>
    %73 = tpu.matmul %11, %72, %cst_54 {dimension_numbers = #tpu.dot_dimension_numbers<[1], [0], [0], [1], [0, 0, 1, 1], [], []>} : vector<8x32xbf16>, vector<32x16xbf16>, vector<8x16xf32> -> vector<8x16xf32>
    %c1_55 = arith.constant 1 : index
    %c0_56 = arith.constant 0 : index
    %c0_57 = arith.constant 0 : index
    %74 = vector.load %arg11[%c1_55, %c0_56, %c0_57] : memref<2x1x16xf32, #tpu.memory_space<vmem>>, vector<1x1x16xf32>
    %75 = vector.shape_cast %74 : vector<1x1x16xf32> to vector<1x16xf32>
    %76 = vector.broadcast %75 : vector<1x16xf32> to vector<8x16xf32>
    %77 = arith.addf %73, %76 : vector<8x16xf32>
    %cst_58 = arith.constant 2.500000e-01 : f32
    %78 = vector.broadcast %cst_58 : f32 to vector<8x16xf32>
    %79 = arith.mulf %63, %78 : vector<8x16xf32>
    %80 = arith.truncf %79 : vector<8x16xf32> to vector<8x16xbf16>
    %81 = arith.truncf %70 : vector<8x16xf32> to vector<8x16xbf16>
    %cst_59 = arith.constant dense<0.000000e+00> : vector<8x8xf32>
    %82 = tpu.matmul %80, %81, %cst_59 {dimension_numbers = #tpu.dot_dimension_numbers<[1], [1], [0], [0], [0, 0, 1, 0], [], []>} : vector<8x16xbf16>, vector<8x16xbf16>, vector<8x8xf32> -> vector<8x8xf32>
    %cst_60 = arith.constant dense<0xFF800000> : vector<8xf32>
    %83 = vector.multi_reduction <maximumf>, %82, %cst_60 [1] : vector<8x8xf32> to vector<8xf32>
    %84 = vector.shape_cast %83 : vector<8xf32> to vector<8x1xf32>
    %85 = vector.broadcast %84 : vector<8x1xf32> to vector<8x8xf32>
    %86 = arith.subf %82, %85 : vector<8x8xf32>
    %87 = math.exp %86 : vector<8x8xf32>
    %cst_61 = arith.constant dense<0.000000e+00> : vector<8xf32>
    %88 = vector.multi_reduction <add>, %87, %cst_61 [1] : vector<8x8xf32> to vector<8xf32>
    %89 = vector.shape_cast %88 : vector<8xf32> to vector<8x1xf32>
    %90 = tpu.reciprocal %89 {approx = true} : vector<8x1xf32> -> vector<8x1xf32>
    %91 = vector.broadcast %90 : vector<8x1xf32> to vector<8x8xf32>
    %92 = arith.mulf %87, %91 : vector<8x8xf32>
    %93 = arith.truncf %92 : vector<8x8xf32> to vector<8x8xbf16>
    %94 = arith.truncf %77 : vector<8x16xf32> to vector<8x16xbf16>
    %cst_62 = arith.constant dense<0.000000e+00> : vector<8x16xf32>
    %95 = tpu.matmul %93, %94, %cst_62 {dimension_numbers = #tpu.dot_dimension_numbers<[1], [0], [0], [1], [0, 0, 1, 1], [], []>} : vector<8x8xbf16>, vector<8x16xbf16>, vector<8x16xf32> -> vector<8x16xf32>
    %96 = arith.truncf %95 : vector<8x16xf32> to vector<8x16xbf16>
    %c1_63 = arith.constant 1 : index
    %c0_64 = arith.constant 0 : index
    %c0_65 = arith.constant 0 : index
    %97 = vector.load %arg12[%c1_63, %c0_64, %c0_65] : memref<2x16x32xbf16, #tpu.memory_space<vmem>>, vector<1x16x32xbf16>
    %98 = vector.shape_cast %97 : vector<1x16x32xbf16> to vector<16x32xbf16>
    %cst_66 = arith.constant dense<0.000000e+00> : vector<8x32xf32>
    %99 = tpu.matmul %96, %98, %cst_66 {dimension_numbers = #tpu.dot_dimension_numbers<[1], [0], [0], [1], [0, 0, 1, 1], [], []>} : vector<8x16xbf16>, vector<16x32xbf16>, vector<8x32xf32> -> vector<8x32xf32>
    %100 = arith.addf %56, %99 : vector<8x32xf32>
    %c0_67 = arith.constant 0 : index
    %c0_68 = arith.constant 0 : index
    %101 = vector.load %arg13[%c0_67, %c0_68] : memref<1x32xf32, #tpu.memory_space<vmem>>, vector<1x32xf32>
    %102 = vector.broadcast %101 : vector<1x32xf32> to vector<8x32xf32>
    %103 = arith.addf %100, %102 : vector<8x32xf32>
    %104 = arith.addf %7, %103 : vector<8x32xf32>
    %c0_69 = arith.constant 0 : index
    %c0_70 = arith.constant 0 : index
    %105 = vector.load %arg14[%c0_69, %c0_70] : memref<1x32xf32, #tpu.memory_space<vmem>>, vector<1x32xf32>
    %c0_71 = arith.constant 0 : index
    %c0_72 = arith.constant 0 : index
    %106 = vector.load %arg15[%c0_71, %c0_72] : memref<1x32xf32, #tpu.memory_space<vmem>>, vector<1x32xf32>
    %cst_73 = arith.constant dense<0.000000e+00> : vector<8xf32>
    %107 = vector.multi_reduction <add>, %104, %cst_73 [1] : vector<8x32xf32> to vector<8xf32>
    %108 = vector.shape_cast %107 : vector<8xf32> to vector<8x1xf32>
    %cst_74 = arith.constant 3.200000e+01 : f32
    %109 = vector.broadcast %cst_74 : f32 to vector<8x1xf32>
    %110 = arith.divf %108, %109 : vector<8x1xf32>
    %111 = vector.broadcast %110 : vector<8x1xf32> to vector<8x32xf32>
    %112 = arith.subf %104, %111 : vector<8x32xf32>
    %113 = arith.mulf %112, %112 : vector<8x32xf32>
    %cst_75 = arith.constant dense<0.000000e+00> : vector<8xf32>
    %114 = vector.multi_reduction <add>, %113, %cst_75 [1] : vector<8x32xf32> to vector<8xf32>
    %115 = vector.shape_cast %114 : vector<8xf32> to vector<8x1xf32>
    %cst_76 = arith.constant 3.200000e+01 : f32
    %116 = vector.broadcast %cst_76 : f32 to vector<8x1xf32>
    %117 = arith.divf %115, %116 : vector<8x1xf32>
    %cst_77 = arith.constant 9.99999974E-6 : f32
    %118 = vector.broadcast %cst_77 : f32 to vector<8x1xf32>
    %119 = arith.addf %117, %118 : vector<8x1xf32>
    %120 = math.rsqrt %119 : vector<8x1xf32>
    %121 = vector.broadcast %120 : vector<8x1xf32> to vector<8x32xf32>
    %122 = arith.mulf %112, %121 : vector<8x32xf32>
    %123 = vector.broadcast %105 : vector<1x32xf32> to vector<8x32xf32>
    %124 = arith.mulf %122, %123 : vector<8x32xf32>
    %125 = vector.broadcast %106 : vector<1x32xf32> to vector<8x32xf32>
    %126 = arith.addf %124, %125 : vector<8x32xf32>
    %c0_78 = arith.constant 0 : index
    %c0_79 = arith.constant 0 : index
    %c0_80 = arith.constant 0 : index
    %127 = vector.load %arg5[%c0_78, %c0_79, %c0_80] : memref<1x1x32xf32, #tpu.memory_space<vmem>>, vector<1x1x32xf32>
    %128 = vector.shape_cast %127 : vector<1x1x32xf32> to vector<1x32xf32>
    %129 = arith.truncf %128 : vector<1x32xf32> to vector<1x32xbf16>
    %c0_81 = arith.constant 0 : index
    %c0_82 = arith.constant 0 : index
    %130 = vector.load %arg16[%c0_81, %c0_82] : memref<32x32xbf16, #tpu.memory_space<vmem>>, vector<32x32xbf16>
    %cst_83 = arith.constant dense<0.000000e+00> : vector<1x32xf32>
    %131 = tpu.matmul %129, %130, %cst_83 {dimension_numbers = #tpu.dot_dimension_numbers<[1], [0], [0], [1], [0, 0, 1, 1], [], []>} : vector<1x32xbf16>, vector<32x32xbf16>, vector<1x32xf32> -> vector<1x32xf32>
    %c0_84 = arith.constant 0 : index
    %c0_85 = arith.constant 0 : index
    %132 = vector.load %arg17[%c0_84, %c0_85] : memref<1x32xf32, #tpu.memory_space<vmem>>, vector<1x32xf32>
    %133 = arith.addf %131, %132 : vector<1x32xf32>
    %134 = vector.broadcast %133 : vector<1x32xf32> to vector<8x32xf32>
    %135 = arith.addf %126, %134 : vector<8x32xf32>
    %c0_86 = arith.constant 0 : index
    %c0_87 = arith.constant 0 : index
    %136 = vector.load %arg18[%c0_86, %c0_87] : memref<1x32xf32, #tpu.memory_space<vmem>>, vector<1x32xf32>
    %c0_88 = arith.constant 0 : index
    %c0_89 = arith.constant 0 : index
    %137 = vector.load %arg19[%c0_88, %c0_89] : memref<1x32xf32, #tpu.memory_space<vmem>>, vector<1x32xf32>
    %cst_90 = arith.constant dense<0.000000e+00> : vector<8xf32>
    %138 = vector.multi_reduction <add>, %135, %cst_90 [1] : vector<8x32xf32> to vector<8xf32>
    %139 = vector.shape_cast %138 : vector<8xf32> to vector<8x1xf32>
    %cst_91 = arith.constant 3.200000e+01 : f32
    %140 = vector.broadcast %cst_91 : f32 to vector<8x1xf32>
    %141 = arith.divf %139, %140 : vector<8x1xf32>
    %142 = vector.broadcast %141 : vector<8x1xf32> to vector<8x32xf32>
    %143 = arith.subf %135, %142 : vector<8x32xf32>
    %144 = arith.mulf %143, %143 : vector<8x32xf32>
    %cst_92 = arith.constant dense<0.000000e+00> : vector<8xf32>
    %145 = vector.multi_reduction <add>, %144, %cst_92 [1] : vector<8x32xf32> to vector<8xf32>
    %146 = vector.shape_cast %145 : vector<8xf32> to vector<8x1xf32>
    %cst_93 = arith.constant 3.200000e+01 : f32
    %147 = vector.broadcast %cst_93 : f32 to vector<8x1xf32>
    %148 = arith.divf %146, %147 : vector<8x1xf32>
    %cst_94 = arith.constant 9.99999974E-6 : f32
    %149 = vector.broadcast %cst_94 : f32 to vector<8x1xf32>
    %150 = arith.addf %148, %149 : vector<8x1xf32>
    %151 = math.rsqrt %150 : vector<8x1xf32>
    %152 = vector.broadcast %151 : vector<8x1xf32> to vector<8x32xf32>
    %153 = arith.mulf %143, %152 : vector<8x32xf32>
    %154 = vector.broadcast %136 : vector<1x32xf32> to vector<8x32xf32>
    %155 = arith.mulf %153, %154 : vector<8x32xf32>
    %156 = vector.broadcast %137 : vector<1x32xf32> to vector<8x32xf32>
    %157 = arith.addf %155, %156 : vector<8x32xf32>
    %158 = arith.truncf %157 : vector<8x32xf32> to vector<8x32xbf16>
    %c0_95 = arith.constant 0 : index
    %c0_96 = arith.constant 0 : index
    %159 = vector.load %arg20[%c0_95, %c0_96] : memref<32x2048xbf16, #tpu.memory_space<vmem>>, vector<32x2048xbf16>
    %cst_97 = arith.constant dense<0.000000e+00> : vector<8x2048xf32>
    %160 = tpu.matmul %158, %159, %cst_97 {dimension_numbers = #tpu.dot_dimension_numbers<[1], [0], [0], [1], [0, 0, 1, 1], [], []>} : vector<8x32xbf16>, vector<32x2048xbf16>, vector<8x2048xf32> -> vector<8x2048xf32>
    %c0_98 = arith.constant 0 : index
    %c0_99 = arith.constant 0 : index
    %161 = vector.load %arg21[%c0_98, %c0_99] : memref<1x2048xf32, #tpu.memory_space<vmem>>, vector<1x2048xf32>
    %162 = vector.broadcast %161 : vector<1x2048xf32> to vector<8x2048xf32>
    %163 = arith.addf %160, %162 : vector<8x2048xf32>
    %cst_100 = arith.constant 0.000000e+00 : f32
    %164 = vector.broadcast %cst_100 : f32 to vector<8x2048xf32>
    %165 = arith.maximumf %163, %164 : vector<8x2048xf32>
    %166 = arith.truncf %165 : vector<8x2048xf32> to vector<8x2048xbf16>
    %c0_101 = arith.constant 0 : index
    %c0_102 = arith.constant 0 : index
    %167 = vector.load %arg22[%c0_101, %c0_102] : memref<2048x32xbf16, #tpu.memory_space<vmem>>, vector<2048x32xbf16>
    %cst_103 = arith.constant dense<0.000000e+00> : vector<8x32xf32>
    %168 = tpu.matmul %166, %167, %cst_103 {dimension_numbers = #tpu.dot_dimension_numbers<[1], [0], [0], [1], [0, 0, 1, 1], [], []>} : vector<8x2048xbf16>, vector<2048x32xbf16>, vector<8x32xf32> -> vector<8x32xf32>
    %c0_104 = arith.constant 0 : index
    %c0_105 = arith.constant 0 : index
    %169 = vector.load %arg23[%c0_104, %c0_105] : memref<1x32xf32, #tpu.memory_space<vmem>>, vector<1x32xf32>
    %170 = vector.broadcast %169 : vector<1x32xf32> to vector<8x32xf32>
    %171 = arith.addf %168, %170 : vector<8x32xf32>
    %172 = arith.addf %157, %171 : vector<8x32xf32>
    %c0_106 = arith.constant 0 : index
    %c0_107 = arith.constant 0 : index
    %173 = vector.load %arg24[%c0_106, %c0_107] : memref<1x32xf32, #tpu.memory_space<vmem>>, vector<1x32xf32>
    %c0_108 = arith.constant 0 : index
    %c0_109 = arith.constant 0 : index
    %174 = vector.load %arg25[%c0_108, %c0_109] : memref<1x32xf32, #tpu.memory_space<vmem>>, vector<1x32xf32>
    %cst_110 = arith.constant dense<0.000000e+00> : vector<8xf32>
    %175 = vector.multi_reduction <add>, %172, %cst_110 [1] : vector<8x32xf32> to vector<8xf32>
    %176 = vector.shape_cast %175 : vector<8xf32> to vector<8x1xf32>
    %cst_111 = arith.constant 3.200000e+01 : f32
    %177 = vector.broadcast %cst_111 : f32 to vector<8x1xf32>
    %178 = arith.divf %176, %177 : vector<8x1xf32>
    %179 = vector.broadcast %178 : vector<8x1xf32> to vector<8x32xf32>
    %180 = arith.subf %172, %179 : vector<8x32xf32>
    %181 = arith.mulf %180, %180 : vector<8x32xf32>
    %cst_112 = arith.constant dense<0.000000e+00> : vector<8xf32>
    %182 = vector.multi_reduction <add>, %181, %cst_112 [1] : vector<8x32xf32> to vector<8xf32>
    %183 = vector.shape_cast %182 : vector<8xf32> to vector<8x1xf32>
    %cst_113 = arith.constant 3.200000e+01 : f32
    %184 = vector.broadcast %cst_113 : f32 to vector<8x1xf32>
    %185 = arith.divf %183, %184 : vector<8x1xf32>
    %cst_114 = arith.constant 9.99999974E-6 : f32
    %186 = vector.broadcast %cst_114 : f32 to vector<8x1xf32>
    %187 = arith.addf %185, %186 : vector<8x1xf32>
    %188 = math.rsqrt %187 : vector<8x1xf32>
    %189 = vector.broadcast %188 : vector<8x1xf32> to vector<8x32xf32>
    %190 = arith.mulf %180, %189 : vector<8x32xf32>
    %191 = vector.broadcast %173 : vector<1x32xf32> to vector<8x32xf32>
    %192 = arith.mulf %190, %191 : vector<8x32xf32>
    %193 = vector.broadcast %174 : vector<1x32xf32> to vector<8x32xf32>
    %194 = arith.addf %192, %193 : vector<8x32xf32>
    %c0_115 = arith.constant 0 : index
    %c0_116 = arith.constant 0 : index
    %c0_117 = arith.constant 0 : index
    %195 = vector.load %arg26[%c0_115, %c0_116, %c0_117] : memref<1x8x32xf32, #tpu.memory_space<vmem>>, vector<1x8x32xf32>
    %196 = vector.shape_cast %195 : vector<1x8x32xf32> to vector<8x32xf32>
    %197 = vector.shape_cast %194 : vector<8x32xf32> to vector<1x8x32xf32>
    tpu.vector_store %arg26[%c0_115, %c0_116, %c0_117], %197 {strides = array<i32>} : memref<1x8x32xf32, #tpu.memory_space<vmem>>, vector<1x8x32xf32>,
    return
  }
  func.func @transform_0(%arg0: i32, %arg1: i32) -> (i32, i32, i32) {
    %c0_i32 = arith.constant 0 : i32
    %c0_i32_0 = arith.constant 0 : i32
    return %arg0, %arg1, %c0_i32 : i32, i32, i32
  }
  func.func @transform_1(%arg0: i32, %arg1: i32) -> (i32, i32, i32) {
    %c0_i32 = arith.constant 0 : i32
    %c0_i32_0 = arith.constant 0 : i32
    %c0_i32_1 = arith.constant 0 : i32
    return %arg0, %c0_i32, %c0_i32_0 : i32, i32, i32
  }
  func.func @transform_2(%arg0: i32, %arg1: i32) -> (i32, i32, i32) {
    %c0_i32 = arith.constant 0 : i32
    %c0_i32_0 = arith.constant 0 : i32
    %c0_i32_1 = arith.constant 0 : i32
    return %arg0, %c0_i32, %c0_i32_0 : i32, i32, i32
  }
  func.func @transform_3(%arg0: i32, %arg1: i32) -> (i32, i32, i32) {
    %c0_i32 = arith.constant 0 : i32
    %c0_i32_0 = arith.constant 0 : i32
    %c0_i32_1 = arith.constant 0 : i32
    return %arg0, %c0_i32, %c0_i32_0 : i32, i32, i32
  }
  func.func @transform_4(%arg0: i32, %arg1: i32) -> (i32, i32, i32) {
    %c0_i32 = arith.constant 0 : i32
    %c0_i32_0 = arith.constant 0 : i32
    %c0_i32_1 = arith.constant 0 : i32
    %c0_i32_2 = arith.constant 0 : i32
    return %c0_i32, %c0_i32_0, %c0_i32_1 : i32, i32, i32
  }
  func.func @transform_5(%arg0: i32, %arg1: i32) -> (i32, i32, i32) {
    %c0_i32 = arith.constant 0 : i32
    %c0_i32_0 = arith.constant 0 : i32
    %c0_i32_1 = arith.constant 0 : i32
    %c0_i32_2 = arith.constant 0 : i32
    return %c0_i32, %c0_i32_0, %c0_i32_1 : i32, i32, i32
  }
  func.func @transform_6(%arg0: i32, %arg1: i32) -> (i32, i32, i32) {
    %c0_i32 = arith.constant 0 : i32
    %c0_i32_0 = arith.constant 0 : i32
    %c0_i32_1 = arith.constant 0 : i32
    %c0_i32_2 = arith.constant 0 : i32
    return %c0_i32, %c0_i32_0, %c0_i32_1 : i32, i32, i32
  }
  func.func @transform_7(%arg0: i32, %arg1: i32) -> (i32, i32, i32) {
    %c0_i32 = arith.constant 0 : i32
    %c0_i32_0 = arith.constant 0 : i32
    %c0_i32_1 = arith.constant 0 : i32
    %c0_i32_2 = arith.constant 0 : i32
    return %c0_i32, %c0_i32_0, %c0_i32_1 : i32, i32, i32
  }
  func.func @transform_8(%arg0: i32, %arg1: i32) -> (i32, i32, i32) {
    %c0_i32 = arith.constant 0 : i32
    %c0_i32_0 = arith.constant 0 : i32
    %c0_i32_1 = arith.constant 0 : i32
    %c0_i32_2 = arith.constant 0 : i32
    return %c0_i32, %c0_i32_0, %c0_i32_1 : i32, i32, i32
  }
  func.func @transform_9(%arg0: i32, %arg1: i32) -> (i32, i32, i32) {
    %c0_i32 = arith.constant 0 : i32
    %c0_i32_0 = arith.constant 0 : i32
    %c0_i32_1 = arith.constant 0 : i32
    %c0_i32_2 = arith.constant 0 : i32
    return %c0_i32, %c0_i32_0, %c0_i32_1 : i32, i32, i32
  }
  func.func @transform_10(%arg0: i32, %arg1: i32) -> (i32, i32, i32) {
    %c0_i32 = arith.constant 0 : i32
    %c0_i32_0 = arith.constant 0 : i32
    %c0_i32_1 = arith.constant 0 : i32
    %c0_i32_2 = arith.constant 0 : i32
    return %c0_i32, %c0_i32_0, %c0_i32_1 : i32, i32, i32
  }
  func.func @transform_11(%arg0: i32, %arg1: i32) -> (i32, i32) {
    %c0_i32 = arith.constant 0 : i32
    %c0_i32_0 = arith.constant 0 : i32
    %c0_i32_1 = arith.constant 0 : i32
    return %c0_i32, %c0_i32_0 : i32, i32
  }
  func.func @transform_12(%arg0: i32, %arg1: i32) -> (i32, i32) {
    %c0_i32 = arith.constant 0 : i32
    %c0_i32_0 = arith.constant 0 : i32
    %c0_i32_1 = arith.constant 0 : i32
    return %c0_i32, %c0_i32_0 : i32, i32
  }
  func.func @transform_13(%arg0: i32, %arg1: i32) -> (i32, i32) {
    %c0_i32 = arith.constant 0 : i32
    %c0_i32_0 = arith.constant 0 : i32
    %c0_i32_1 = arith.constant 0 : i32
    return %c0_i32, %c0_i32_0 : i32, i32
  }
  func.func @transform_14(%arg0: i32, %arg1: i32) -> (i32, i32) {
    %c0_i32 = arith.constant 0 : i32
    %c0_i32_0 = arith.constant 0 : i32
    %c0_i32_1 = arith.constant 0 : i32
    return %c0_i32, %c0_i32_0 : i32, i32
  }
  func.func @transform_15(%arg0: i32, %arg1: i32) -> (i32, i32) {
    %c0_i32 = arith.constant 0 : i32
    %c0_i32_0 = arith.constant 0 : i32
    %c0_i32_1 = arith.constant 0 : i32
    return %c0_i32, %c0_i32_0 : i32, i32
  }
  func.func @transform_16(%arg0: i32, %arg1: i32) -> (i32, i32) {
    %c0_i32 = arith.constant 0 : i32
    %c0_i32_0 = arith.constant 0 : i32
    %c0_i32_1 = arith.constant 0 : i32
    return %c0_i32, %c0_i32_0 : i32, i32
  }
  func.func @transform_17(%arg0: i32, %arg1: i32) -> (i32, i32) {
    %c0_i32 = arith.constant 0 : i32
    %c0_i32_0 = arith.constant 0 : i32
    %c0_i32_1 = arith.constant 0 : i32
    return %c0_i32, %c0_i32_0 : i32, i32
  }
  func.func @transform_18(%arg0: i32, %arg1: i32) -> (i32, i32) {
    %c0_i32 = arith.constant 0 : i32
    %c0_i32_0 = arith.constant 0 : i32
    %c0_i32_1 = arith.constant 0 : i32
    return %c0_i32, %c0_i32_0 : i32, i32
  }
  func.func @transform_19(%arg0: i32, %arg1: i32) -> (i32, i32) {
    %c0_i32 = arith.constant 0 : i32
    %c0_i32_0 = arith.constant 0 : i32
    %c0_i32_1 = arith.constant 0 : i32
    return %c0_i32, %c0_i32_0 : i32, i32
  }
  func.func @transform_20(%arg0: i32, %arg1: i32) -> (i32, i32) {
    %c0_i32 = arith.constant 0 : i32
    %c0_i32_0 = arith.constant 0 : i32
    %c0_i32_1 = arith.constant 0 : i32
    return %c0_i32, %c0_i32_0 : i32, i32
  }
  func.func @transform_21(%arg0: i32, %arg1: i32) -> (i32, i32) {
    %c0_i32 = arith.constant 0 : i32
    %c0_i32_0 = arith.constant 0 : i32
    %c0_i32_1 = arith.constant 0 : i32
    return %c0_i32, %c0_i32_0 : i32, i32
  }
  func.func @transform_22(%arg0: i32, %arg1: i32) -> (i32, i32) {
    %c0_i32 = arith.constant 0 : i32
    %c0_i32_0 = arith.constant 0 : i32
    %c0_i32_1 = arith.constant 0 : i32
    return %c0_i32, %c0_i32_0 : i32, i32
  }
  func.func @transform_23(%arg0: i32, %arg1: i32) -> (i32, i32) {
    %c0_i32 = arith.constant 0 : i32
    %c0_i32_0 = arith.constant 0 : i32
    %c0_i32_1 = arith.constant 0 : i32
    return %c0_i32, %c0_i32_0 : i32, i32
  }
  func.func @transform_24(%arg0: i32, %arg1: i32) -> (i32, i32, i32) {
    %c0_i32 = arith.constant 0 : i32
    %c0_i32_0 = arith.constant 0 : i32
    return %arg0, %arg1, %c0_i32 : i32, i32, i32
  }
}

module attributes {stable_mosaic.version = 11 : i64} {
  func.func @_decoder_layer_kernel(%arg0: i32, %arg1: i32, %arg2: memref<1x8x32xf32, #tpu.memory_space<vmem>>, %arg3: memref<1x8x32xf32, #tpu.memory_space<vmem>>, %arg4: memref<1x1x32xf32, #tpu.memory_space<vmem>>, %arg5: memref<2x32x16xbf16, #tpu.memory_space<vmem>>, %arg6: memref<2x32x16xbf16, #tpu.memory_space<vmem>>, %arg7: memref<2x32x16xbf16, #tpu.memory_space<vmem>>, %arg8: memref<2x1x16xf32, #tpu.memory_space<vmem>>, %arg9: memref<2x1x16xf32, #tpu.memory_space<vmem>>, %arg10: memref<2x1x16xf32, #tpu.memory_space<vmem>>, %arg11: memref<2x16x32xbf16, #tpu.memory_space<vmem>>, %arg12: memref<1x32xf32, #tpu.memory_space<vmem>>, %arg13: memref<1x32xf32, #tpu.memory_space<vmem>>, %arg14: memref<1x32xf32, #tpu.memory_space<vmem>>, %arg15: memref<32x32xbf16, #tpu.memory_space<vmem>>, %arg16: memref<1x32xf32, #tpu.memory_space<vmem>>, %arg17: memref<1x32xf32, #tpu.memory_space<vmem>>, %arg18: memref<1x32xf32, #tpu.memory_space<vmem>>, %arg19: memref<32x2048xbf16, #tpu.memory_space<vmem>>, %arg20: memref<1x2048xf32, #tpu.memory_space<vmem>>, %arg21: memref<2048x32xbf16, #tpu.memory_space<vmem>>, %arg22: memref<1x32xf32, #tpu.memory_space<vmem>>, %arg23: memref<1x32xf32, #tpu.memory_space<vmem>>, %arg24: memref<1x32xf32, #tpu.memory_space<vmem>>, %arg25: memref<32x32xbf16, #tpu.memory_space<vmem>>, %arg26: memref<1x32xf32, #tpu.memory_space<vmem>>, %arg27: memref<1x8x32xf32, #tpu.memory_space<vmem>>) attributes {dimension_semantics = [#tpu.dimension_semantics<parallel>, #tpu.dimension_semantics<parallel>], iteration_bounds = array<i64: 2, 1>, scalar_prefetch = 0 : i64, scratch_operands = 0 : i64, tpu.core_type = #tpu.core_type<tc>, window_params = [{transform_indices = @transform_0, window_bounds = array<i64: 1, 8, 32>}, {transform_indices = @transform_1, window_bounds = array<i64: 1, 8, 32>}, {transform_indices = @transform_2, window_bounds = array<i64: 1, 1, 32>}, {pipeline_mode = #tpu.pipeline_mode<synchronous>, transform_indices = @transform_3, window_bounds = array<i64: 2, 32, 16>}, {pipeline_mode = #tpu.pipeline_mode<synchronous>, transform_indices = @transform_4, window_bounds = array<i64: 2, 32, 16>}, {pipeline_mode = #tpu.pipeline_mode<synchronous>, transform_indices = @transform_5, window_bounds = array<i64: 2, 32, 16>}, {pipeline_mode = #tpu.pipeline_mode<synchronous>, transform_indices = @transform_6, window_bounds = array<i64: 2, 1, 16>}, {pipeline_mode = #tpu.pipeline_mode<synchronous>, transform_indices = @transform_7, window_bounds = array<i64: 2, 1, 16>}, {pipeline_mode = #tpu.pipeline_mode<synchronous>, transform_indices = @transform_8, window_bounds = array<i64: 2, 1, 16>}, {pipeline_mode = #tpu.pipeline_mode<synchronous>, transform_indices = @transform_9, window_bounds = array<i64: 2, 16, 32>}, {pipeline_mode = #tpu.pipeline_mode<synchronous>, transform_indices = @transform_10, window_bounds = array<i64: 1, 32>}, {pipeline_mode = #tpu.pipeline_mode<synchronous>, transform_indices = @transform_11, window_bounds = array<i64: 1, 32>}, {pipeline_mode = #tpu.pipeline_mode<synchronous>, transform_indices = @transform_12, window_bounds = array<i64: 1, 32>}, {pipeline_mode = #tpu.pipeline_mode<synchronous>, transform_indices = @transform_13, window_bounds = array<i64: 32, 32>}, {pipeline_mode = #tpu.pipeline_mode<synchronous>, transform_indices = @transform_14, window_bounds = array<i64: 1, 32>}, {pipeline_mode = #tpu.pipeline_mode<synchronous>, transform_indices = @transform_15, window_bounds = array<i64: 1, 32>}, {pipeline_mode = #tpu.pipeline_mode<synchronous>, transform_indices = @transform_16, window_bounds = array<i64: 1, 32>}, {pipeline_mode = #tpu.pipeline_mode<synchronous>, transform_indices = @transform_17, window_bounds = array<i64: 32, 2048>}, {pipeline_mode = #tpu.pipeline_mode<synchronous>, transform_indices = @transform_18, window_bounds = array<i64: 1, 2048>}, {pipeline_mode = #tpu.pipeline_mode<synchronous>, transform_indices = @transform_19, window_bounds = array<i64: 2048, 32>}, {pipeline_mode = #tpu.pipeline_mode<synchronous>, transform_indices = @transform_20, window_bounds = array<i64: 1, 32>}, {pipeline_mode = #tpu.pipeline_mode<synchronous>, transform_indices = @transform_21, window_bounds = array<i64: 1, 32>}, {pipeline_mode = #tpu.pipeline_mode<synchronous>, transform_indices = @transform_22, window_bounds = array<i64: 1, 32>}, {pipeline_mode = #tpu.pipeline_mode<synchronous>, transform_indices = @transform_23, window_bounds = array<i64: 32, 32>}, {pipeline_mode = #tpu.pipeline_mode<synchronous>, transform_indices = @transform_24, window_bounds = array<i64: 1, 32>}, {transform_indices = @transform_25, window_bounds = array<i64: 1, 8, 32>}]} {
    %c0 = arith.constant 0 : index
    %c0_0 = arith.constant 0 : index
    %c0_1 = arith.constant 0 : index
    %0 = vector.load %arg2[%c0, %c0_0, %c0_1] : memref<1x8x32xf32, #tpu.memory_space<vmem>>, vector<1x8x32xf32>
    %1 = vector.shape_cast %0 : vector<1x8x32xf32> to vector<8x32xf32>
    %c0_2 = arith.constant 0 : index
    %c0_3 = arith.constant 0 : index
    %c0_4 = arith.constant 0 : index
    %2 = vector.load %arg3[%c0_2, %c0_3, %c0_4] : memref<1x8x32xf32, #tpu.memory_space<vmem>>, vector<1x8x32xf32>
    %3 = vector.shape_cast %2 : vector<1x8x32xf32> to vector<8x32xf32>
    %4 = arith.truncf %1 : vector<8x32xf32> to vector<8x32xbf16>
    %5 = arith.truncf %3 : vector<8x32xf32> to vector<8x32xbf16>
    %cst = arith.constant 0.000000e+00 : f32
    %6 = vector.broadcast %cst : f32 to vector<8x32xf32>
    %c0_5 = arith.constant 0 : index
    %c0_6 = arith.constant 0 : index
    %c0_7 = arith.constant 0 : index
    %7 = vector.load %arg5[%c0_5, %c0_6, %c0_7] : memref<2x32x16xbf16, #tpu.memory_space<vmem>>, vector<1x32x16xbf16>
    %8 = vector.shape_cast %7 : vector<1x32x16xbf16> to vector<32x16xbf16>
    %cst_8 = arith.constant dense<0.000000e+00> : vector<8x16xf32>
    %9 = tpu.matmul %4, %8, %cst_8 {dimension_numbers = #tpu.dot_dimension_numbers<[1], [0], [0], [1], [0, 0, 1, 1], [], []>} : vector<8x32xbf16>, vector<32x16xbf16>, vector<8x16xf32> -> vector<8x16xf32>
    %c0_9 = arith.constant 0 : index
    %c0_10 = arith.constant 0 : index
    %c0_11 = arith.constant 0 : index
    %10 = vector.load %arg8[%c0_9, %c0_10, %c0_11] : memref<2x1x16xf32, #tpu.memory_space<vmem>>, vector<1x1x16xf32>
    %11 = vector.shape_cast %10 : vector<1x1x16xf32> to vector<1x16xf32>
    %12 = vector.broadcast %11 : vector<1x16xf32> to vector<8x16xf32>
    %13 = arith.addf %9, %12 : vector<8x16xf32>
    %c0_12 = arith.constant 0 : index
    %c0_13 = arith.constant 0 : index
    %c0_14 = arith.constant 0 : index
    %14 = vector.load %arg6[%c0_12, %c0_13, %c0_14] : memref<2x32x16xbf16, #tpu.memory_space<vmem>>, vector<1x32x16xbf16>
    %15 = vector.shape_cast %14 : vector<1x32x16xbf16> to vector<32x16xbf16>
    %cst_15 = arith.constant dense<0.000000e+00> : vector<8x16xf32>
    %16 = tpu.matmul %5, %15, %cst_15 {dimension_numbers = #tpu.dot_dimension_numbers<[1], [0], [0], [1], [0, 0, 1, 1], [], []>} : vector<8x32xbf16>, vector<32x16xbf16>, vector<8x16xf32> -> vector<8x16xf32>
    %c0_16 = arith.constant 0 : index
    %c0_17 = arith.constant 0 : index
    %c0_18 = arith.constant 0 : index
    %17 = vector.load %arg9[%c0_16, %c0_17, %c0_18] : memref<2x1x16xf32, #tpu.memory_space<vmem>>, vector<1x1x16xf32>
    %18 = vector.shape_cast %17 : vector<1x1x16xf32> to vector<1x16xf32>
    %19 = vector.broadcast %18 : vector<1x16xf32> to vector<8x16xf32>
    %20 = arith.addf %16, %19 : vector<8x16xf32>
    %c0_19 = arith.constant 0 : index
    %c0_20 = arith.constant 0 : index
    %c0_21 = arith.constant 0 : index
    %21 = vector.load %arg7[%c0_19, %c0_20, %c0_21] : memref<2x32x16xbf16, #tpu.memory_space<vmem>>, vector<1x32x16xbf16>
    %22 = vector.shape_cast %21 : vector<1x32x16xbf16> to vector<32x16xbf16>
    %cst_22 = arith.constant dense<0.000000e+00> : vector<8x16xf32>
    %23 = tpu.matmul %5, %22, %cst_22 {dimension_numbers = #tpu.dot_dimension_numbers<[1], [0], [0], [1], [0, 0, 1, 1], [], []>} : vector<8x32xbf16>, vector<32x16xbf16>, vector<8x16xf32> -> vector<8x16xf32>
    %c0_23 = arith.constant 0 : index
    %c0_24 = arith.constant 0 : index
    %c0_25 = arith.constant 0 : index
    %24 = vector.load %arg10[%c0_23, %c0_24, %c0_25] : memref<2x1x16xf32, #tpu.memory_space<vmem>>, vector<1x1x16xf32>
    %25 = vector.shape_cast %24 : vector<1x1x16xf32> to vector<1x16xf32>
    %26 = vector.broadcast %25 : vector<1x16xf32> to vector<8x16xf32>
    %27 = arith.addf %23, %26 : vector<8x16xf32>
    %cst_26 = arith.constant 2.500000e-01 : f32
    %28 = vector.broadcast %cst_26 : f32 to vector<8x16xf32>
    %29 = arith.mulf %13, %28 : vector<8x16xf32>
    %30 = arith.truncf %29 : vector<8x16xf32> to vector<8x16xbf16>
    %31 = arith.truncf %20 : vector<8x16xf32> to vector<8x16xbf16>
    %cst_27 = arith.constant dense<0.000000e+00> : vector<8x8xf32>
    %32 = tpu.matmul %30, %31, %cst_27 {dimension_numbers = #tpu.dot_dimension_numbers<[1], [1], [0], [0], [0, 0, 1, 0], [], []>} : vector<8x16xbf16>, vector<8x16xbf16>, vector<8x8xf32> -> vector<8x8xf32>
    %cst_28 = arith.constant dense<0xFF800000> : vector<8xf32>
    %33 = vector.multi_reduction <maximumf>, %32, %cst_28 [1] : vector<8x8xf32> to vector<8xf32>
    %34 = vector.shape_cast %33 : vector<8xf32> to vector<8x1xf32>
    %35 = vector.broadcast %34 : vector<8x1xf32> to vector<8x8xf32>
    %36 = arith.subf %32, %35 : vector<8x8xf32>
    %37 = math.exp %36 : vector<8x8xf32>
    %cst_29 = arith.constant dense<0.000000e+00> : vector<8xf32>
    %38 = vector.multi_reduction <add>, %37, %cst_29 [1] : vector<8x8xf32> to vector<8xf32>
    %39 = vector.shape_cast %38 : vector<8xf32> to vector<8x1xf32>
    %40 = tpu.reciprocal %39 {approx = true} : vector<8x1xf32> -> vector<8x1xf32>
    %41 = vector.broadcast %40 : vector<8x1xf32> to vector<8x8xf32>
    %42 = arith.mulf %37, %41 : vector<8x8xf32>
    %43 = arith.truncf %42 : vector<8x8xf32> to vector<8x8xbf16>
    %44 = arith.truncf %27 : vector<8x16xf32> to vector<8x16xbf16>
    %cst_30 = arith.constant dense<0.000000e+00> : vector<8x16xf32>
    %45 = tpu.matmul %43, %44, %cst_30 {dimension_numbers = #tpu.dot_dimension_numbers<[1], [0], [0], [1], [0, 0, 1, 1], [], []>} : vector<8x8xbf16>, vector<8x16xbf16>, vector<8x16xf32> -> vector<8x16xf32>
    %46 = arith.truncf %45 : vector<8x16xf32> to vector<8x16xbf16>
    %c0_31 = arith.constant 0 : index
    %c0_32 = arith.constant 0 : index
    %c0_33 = arith.constant 0 : index
    %47 = vector.load %arg11[%c0_31, %c0_32, %c0_33] : memref<2x16x32xbf16, #tpu.memory_space<vmem>>, vector<1x16x32xbf16>
    %48 = vector.shape_cast %47 : vector<1x16x32xbf16> to vector<16x32xbf16>
    %cst_34 = arith.constant dense<0.000000e+00> : vector<8x32xf32>
    %49 = tpu.matmul %46, %48, %cst_34 {dimension_numbers = #tpu.dot_dimension_numbers<[1], [0], [0], [1], [0, 0, 1, 1], [], []>} : vector<8x16xbf16>, vector<16x32xbf16>, vector<8x32xf32> -> vector<8x32xf32>
    %50 = arith.addf %6, %49 : vector<8x32xf32>
    %c1 = arith.constant 1 : index
    %c0_35 = arith.constant 0 : index
    %c0_36 = arith.constant 0 : index
    %51 = vector.load %arg5[%c1, %c0_35, %c0_36] : memref<2x32x16xbf16, #tpu.memory_space<vmem>>, vector<1x32x16xbf16>
    %52 = vector.shape_cast %51 : vector<1x32x16xbf16> to vector<32x16xbf16>
    %cst_37 = arith.constant dense<0.000000e+00> : vector<8x16xf32>
    %53 = tpu.matmul %4, %52, %cst_37 {dimension_numbers = #tpu.dot_dimension_numbers<[1], [0], [0], [1], [0, 0, 1, 1], [], []>} : vector<8x32xbf16>, vector<32x16xbf16>, vector<8x16xf32> -> vector<8x16xf32>
    %c1_38 = arith.constant 1 : index
    %c0_39 = arith.constant 0 : index
    %c0_40 = arith.constant 0 : index
    %54 = vector.load %arg8[%c1_38, %c0_39, %c0_40] : memref<2x1x16xf32, #tpu.memory_space<vmem>>, vector<1x1x16xf32>
    %55 = vector.shape_cast %54 : vector<1x1x16xf32> to vector<1x16xf32>
    %56 = vector.broadcast %55 : vector<1x16xf32> to vector<8x16xf32>
    %57 = arith.addf %53, %56 : vector<8x16xf32>
    %c1_41 = arith.constant 1 : index
    %c0_42 = arith.constant 0 : index
    %c0_43 = arith.constant 0 : index
    %58 = vector.load %arg6[%c1_41, %c0_42, %c0_43] : memref<2x32x16xbf16, #tpu.memory_space<vmem>>, vector<1x32x16xbf16>
    %59 = vector.shape_cast %58 : vector<1x32x16xbf16> to vector<32x16xbf16>
    %cst_44 = arith.constant dense<0.000000e+00> : vector<8x16xf32>
    %60 = tpu.matmul %5, %59, %cst_44 {dimension_numbers = #tpu.dot_dimension_numbers<[1], [0], [0], [1], [0, 0, 1, 1], [], []>} : vector<8x32xbf16>, vector<32x16xbf16>, vector<8x16xf32> -> vector<8x16xf32>
    %c1_45 = arith.constant 1 : index
    %c0_46 = arith.constant 0 : index
    %c0_47 = arith.constant 0 : index
    %61 = vector.load %arg9[%c1_45, %c0_46, %c0_47] : memref<2x1x16xf32, #tpu.memory_space<vmem>>, vector<1x1x16xf32>
    %62 = vector.shape_cast %61 : vector<1x1x16xf32> to vector<1x16xf32>
    %63 = vector.broadcast %62 : vector<1x16xf32> to vector<8x16xf32>
    %64 = arith.addf %60, %63 : vector<8x16xf32>
    %c1_48 = arith.constant 1 : index
    %c0_49 = arith.constant 0 : index
    %c0_50 = arith.constant 0 : index
    %65 = vector.load %arg7[%c1_48, %c0_49, %c0_50] : memref<2x32x16xbf16, #tpu.memory_space<vmem>>, vector<1x32x16xbf16>
    %66 = vector.shape_cast %65 : vector<1x32x16xbf16> to vector<32x16xbf16>
    %cst_51 = arith.constant dense<0.000000e+00> : vector<8x16xf32>
    %67 = tpu.matmul %5, %66, %cst_51 {dimension_numbers = #tpu.dot_dimension_numbers<[1], [0], [0], [1], [0, 0, 1, 1], [], []>} : vector<8x32xbf16>, vector<32x16xbf16>, vector<8x16xf32> -> vector<8x16xf32>
    %c1_52 = arith.constant 1 : index
    %c0_53 = arith.constant 0 : index
    %c0_54 = arith.constant 0 : index
    %68 = vector.load %arg10[%c1_52, %c0_53, %c0_54] : memref<2x1x16xf32, #tpu.memory_space<vmem>>, vector<1x1x16xf32>
    %69 = vector.shape_cast %68 : vector<1x1x16xf32> to vector<1x16xf32>
    %70 = vector.broadcast %69 : vector<1x16xf32> to vector<8x16xf32>
    %71 = arith.addf %67, %70 : vector<8x16xf32>
    %cst_55 = arith.constant 2.500000e-01 : f32
    %72 = vector.broadcast %cst_55 : f32 to vector<8x16xf32>
    %73 = arith.mulf %57, %72 : vector<8x16xf32>
    %74 = arith.truncf %73 : vector<8x16xf32> to vector<8x16xbf16>
    %75 = arith.truncf %64 : vector<8x16xf32> to vector<8x16xbf16>
    %cst_56 = arith.constant dense<0.000000e+00> : vector<8x8xf32>
    %76 = tpu.matmul %74, %75, %cst_56 {dimension_numbers = #tpu.dot_dimension_numbers<[1], [1], [0], [0], [0, 0, 1, 0], [], []>} : vector<8x16xbf16>, vector<8x16xbf16>, vector<8x8xf32> -> vector<8x8xf32>
    %cst_57 = arith.constant dense<0xFF800000> : vector<8xf32>
    %77 = vector.multi_reduction <maximumf>, %76, %cst_57 [1] : vector<8x8xf32> to vector<8xf32>
    %78 = vector.shape_cast %77 : vector<8xf32> to vector<8x1xf32>
    %79 = vector.broadcast %78 : vector<8x1xf32> to vector<8x8xf32>
    %80 = arith.subf %76, %79 : vector<8x8xf32>
    %81 = math.exp %80 : vector<8x8xf32>
    %cst_58 = arith.constant dense<0.000000e+00> : vector<8xf32>
    %82 = vector.multi_reduction <add>, %81, %cst_58 [1] : vector<8x8xf32> to vector<8xf32>
    %83 = vector.shape_cast %82 : vector<8xf32> to vector<8x1xf32>
    %84 = tpu.reciprocal %83 {approx = true} : vector<8x1xf32> -> vector<8x1xf32>
    %85 = vector.broadcast %84 : vector<8x1xf32> to vector<8x8xf32>
    %86 = arith.mulf %81, %85 : vector<8x8xf32>
    %87 = arith.truncf %86 : vector<8x8xf32> to vector<8x8xbf16>
    %88 = arith.truncf %71 : vector<8x16xf32> to vector<8x16xbf16>
    %cst_59 = arith.constant dense<0.000000e+00> : vector<8x16xf32>
    %89 = tpu.matmul %87, %88, %cst_59 {dimension_numbers = #tpu.dot_dimension_numbers<[1], [0], [0], [1], [0, 0, 1, 1], [], []>} : vector<8x8xbf16>, vector<8x16xbf16>, vector<8x16xf32> -> vector<8x16xf32>
    %90 = arith.truncf %89 : vector<8x16xf32> to vector<8x16xbf16>
    %c1_60 = arith.constant 1 : index
    %c0_61 = arith.constant 0 : index
    %c0_62 = arith.constant 0 : index
    %91 = vector.load %arg11[%c1_60, %c0_61, %c0_62] : memref<2x16x32xbf16, #tpu.memory_space<vmem>>, vector<1x16x32xbf16>
    %92 = vector.shape_cast %91 : vector<1x16x32xbf16> to vector<16x32xbf16>
    %cst_63 = arith.constant dense<0.000000e+00> : vector<8x32xf32>
    %93 = tpu.matmul %90, %92, %cst_63 {dimension_numbers = #tpu.dot_dimension_numbers<[1], [0], [0], [1], [0, 0, 1, 1], [], []>} : vector<8x16xbf16>, vector<16x32xbf16>, vector<8x32xf32> -> vector<8x32xf32>
    %94 = arith.addf %50, %93 : vector<8x32xf32>
    %c0_64 = arith.constant 0 : index
    %c0_65 = arith.constant 0 : index
    %95 = vector.load %arg12[%c0_64, %c0_65] : memref<1x32xf32, #tpu.memory_space<vmem>>, vector<1x32xf32>
    %96 = vector.broadcast %95 : vector<1x32xf32> to vector<8x32xf32>
    %97 = arith.addf %94, %96 : vector<8x32xf32>
    %98 = arith.addf %1, %97 : vector<8x32xf32>
    %c0_66 = arith.constant 0 : index
    %c0_67 = arith.constant 0 : index
    %99 = vector.load %arg13[%c0_66, %c0_67] : memref<1x32xf32, #tpu.memory_space<vmem>>, vector<1x32xf32>
    %c0_68 = arith.constant 0 : index
    %c0_69 = arith.constant 0 : index
    %100 = vector.load %arg14[%c0_68, %c0_69] : memref<1x32xf32, #tpu.memory_space<vmem>>, vector<1x32xf32>
    %cst_70 = arith.constant dense<0.000000e+00> : vector<8xf32>
    %101 = vector.multi_reduction <add>, %98, %cst_70 [1] : vector<8x32xf32> to vector<8xf32>
    %102 = vector.shape_cast %101 : vector<8xf32> to vector<8x1xf32>
    %cst_71 = arith.constant 3.200000e+01 : f32
    %103 = vector.broadcast %cst_71 : f32 to vector<8x1xf32>
    %104 = arith.divf %102, %103 : vector<8x1xf32>
    %105 = vector.broadcast %104 : vector<8x1xf32> to vector<8x32xf32>
    %106 = arith.subf %98, %105 : vector<8x32xf32>
    %107 = arith.mulf %106, %106 : vector<8x32xf32>
    %cst_72 = arith.constant dense<0.000000e+00> : vector<8xf32>
    %108 = vector.multi_reduction <add>, %107, %cst_72 [1] : vector<8x32xf32> to vector<8xf32>
    %109 = vector.shape_cast %108 : vector<8xf32> to vector<8x1xf32>
    %cst_73 = arith.constant 3.200000e+01 : f32
    %110 = vector.broadcast %cst_73 : f32 to vector<8x1xf32>
    %111 = arith.divf %109, %110 : vector<8x1xf32>
    %cst_74 = arith.constant 9.99999974E-6 : f32
    %112 = vector.broadcast %cst_74 : f32 to vector<8x1xf32>
    %113 = arith.addf %111, %112 : vector<8x1xf32>
    %114 = math.rsqrt %113 : vector<8x1xf32>
    %115 = vector.broadcast %114 : vector<8x1xf32> to vector<8x32xf32>
    %116 = arith.mulf %106, %115 : vector<8x32xf32>
    %117 = vector.broadcast %99 : vector<1x32xf32> to vector<8x32xf32>
    %118 = arith.mulf %116, %117 : vector<8x32xf32>
    %119 = vector.broadcast %100 : vector<1x32xf32> to vector<8x32xf32>
    %120 = arith.addf %118, %119 : vector<8x32xf32>
    %c0_75 = arith.constant 0 : index
    %c0_76 = arith.constant 0 : index
    %c0_77 = arith.constant 0 : index
    %121 = vector.load %arg4[%c0_75, %c0_76, %c0_77] : memref<1x1x32xf32, #tpu.memory_space<vmem>>, vector<1x1x32xf32>
    %122 = vector.shape_cast %121 : vector<1x1x32xf32> to vector<1x32xf32>
    %123 = arith.truncf %122 : vector<1x32xf32> to vector<1x32xbf16>
    %c0_78 = arith.constant 0 : index
    %c0_79 = arith.constant 0 : index
    %124 = vector.load %arg15[%c0_78, %c0_79] : memref<32x32xbf16, #tpu.memory_space<vmem>>, vector<32x32xbf16>
    %cst_80 = arith.constant dense<0.000000e+00> : vector<1x32xf32>
    %125 = tpu.matmul %123, %124, %cst_80 {dimension_numbers = #tpu.dot_dimension_numbers<[1], [0], [0], [1], [0, 0, 1, 1], [], []>} : vector<1x32xbf16>, vector<32x32xbf16>, vector<1x32xf32> -> vector<1x32xf32>
    %c0_81 = arith.constant 0 : index
    %c0_82 = arith.constant 0 : index
    %126 = vector.load %arg16[%c0_81, %c0_82] : memref<1x32xf32, #tpu.memory_space<vmem>>, vector<1x32xf32>
    %127 = arith.addf %125, %126 : vector<1x32xf32>
    %128 = vector.broadcast %127 : vector<1x32xf32> to vector<8x32xf32>
    %129 = arith.addf %120, %128 : vector<8x32xf32>
    %c0_83 = arith.constant 0 : index
    %c0_84 = arith.constant 0 : index
    %130 = vector.load %arg17[%c0_83, %c0_84] : memref<1x32xf32, #tpu.memory_space<vmem>>, vector<1x32xf32>
    %c0_85 = arith.constant 0 : index
    %c0_86 = arith.constant 0 : index
    %131 = vector.load %arg18[%c0_85, %c0_86] : memref<1x32xf32, #tpu.memory_space<vmem>>, vector<1x32xf32>
    %cst_87 = arith.constant dense<0.000000e+00> : vector<8xf32>
    %132 = vector.multi_reduction <add>, %129, %cst_87 [1] : vector<8x32xf32> to vector<8xf32>
    %133 = vector.shape_cast %132 : vector<8xf32> to vector<8x1xf32>
    %cst_88 = arith.constant 3.200000e+01 : f32
    %134 = vector.broadcast %cst_88 : f32 to vector<8x1xf32>
    %135 = arith.divf %133, %134 : vector<8x1xf32>
    %136 = vector.broadcast %135 : vector<8x1xf32> to vector<8x32xf32>
    %137 = arith.subf %129, %136 : vector<8x32xf32>
    %138 = arith.mulf %137, %137 : vector<8x32xf32>
    %cst_89 = arith.constant dense<0.000000e+00> : vector<8xf32>
    %139 = vector.multi_reduction <add>, %138, %cst_89 [1] : vector<8x32xf32> to vector<8xf32>
    %140 = vector.shape_cast %139 : vector<8xf32> to vector<8x1xf32>
    %cst_90 = arith.constant 3.200000e+01 : f32
    %141 = vector.broadcast %cst_90 : f32 to vector<8x1xf32>
    %142 = arith.divf %140, %141 : vector<8x1xf32>
    %cst_91 = arith.constant 9.99999974E-6 : f32
    %143 = vector.broadcast %cst_91 : f32 to vector<8x1xf32>
    %144 = arith.addf %142, %143 : vector<8x1xf32>
    %145 = math.rsqrt %144 : vector<8x1xf32>
    %146 = vector.broadcast %145 : vector<8x1xf32> to vector<8x32xf32>
    %147 = arith.mulf %137, %146 : vector<8x32xf32>
    %148 = vector.broadcast %130 : vector<1x32xf32> to vector<8x32xf32>
    %149 = arith.mulf %147, %148 : vector<8x32xf32>
    %150 = vector.broadcast %131 : vector<1x32xf32> to vector<8x32xf32>
    %151 = arith.addf %149, %150 : vector<8x32xf32>
    %152 = arith.truncf %151 : vector<8x32xf32> to vector<8x32xbf16>
    %c0_92 = arith.constant 0 : index
    %c0_93 = arith.constant 0 : index
    %153 = vector.load %arg19[%c0_92, %c0_93] : memref<32x2048xbf16, #tpu.memory_space<vmem>>, vector<32x2048xbf16>
    %cst_94 = arith.constant dense<0.000000e+00> : vector<8x2048xf32>
    %154 = tpu.matmul %152, %153, %cst_94 {dimension_numbers = #tpu.dot_dimension_numbers<[1], [0], [0], [1], [0, 0, 1, 1], [], []>} : vector<8x32xbf16>, vector<32x2048xbf16>, vector<8x2048xf32> -> vector<8x2048xf32>
    %c0_95 = arith.constant 0 : index
    %c0_96 = arith.constant 0 : index
    %155 = vector.load %arg20[%c0_95, %c0_96] : memref<1x2048xf32, #tpu.memory_space<vmem>>, vector<1x2048xf32>
    %156 = vector.broadcast %155 : vector<1x2048xf32> to vector<8x2048xf32>
    %157 = arith.addf %154, %156 : vector<8x2048xf32>
    %cst_97 = arith.constant 0.000000e+00 : f32
    %158 = vector.broadcast %cst_97 : f32 to vector<8x2048xf32>
    %159 = arith.maximumf %157, %158 : vector<8x2048xf32>
    %160 = arith.truncf %159 : vector<8x2048xf32> to vector<8x2048xbf16>
    %c0_98 = arith.constant 0 : index
    %c0_99 = arith.constant 0 : index
    %161 = vector.load %arg21[%c0_98, %c0_99] : memref<2048x32xbf16, #tpu.memory_space<vmem>>, vector<2048x32xbf16>
    %cst_100 = arith.constant dense<0.000000e+00> : vector<8x32xf32>
    %162 = tpu.matmul %160, %161, %cst_100 {dimension_numbers = #tpu.dot_dimension_numbers<[1], [0], [0], [1], [0, 0, 1, 1], [], []>} : vector<8x2048xbf16>, vector<2048x32xbf16>, vector<8x32xf32> -> vector<8x32xf32>
    %c0_101 = arith.constant 0 : index
    %c0_102 = arith.constant 0 : index
    %163 = vector.load %arg22[%c0_101, %c0_102] : memref<1x32xf32, #tpu.memory_space<vmem>>, vector<1x32xf32>
    %164 = vector.broadcast %163 : vector<1x32xf32> to vector<8x32xf32>
    %165 = arith.addf %162, %164 : vector<8x32xf32>
    %166 = arith.addf %151, %165 : vector<8x32xf32>
    %c0_103 = arith.constant 0 : index
    %c0_104 = arith.constant 0 : index
    %167 = vector.load %arg23[%c0_103, %c0_104] : memref<1x32xf32, #tpu.memory_space<vmem>>, vector<1x32xf32>
    %c0_105 = arith.constant 0 : index
    %c0_106 = arith.constant 0 : index
    %168 = vector.load %arg24[%c0_105, %c0_106] : memref<1x32xf32, #tpu.memory_space<vmem>>, vector<1x32xf32>
    %cst_107 = arith.constant dense<0.000000e+00> : vector<8xf32>
    %169 = vector.multi_reduction <add>, %166, %cst_107 [1] : vector<8x32xf32> to vector<8xf32>
    %170 = vector.shape_cast %169 : vector<8xf32> to vector<8x1xf32>
    %cst_108 = arith.constant 3.200000e+01 : f32
    %171 = vector.broadcast %cst_108 : f32 to vector<8x1xf32>
    %172 = arith.divf %170, %171 : vector<8x1xf32>
    %173 = vector.broadcast %172 : vector<8x1xf32> to vector<8x32xf32>
    %174 = arith.subf %166, %173 : vector<8x32xf32>
    %175 = arith.mulf %174, %174 : vector<8x32xf32>
    %cst_109 = arith.constant dense<0.000000e+00> : vector<8xf32>
    %176 = vector.multi_reduction <add>, %175, %cst_109 [1] : vector<8x32xf32> to vector<8xf32>
    %177 = vector.shape_cast %176 : vector<8xf32> to vector<8x1xf32>
    %cst_110 = arith.constant 3.200000e+01 : f32
    %178 = vector.broadcast %cst_110 : f32 to vector<8x1xf32>
    %179 = arith.divf %177, %178 : vector<8x1xf32>
    %cst_111 = arith.constant 9.99999974E-6 : f32
    %180 = vector.broadcast %cst_111 : f32 to vector<8x1xf32>
    %181 = arith.addf %179, %180 : vector<8x1xf32>
    %182 = math.rsqrt %181 : vector<8x1xf32>
    %183 = vector.broadcast %182 : vector<8x1xf32> to vector<8x32xf32>
    %184 = arith.mulf %174, %183 : vector<8x32xf32>
    %185 = vector.broadcast %167 : vector<1x32xf32> to vector<8x32xf32>
    %186 = arith.mulf %184, %185 : vector<8x32xf32>
    %187 = vector.broadcast %168 : vector<1x32xf32> to vector<8x32xf32>
    %188 = arith.addf %186, %187 : vector<8x32xf32>
    %189 = arith.truncf %188 : vector<8x32xf32> to vector<8x32xbf16>
    %c0_112 = arith.constant 0 : index
    %c0_113 = arith.constant 0 : index
    %190 = vector.load %arg25[%c0_112, %c0_113] : memref<32x32xbf16, #tpu.memory_space<vmem>>, vector<32x32xbf16>
    %cst_114 = arith.constant dense<0.000000e+00> : vector<8x32xf32>
    %191 = tpu.matmul %189, %190, %cst_114 {dimension_numbers = #tpu.dot_dimension_numbers<[1], [0], [0], [1], [0, 0, 1, 1], [], []>} : vector<8x32xbf16>, vector<32x32xbf16>, vector<8x32xf32> -> vector<8x32xf32>
    %c0_115 = arith.constant 0 : index
    %c0_116 = arith.constant 0 : index
    %192 = vector.load %arg26[%c0_115, %c0_116] : memref<1x32xf32, #tpu.memory_space<vmem>>, vector<1x32xf32>
    %193 = vector.broadcast %192 : vector<1x32xf32> to vector<8x32xf32>
    %194 = arith.addf %191, %193 : vector<8x32xf32>
    %c0_117 = arith.constant 0 : index
    %c0_118 = arith.constant 0 : index
    %c0_119 = arith.constant 0 : index
    %195 = vector.load %arg27[%c0_117, %c0_118, %c0_119] : memref<1x8x32xf32, #tpu.memory_space<vmem>>, vector<1x8x32xf32>
    %196 = vector.shape_cast %195 : vector<1x8x32xf32> to vector<8x32xf32>
    %197 = vector.shape_cast %194 : vector<8x32xf32> to vector<1x8x32xf32>
    tpu.vector_store %arg27[%c0_117, %c0_118, %c0_119], %197 {strides = array<i32>} : memref<1x8x32xf32, #tpu.memory_space<vmem>>, vector<1x8x32xf32>,
    return
  }
  func.func @transform_0(%arg0: i32, %arg1: i32) -> (i32, i32, i32) {
    %c0_i32 = arith.constant 0 : i32
    %c0_i32_0 = arith.constant 0 : i32
    return %arg0, %arg1, %c0_i32 : i32, i32, i32
  }
  func.func @transform_1(%arg0: i32, %arg1: i32) -> (i32, i32, i32) {
    %c0_i32 = arith.constant 0 : i32
    %c0_i32_0 = arith.constant 0 : i32
    %c0_i32_1 = arith.constant 0 : i32
    return %arg0, %c0_i32, %c0_i32_0 : i32, i32, i32
  }
  func.func @transform_2(%arg0: i32, %arg1: i32) -> (i32, i32, i32) {
    %c0_i32 = arith.constant 0 : i32
    %c0_i32_0 = arith.constant 0 : i32
    %c0_i32_1 = arith.constant 0 : i32
    return %arg0, %c0_i32, %c0_i32_0 : i32, i32, i32
  }
  func.func @transform_3(%arg0: i32, %arg1: i32) -> (i32, i32, i32) {
    %c0_i32 = arith.constant 0 : i32
    %c0_i32_0 = arith.constant 0 : i32
    %c0_i32_1 = arith.constant 0 : i32
    %c0_i32_2 = arith.constant 0 : i32
    return %c0_i32, %c0_i32_0, %c0_i32_1 : i32, i32, i32
  }
  func.func @transform_4(%arg0: i32, %arg1: i32) -> (i32, i32, i32) {
    %c0_i32 = arith.constant 0 : i32
    %c0_i32_0 = arith.constant 0 : i32
    %c0_i32_1 = arith.constant 0 : i32
    %c0_i32_2 = arith.constant 0 : i32
    return %c0_i32, %c0_i32_0, %c0_i32_1 : i32, i32, i32
  }
  func.func @transform_5(%arg0: i32, %arg1: i32) -> (i32, i32, i32) {
    %c0_i32 = arith.constant 0 : i32
    %c0_i32_0 = arith.constant 0 : i32
    %c0_i32_1 = arith.constant 0 : i32
    %c0_i32_2 = arith.constant 0 : i32
    return %c0_i32, %c0_i32_0, %c0_i32_1 : i32, i32, i32
  }
  func.func @transform_6(%arg0: i32, %arg1: i32) -> (i32, i32, i32) {
    %c0_i32 = arith.constant 0 : i32
    %c0_i32_0 = arith.constant 0 : i32
    %c0_i32_1 = arith.constant 0 : i32
    %c0_i32_2 = arith.constant 0 : i32
    return %c0_i32, %c0_i32_0, %c0_i32_1 : i32, i32, i32
  }
  func.func @transform_7(%arg0: i32, %arg1: i32) -> (i32, i32, i32) {
    %c0_i32 = arith.constant 0 : i32
    %c0_i32_0 = arith.constant 0 : i32
    %c0_i32_1 = arith.constant 0 : i32
    %c0_i32_2 = arith.constant 0 : i32
    return %c0_i32, %c0_i32_0, %c0_i32_1 : i32, i32, i32
  }
  func.func @transform_8(%arg0: i32, %arg1: i32) -> (i32, i32, i32) {
    %c0_i32 = arith.constant 0 : i32
    %c0_i32_0 = arith.constant 0 : i32
    %c0_i32_1 = arith.constant 0 : i32
    %c0_i32_2 = arith.constant 0 : i32
    return %c0_i32, %c0_i32_0, %c0_i32_1 : i32, i32, i32
  }
  func.func @transform_9(%arg0: i32, %arg1: i32) -> (i32, i32, i32) {
    %c0_i32 = arith.constant 0 : i32
    %c0_i32_0 = arith.constant 0 : i32
    %c0_i32_1 = arith.constant 0 : i32
    %c0_i32_2 = arith.constant 0 : i32
    return %c0_i32, %c0_i32_0, %c0_i32_1 : i32, i32, i32
  }
  func.func @transform_10(%arg0: i32, %arg1: i32) -> (i32, i32) {
    %c0_i32 = arith.constant 0 : i32
    %c0_i32_0 = arith.constant 0 : i32
    %c0_i32_1 = arith.constant 0 : i32
    return %c0_i32, %c0_i32_0 : i32, i32
  }
  func.func @transform_11(%arg0: i32, %arg1: i32) -> (i32, i32) {
    %c0_i32 = arith.constant 0 : i32
    %c0_i32_0 = arith.constant 0 : i32
    %c0_i32_1 = arith.constant 0 : i32
    return %c0_i32, %c0_i32_0 : i32, i32
  }
  func.func @transform_12(%arg0: i32, %arg1: i32) -> (i32, i32) {
    %c0_i32 = arith.constant 0 : i32
    %c0_i32_0 = arith.constant 0 : i32
    %c0_i32_1 = arith.constant 0 : i32
    return %c0_i32, %c0_i32_0 : i32, i32
  }
  func.func @transform_13(%arg0: i32, %arg1: i32) -> (i32, i32) {
    %c0_i32 = arith.constant 0 : i32
    %c0_i32_0 = arith.constant 0 : i32
    %c0_i32_1 = arith.constant 0 : i32
    return %c0_i32, %c0_i32_0 : i32, i32
  }
  func.func @transform_14(%arg0: i32, %arg1: i32) -> (i32, i32) {
    %c0_i32 = arith.constant 0 : i32
    %c0_i32_0 = arith.constant 0 : i32
    %c0_i32_1 = arith.constant 0 : i32
    return %c0_i32, %c0_i32_0 : i32, i32
  }
  func.func @transform_15(%arg0: i32, %arg1: i32) -> (i32, i32) {
    %c0_i32 = arith.constant 0 : i32
    %c0_i32_0 = arith.constant 0 : i32
    %c0_i32_1 = arith.constant 0 : i32
    return %c0_i32, %c0_i32_0 : i32, i32
  }
  func.func @transform_16(%arg0: i32, %arg1: i32) -> (i32, i32) {
    %c0_i32 = arith.constant 0 : i32
    %c0_i32_0 = arith.constant 0 : i32
    %c0_i32_1 = arith.constant 0 : i32
    return %c0_i32, %c0_i32_0 : i32, i32
  }
  func.func @transform_17(%arg0: i32, %arg1: i32) -> (i32, i32) {
    %c0_i32 = arith.constant 0 : i32
    %c0_i32_0 = arith.constant 0 : i32
    %c0_i32_1 = arith.constant 0 : i32
    return %c0_i32, %c0_i32_0 : i32, i32
  }
  func.func @transform_18(%arg0: i32, %arg1: i32) -> (i32, i32) {
    %c0_i32 = arith.constant 0 : i32
    %c0_i32_0 = arith.constant 0 : i32
    %c0_i32_1 = arith.constant 0 : i32
    return %c0_i32, %c0_i32_0 : i32, i32
  }
  func.func @transform_19(%arg0: i32, %arg1: i32) -> (i32, i32) {
    %c0_i32 = arith.constant 0 : i32
    %c0_i32_0 = arith.constant 0 : i32
    %c0_i32_1 = arith.constant 0 : i32
    return %c0_i32, %c0_i32_0 : i32, i32
  }
  func.func @transform_20(%arg0: i32, %arg1: i32) -> (i32, i32) {
    %c0_i32 = arith.constant 0 : i32
    %c0_i32_0 = arith.constant 0 : i32
    %c0_i32_1 = arith.constant 0 : i32
    return %c0_i32, %c0_i32_0 : i32, i32
  }
  func.func @transform_21(%arg0: i32, %arg1: i32) -> (i32, i32) {
    %c0_i32 = arith.constant 0 : i32
    %c0_i32_0 = arith.constant 0 : i32
    %c0_i32_1 = arith.constant 0 : i32
    return %c0_i32, %c0_i32_0 : i32, i32
  }
  func.func @transform_22(%arg0: i32, %arg1: i32) -> (i32, i32) {
    %c0_i32 = arith.constant 0 : i32
    %c0_i32_0 = arith.constant 0 : i32
    %c0_i32_1 = arith.constant 0 : i32
    return %c0_i32, %c0_i32_0 : i32, i32
  }
  func.func @transform_23(%arg0: i32, %arg1: i32) -> (i32, i32) {
    %c0_i32 = arith.constant 0 : i32
    %c0_i32_0 = arith.constant 0 : i32
    %c0_i32_1 = arith.constant 0 : i32
    return %c0_i32, %c0_i32_0 : i32, i32
  }
  func.func @transform_24(%arg0: i32, %arg1: i32) -> (i32, i32) {
    %c0_i32 = arith.constant 0 : i32
    %c0_i32_0 = arith.constant 0 : i32
    %c0_i32_1 = arith.constant 0 : i32
    return %c0_i32, %c0_i32_0 : i32, i32
  }
  func.func @transform_25(%arg0: i32, %arg1: i32) -> (i32, i32, i32) {
    %c0_i32 = arith.constant 0 : i32
    %c0_i32_0 = arith.constant 0 : i32
    return %arg0, %arg1, %c0_i32 : i32, i32, i32
  }
}

</mosaic_0001>

<bundles_post_ra>
// kernel: speech_model_forward.3
= control target key start
LH: loop header
LB: loop body
LE: loop exit
PB: predicated region body
PF: predicated region fallthrough
CT: control target
= control target key end

     0   :  { %s997_s18 = smov 0   ;;  %s999_s19 = smov 0   ;;  %s1207_s0 = inlined_call_operand.vmem [shape: f32[2,256,36], index: 0, kind: input, shape index: {}]   ;;  %s1208_s1 = inlined_call_operand.vmem [shape: bf16[36,16], index: 1, kind: input, shape index: {}]   ;;  %s1209_s2 = inlined_call_operand.vmem [shape: f32[1,16], index: 2, kind: input, shape index: {}]   ;;  %s1210_s3 = inlined_call_operand.vmem [shape: bf16[16,32], index: 3, kind: input, shape index: {}]   ;;  %s1211_s4 = inlined_call_operand.vmem [shape: f32[1,32], index: 4, kind: input, shape index: {}]   ;;  %s1212_s5 = inlined_call_operand.vmem [shape: f32[2,1,32], index: 5, kind: output, shape index: {}]  }
   0x1   :  { %s1001_s20 = smov 0  }
   0x2 LB: > { %s27_s21 = sadd.s32 1, %s960_s19  ;;  %p869_p0 = scmp.ge.s32.totalorder %s964_s20, 1  ;;  %s964_s20 = sphi %s1001_s20, %s15_s20   ;;  %s960_s19 = sphi %s999_s19, %s1214_s19   ;;  %s956_s18 = sphi %s997_s18, %s1213_s18  }
   0x3   : > { %p29_p1 = scmp.ge.s32.totalorder %s27_s21, 2  ;;  %p206_p2 = scmp.lt.s32.totalorder %s964_s20, 3 }
   0x5   : > { %s1216_s21 = smov (%p29_p1, %s27_s21), 0  ;;  %p207_p3 = pnand %p869_p0, %p206_p2 }
   0x6   : > { %p237_p4 = scmp.lt.s32.totalorder (!%p207_p3), %s956_s18, 1 }
   0x7   : > { %210 = sbr.rel (%p207_p3) target bundleno = 426 (0x1aa), region = 40 }
   0xc   : > { %v308_v0 = vld [vmem:[%s1208_s1 + $0x10] sm:$0x3]  ;;  %vm377_vm0 = vcmask 1041408   ;;  %s1218_s18 = smov (!%p237_p4, %s956_s18), 1  ;;  %v905_v4 = vld [vmem:[%s1208_s1 + $0x8] sm:$0xff]  ;;  %v904_v5 = vld [vmem:[%s1208_s1] sm:$0xff] }
   0xd   : > { %v322_v1 = vunpack.c.l.b16 %v308_v0  ;;  %s903_s24 = sshll.u32 %s1218_s18, 8  ;;  %vm328_vm1 = vcmask 293888   ;;  %vm698_vm2 = vcmask 130048   ;;  %vm254_vm3 = vcmask 122880   ;;  %s248_s15 = scalar_lea.vmem %s1212_s5, %s1218_s18 }
   0xe   : > { %s1027_s29 = scalar_lea.vmem %s1207_s0, %s903_s24  ;;  %vm802_vm4 = vcmask 253952  }
   0xf   : > { %v325_v2 = vpack.c.b16 %v322_v1, %v322_v1  ;;  %v256_v6 = vld [vmem:[%s1027_s29] sm:$0xff]  ;;  %v257_v7 = vld [vmem:[%s1027_s29 + $0x8] sm:$0xff]  ;;  %v278_v10 = vld [vmem:[%s1027_s29 + $0xb0] sm:$0xff] }
  0x10   : > { %v268_v8 = vld [vmem:[%s1027_s29 + $0x60] sm:$0xff]  ;;  %v269_v9 = vld [vmem:[%s1027_s29 + $0x68] sm:$0xff]  ;;  %v279_v11 = vld [vmem:[%s1027_s29 + $0xb8] sm:$0xff]  ;;  %v288_v12 = vpack.c.bf16 %v257_v7, %v256_v6 }
  0x11   : > { %v379_v3 = vsel %vm377_vm0, %v325_v2, 0  ;;  %v294_v13 = vpack.c.bf16 %v269_v9, %v268_v8  ;;  %v299_v14 = vpack.c.bf16 %v279_v11, %v278_v10  ;;  %v264_v15 = vld [vmem:[%s1027_s29 + $0x40] sm:$0xff]  ;;  %v265_v16 = vld [vmem:[%s1027_s29 + $0x48] sm:$0xff]  ;;  %v258_v18 = vld [vmem:[%s1027_s29 + $0x10] sm:$0xff] }
  0x12   : > { %386 = vmatpush.bf16.msra.mxu0 %v379_v3  ;;  %908 = vmatpush.bf16.msra.mxu2 %v379_v3  ;;  %v292_v17 = vpack.c.bf16 %v265_v16, %v264_v15  ;;  %v259_v19 = vld [vmem:[%s1027_s29 + $0x18] sm:$0xff]  ;;  %v270_v20 = vld [vmem:[%s1027_s29 + $0x70] sm:$0xff]  ;;  %v280_v22 = vld [vmem:[%s1027_s29 + $0xc0] sm:$0xff] }
  0x13   : > { %909 = vmatpush.bf16.msra.mxu3 %v379_v3  ;;  %907 = vmatpush.bf16.msra.mxu1 %v379_v3  ;;  %v271_v21 = vld [vmem:[%s1027_s29 + $0x78] sm:$0xff]  ;;  %v281_v23 = vld [vmem:[%s1027_s29 + $0xc8] sm:$0xff]  ;;  %v289_v24 = vpack.c.bf16 %v259_v19, %v258_v18  ;;  %v266_v27 = vld [vmem:[%s1027_s29 + $0x50] sm:$0xff] }
  0x14   : > { %v295_v25 = vpack.c.bf16 %v271_v21, %v270_v20  ;;  %v300_v26 = vpack.c.bf16 %v281_v23, %v280_v22  ;;  %v267_v28 = vld [vmem:[%s1027_s29 + $0x58] sm:$0xff]  ;;  %v260_v30 = vld [vmem:[%s1027_s29 + $0x20] sm:$0xff]  ;;  %v261_v31 = vld [vmem:[%s1027_s29 + $0x28] sm:$0xff] }
  0x15   : > { %v293_v29 = vpack.c.bf16 %v267_v28, %v266_v27  ;;  %v272_v32 = vld [vmem:[%s1027_s29 + $0x80] sm:$0xff]  ;;  %v273_v33 = vld [vmem:[%s1027_s29 + $0x88] sm:$0xff]  ;;  %v282_v34 = vld [vmem:[%s1027_s29 + $0xd0] sm:$0xff]  ;;  %v290_v36 = vpack.c.bf16 %v261_v31, %v260_v30 }
  0x16   : > { %387 = vmatpush.bf16.msra.mxu0 %v905_v4  ;;  %911 = vmatpush.bf16.msra.mxu2 %v905_v4  ;;  %v283_v35 = vld [vmem:[%s1027_s29 + $0xd8] sm:$0xff]  ;;  %v296_v37 = vpack.c.bf16 %v273_v33, %v272_v32  ;;  %v262_v39 = vld [vmem:[%s1027_s29 + $0x30] sm:$0xff]  ;;  %v284_v43 = vld [vmem:[%s1027_s29 + $0xe0] sm:$0xff] }
  0x17   : > { %912 = vmatpush.bf16.msra.mxu3 %v905_v4  ;;  %910 = vmatpush.bf16.msra.mxu1 %v905_v4  ;;  %v301_v38 = vpack.c.bf16 %v283_v35, %v282_v34  ;;  %v263_v40 = vld [vmem:[%s1027_s29 + $0x38] sm:$0xff]  ;;  %v274_v41 = vld [vmem:[%s1027_s29 + $0x90] sm:$0xff]  ;;  %v285_v44 = vld [vmem:[%s1027_s29 + $0xe8] sm:$0xff] }
  0x18   : > { %v275_v42 = vld [vmem:[%s1027_s29 + $0x98] sm:$0xff]  ;;  %v291_v45 = vpack.c.bf16 %v263_v40, %v262_v39  ;;  %v302_v47 = vpack.c.bf16 %v285_v44, %v284_v43  ;;  %v276_v48 = vld [vmem:[%s1027_s29 + $0xa0] sm:$0xff]  ;;  %v277_v49 = vld [vmem:[%s1027_s29 + $0xa8] sm:$0xff] }
  0x19   : > { %v297_v46 = vpack.c.bf16 %v275_v42, %v274_v41  ;;  %v286_v50 = vld [vmem:[%s1027_s29 + $0xf0] sm:$0xff]  ;;  %v287_v51 = vld [vmem:[%s1027_s29 + $0xf8] sm:$0xff]  ;;  %v298_v52 = vpack.c.bf16 %v277_v49, %v276_v48  ;;  %v1097_v3 = vld [vmem:[%s1209_s2] ss:$0 sm:$0xff] }
  0x1a   : > { %388 = vmatpush.bf16.msra.mxu0 %v904_v5  ;;  %914 = vmatpush.bf16.msra.mxu2 %v904_v5  ;;  %v303_v53 = vpack.c.bf16 %v287_v51, %v286_v50 }
  0x1b   : > { %915 = vmatpush.bf16.msra.mxu3 %v904_v5  ;;  %913 = vmatpush.bf16.msra.mxu1 %v904_v5 }
  0x1d   : > { %880 = vmatmul.msk.bf16.vlgmr.msra.gmra.mxu0 %vm328_vm1, %v288_v12  ;;  %886 = vmatmul.msk.bf16.vlgmr.msra.gmra.mxu2 %vm328_vm1, %v294_v13 }
  0x1e   : > { %891 = vmatmul.msk.bf16.vlgmr.msra.gmra.mxu3 %vm328_vm1, %v299_v14  ;;  %884 = vmatmul.msk.bf16.vlgmr.msra.gmra.mxu1 %vm328_vm1, %v292_v17 }
  0x2d   : > { %881 = vmatmul.msk.bf16.gmra.mxu0 %vm328_vm1, %v289_v24  ;;  %887 = vmatmul.msk.bf16.gmra.mxu2 %vm328_vm1, %v295_v25 }
  0x2e   : > { %892 = vmatmul.msk.bf16.gmra.mxu3 %vm328_vm1, %v300_v26  ;;  %885 = vmatmul.msk.bf16.gmra.mxu1 %vm328_vm1, %v293_v29 }
  0x3d   : > { %882 = vmatmul.msk.bf16.gmra.mxu0 %vm328_vm1, %v290_v36  ;;  %888 = vmatmul.msk.bf16.gmra.mxu2 %vm328_vm1, %v296_v37 }
  0x3e   : > { %893 = vmatmul.msk.bf16.gmra.mxu3 %vm328_vm1, %v301_v38 }
  0x4d   : > { %883 = vmatmul.msk.bf16.gmra.mxu0 %vm328_vm1, %v291_v45  ;;  %889 = vmatmul.msk.bf16.gmra.mxu2 %vm328_vm1, %v297_v46 }
  0x4e   : > { %894 = vmatmul.msk.bf16.gmra.mxu3 %vm328_vm1, %v302_v47 }
  0x5d   : > { %890 = vmatmul.msk.bf16.gmra.mxu2 %vm328_vm1, %v298_v52 }
  0x5e   : > { %895 = vmatmul.msk.bf16.gmra.mxu3 %vm328_vm1, %v303_v53 }
  0x9a   : > { %v390_v54 = vpop.f32.mrf.mxu0 }
  0x9b   : > { %v410_v63 = vpop.f32.mrf.mxu1  ;;  %v391_v9 = vadd.f32 %v1097_v3, %v390_v54 }
  0x9c   : > { %v411_v35 = vadd.f32 %v1097_v3, %v410_v63 }
  0x9d   : > { %v470_v13 = vmax.f32 %v391_v9, 0.0 }
  0x9e   : > { %v478_v45 = vmax.f32 %v411_v35, 0.0 }
  0x9f   : > { %v699_v23 = vsel %vm698_vm2, %v470_v13, 0.0 }
  0xa0   : > { %v1080_v55 = vpop.f32.mrf.mxu2 }
  0xa1   : > { %v1082_v57 = vpop.f32.mrf.mxu3  ;;  %v421_v54 = vadd.f32 %v1097_v3, %v1080_v55 }
  0xa2   : > { %v392_v56 = vpop.f32.mrf.mxu0 }
  0xa3   : > { %v412_v4 = vpop.f32.mrf.mxu1  ;;  %v393_v7 = vadd.f32 %v1097_v3, %v392_v56  ;;  %v714_v56 = vsel %vm698_vm2, %v478_v45, 0.0 }
  0xa4   : > { %v413_v39 = vadd.f32 %v1097_v3, %v412_v4 }
  0xa5   : > { %v471_v11 = vmax.f32 %v393_v7, 0.0 }
  0xa6   : > { %v479_v49 = vmax.f32 %v413_v39, 0.0 }
  0xa7   : > { %v700_v17 = vsel %vm698_vm2, %v471_v11, 0.0 }
  0xa8   : > { %v1084_v58 = vpop.f32.mrf.mxu2  ;;  %v701_v27 = vadd.f32 %v700_v17, %v699_v23 }
  0xa9   : > { %v1086_v60 = vpop.f32.mrf.mxu3  ;;  %v423_v63 = vadd.f32 %v1097_v3, %v1084_v58 }
  0xaa   : > { %v395_v59 = vpop.f32.mrf.mxu0 }
  0xab   : > { %v396_v10 = vadd.f32 %v1097_v3, %v395_v59  ;;  %v415_v20 = vpop.f32.mrf.mxu1  ;;  %v483_v55 = vmax.f32 %v423_v63, 0.0 }
  0xac   : > { %v416_v46 = vadd.f32 %v1097_v3, %v415_v20 }
  0xad   : > { %v472_v14 = vmax.f32 %v396_v10, 0.0  ;;  %v724_v20 = vsel %vm698_vm2, %v483_v55, 0.0 }
  0xae   : > { %v480_v59 = vmax.f32 %v416_v46, 0.0  ;;  %v448_v46 = vadd.f32 %v1097_v3, %v1086_v60 }
  0xaf   : > { %v702_v24 = vsel %vm698_vm2, %v472_v14, 0.0 }
  0xb0   : > { %v1088_v61 = vpop.f32.mrf.mxu2  ;;  %v703_v30 = vadd.f32 %v702_v24, %v701_v27  ;;  %v718_v10 = vsel %vm698_vm2, %v480_v59, 0.0 }
  0xb1   : > { %v1090_v0 = vpop.f32.mrf.mxu3  ;;  %v426_v9 = vadd.f32 %v1097_v3, %v1088_v61 }
  0xb2   : > { %v397_v62 = vpop.f32.mrf.mxu0 }
  0xb3   : > { %v398_v12 = vadd.f32 %v1097_v3, %v397_v62  ;;  %v417_v43 = vpop.f32.mrf.mxu1 }
  0xb4   : > { %v418_v51 = vadd.f32 %v1097_v3, %v417_v43 }
  0xb5   : > { %v473_v18 = vmax.f32 %v398_v12, 0.0 }
  0xb6   : > { %v481_v4 = vmax.f32 %v418_v51, 0.0  ;;  %v451_v51 = vadd.f32 %v1097_v3, %v1090_v0 }
  0xb7   : > { %v704_v28 = vsel %vm698_vm2, %v473_v18, 0.0  ;;  %v484_v18 = vmax.f32 %v426_v9, 0.0 }
  0xb8   : > { %v1092_v1 = vpop.f32.mrf.mxu2  ;;  %v705_v33 = vadd.f32 %v704_v28, %v703_v30  ;;  %v720_v14 = vsel %vm698_vm2, %v481_v4, 0.0  ;;  %v494_v63 = vmax.f32 %v451_v51, 0.0 }
  0xb9   : > { %v1101_v6 = vpop.f32.mrf.mxu3  ;;  %v428_v13 = vadd.f32 %v1097_v3, %v1092_v1 }
  0xba   : > { %v400_v2 = vpop.f32.mrf.mxu0 }
  0xbb   : > { %v401_v15 = vadd.f32 %v1097_v3, %v400_v2  ;;  %v716_v2 = vsel %vm698_vm2, %v479_v49, 0.0 }
  0xbd   : > { %v474_v25 = vmax.f32 %v401_v15, 0.0 }
  0xbf   : > { %v706_v31 = vsel %vm698_vm2, %v474_v25, 0.0  ;;  %v726_v25 = vsel %vm698_vm2, %v484_v18, 0.0 }
  0xc0   : > { %v1099_v5 = vpop.f32.mrf.mxu2  ;;  %v707_v37 = vadd.f32 %v706_v31, %v705_v33 }
  0xc1   : > { %v1110_v22 = vpop.f32.mrf.mxu3 }
  0xc2   : > { %v402_v8 = vpop.f32.mrf.mxu0 }
  0xc3   : > { %v403_v19 = vadd.f32 %v1097_v3, %v402_v8  ;;  %v482_v8 = vmax.f32 %v421_v54, 0.0 }
  0xc5   : > { %v475_v29 = vmax.f32 %v403_v19, 0.0  ;;  %v722_v17 = vsel %vm698_vm2, %v482_v8, 0.0  ;;  %v431_v19 = vadd.f32 %v1097_v3, %v1099_v5  ;;  %v966_v5 = vmov 0.0  }
  0xc6   : > { %255 = vst.msk [vmem:[#allocation2] sm:$0x1] %vm254_vm3, %v966_v5 }
  0xc7   : > { %v708_v36 = vsel %vm698_vm2, %v475_v29, 0.0  ;;  %v486_v1 = vmax.f32 %v431_v19, 0.0 }
  0xc8   : > { %v432_v16 = vpop.f32.mrf.mxu2  ;;  %v709_v42 = vadd.f32 %v708_v36, %v707_v37 }
  0xc9   : > { %v1122_v44 = vpop.f32.mrf.mxu3  ;;  %v433_v23 = vadd.f32 %v1097_v3, %v432_v16  ;;  %v730_v16 = vsel %vm698_vm2, %v486_v1, 0.0 }
  0xca   : > { %v405_v21 = vpop.f32.mrf.mxu0  ;;  %v458_v8 = vadd.f32 %v1097_v3, %v1122_v44 }
  0xcb   : > { %v406_v26 = vadd.f32 %v1097_v3, %v405_v21  ;;  %v485_v21 = vmax.f32 %v428_v13, 0.0  ;;  %v487_v29 = vmax.f32 %v433_v23, 0.0 }
  0xcd   : > { %v476_v32 = vmax.f32 %v406_v26, 0.0  ;;  %v728_v28 = vsel %vm698_vm2, %v485_v21, 0.0 }
  0xcf   : > { %v710_v40 = vsel %vm698_vm2, %v476_v32, 0.0 }
  0xd0   : > { %v435_v34 = vpop.f32.mrf.mxu2  ;;  %v711_v48 = vadd.f32 %v710_v40, %v709_v42 }
  0xd1   : > { %v1136_v12 = vpop.f32.mrf.mxu3  ;;  %v436_v26 = vadd.f32 %v1097_v3, %v435_v34  ;;  %v732_v34 = vsel %vm698_vm2, %v487_v29, 0.0 }
  0xd2   : > { %v407_v38 = vpop.f32.mrf.mxu0  ;;  %v461_v55 = vadd.f32 %v1097_v3, %v1136_v12 }
  0xd3   : > { %v408_v41 = vadd.f32 %v1097_v3, %v407_v38  ;;  %v488_v35 = vmax.f32 %v436_v26, 0.0 }
  0xd4   : > { %v498_v18 = vmax.f32 %v461_v55, 0.0 }
  0xd5   : > { %v477_v47 = vmax.f32 %v408_v41, 0.0  ;;  %v446_v41 = vadd.f32 %v1097_v3, %v1082_v57  ;;  %v734_v42 = vsel %vm698_vm2, %v488_v35, 0.0  ;;  %v493_v57 = vmax.f32 %v448_v46, 0.0 }
  0xd7   : > { %v712_v50 = vsel %vm698_vm2, %v477_v47, 0.0  ;;  %v744_v0 = vsel %vm698_vm2, %v493_v57, 0.0 }
  0xd8   : > { %v713_v52 = vadd.f32 %v712_v50, %v711_v48  ;;  %v437_v53 = vpop.f32.mrf.mxu2  ;;  %v492_v50 = vmax.f32 %v446_v41, 0.0  ;;  %v779_v41 = vld [vmem:[%s1211_s4] sm:$0x1] }
  0xd9   : > { %v438_v30 = vadd.f32 %v1097_v3, %v437_v53  ;;  %v462_v33 = vpop.f32.mrf.mxu3 }
  0xda   : > { %v715_v62 = vadd.f32 %v714_v56, %v713_v52  ;;  %v453_v56 = vadd.f32 %v1097_v3, %v1101_v6  ;;  %v742_v60 = vsel %vm698_vm2, %v492_v50, 0.0  ;;  %v906_v6 = vld [vmem:[%s1210_s3] sm:$0xff] }
  0xdb   : > { %v489_v38 = vmax.f32 %v438_v30, 0.0  ;;  %796 = vmatpush.bf16.msrb.mxu1 %v906_v6 }
  0xdc   : > { %v717_v7 = vadd.f32 %v716_v2, %v715_v62  ;;  %v456_v2 = vadd.f32 %v1097_v3, %v1110_v22 }
  0xdd   : > { %v736_v47 = vsel %vm698_vm2, %v489_v38, 0.0 }
  0xde   : > { %v719_v11 = vadd.f32 %v718_v10, %v717_v7  ;;  %v495_v7 = vmax.f32 %v453_v56, 0.0  ;;  %v746_v10 = vsel %vm698_vm2, %v494_v63, 0.0 }
  0xe0   : > { %v721_v58 = vadd.f32 %v720_v14, %v719_v11  ;;  %v440_v15 = vpop.f32.mrf.mxu2  ;;  %v496_v11 = vmax.f32 %v456_v2, 0.0  ;;  %v748_v22 = vsel %vm698_vm2, %v495_v7, 0.0  ;;  %v497_v14 = vmax.f32 %v458_v8, 0.0 }
  0xe1   : > { %v441_v36 = vadd.f32 %v1097_v3, %v440_v15  ;;  %v465_v54 = vpop.f32.mrf.mxu3 }
  0xe2   : > { %v723_v61 = vadd.f32 %v722_v17, %v721_v58  ;;  %v463_v58 = vadd.f32 %v1097_v3, %v462_v33  ;;  %v750_v17 = vsel %vm698_vm2, %v496_v11, 0.0  ;;  %v466_v19 = vadd.f32 %v1097_v3, %v465_v54 }
  0xe3   : > { %v490_v43 = vmax.f32 %v441_v36, 0.0  ;;  %v697_v36 = vld [vmem:[#allocation2] sm:$0x1] }
  0xe4   : > { %v725_v24 = vadd.f32 %v724_v20, %v723_v61  ;;  %v752_v20 = vsel %vm698_vm2, %v497_v14, 0.0  ;;  %v499_v21 = vmax.f32 %v463_v58, 0.0 }
  0xe5   : > { %v738_v52 = vsel %vm698_vm2, %v490_v43, 0.0 }
  0xe6   : > { %v727_v27 = vadd.f32 %v726_v25, %v725_v24  ;;  %v754_v24 = vsel %vm698_vm2, %v498_v18, 0.0  ;;  %v500_v25 = vmax.f32 %v466_v19, 0.0  ;;  %v756_v26 = vsel %vm698_vm2, %v499_v21, 0.0 }
  0xe8   : > { %v729_v31 = vadd.f32 %v728_v28, %v727_v27  ;;  %v442_v32 = vpop.f32.mrf.mxu2  ;;  %v758_v29 = vsel %vm698_vm2, %v500_v25, 0.0 }
  0xe9   : > { %v443_v39 = vadd.f32 %v1097_v3, %v442_v32  ;;  %v467_v44 = vpop.f32.mrf.mxu3 }
  0xea   : > { %v731_v37 = vadd.f32 %v730_v16, %v729_v31  ;;  %v468_v12 = vadd.f32 %v1097_v3, %v467_v44 }
  0xeb   : > { %v491_v48 = vmax.f32 %v443_v39, 0.0 }
  0xec   : > { %v733_v40 = vadd.f32 %v732_v34, %v731_v37  ;;  %v501_v27 = vmax.f32 %v468_v12, 0.0 }
  0xed   : > { %v740_v59 = vsel %vm698_vm2, %v491_v48, 0.0 }
  0xee   : > { %v735_v45 = vadd.f32 %v734_v42, %v733_v40  ;;  %v760_v5 = vsel %vm698_vm2, %v501_v27, 0.0 }
  0xf0   : > { %v737_v49 = vadd.f32 %v736_v47, %v735_v45 }
  0xf2   : > { %v739_v53 = vadd.f32 %v738_v52, %v737_v49 }
  0xf4   : > { %v741_v62 = vadd.f32 %v740_v59, %v739_v53 }
  0xf6   : > { %v743_v4 = vadd.f32 %v742_v60, %v741_v62 }
  0xf8   : > { %v745_v9 = vadd.f32 %v744_v0, %v743_v4 }
  0xfa   : > { %v747_v13 = vadd.f32 %v746_v10, %v745_v9 }
  0xfc   : > { %v749_v15 = vadd.f32 %v748_v22, %v747_v13 }
  0xfe   : > { %v751_v61 = vadd.f32 %v750_v17, %v749_v15 }
 0x100   : > { %v753_v23 = vadd.f32 %v752_v20, %v751_v61 }
 0x102   : > { %v755_v1 = vadd.f32 %v754_v24, %v753_v23 }
 0x104   : > { %v757_v28 = vadd.f32 %v756_v26, %v755_v1 }
 0x106   : > { %v759_v30 = vadd.f32 %v758_v29, %v757_v28 }
 0x108   : > { %v761_v31 = vadd.f32 %v760_v5, %v759_v30 }
 0x10a   : > { %v762_v32 = vrot.slane %v761_v31, 4 }
 0x10c   : > { %v763_v33 = vadd.f32 %v762_v32, %v761_v31 }
 0x10e   : > { %v764_v16 = vrot.slane %v763_v33, 2 }
 0x110   : > { %v765_v3 = vadd.f32 %v764_v16, %v763_v33 }
 0x112   : > { %v766_v35 = vrot.slane %v765_v3, 1 }
 0x114   : > { %v767_v37 = vadd.f32 %v766_v35, %v765_v3 }
 0x116   : > { %v768_v34 = vadd.f32 %v767_v37, %v697_v36 }
 0x118   : > { %770 = vst.msk [vmem:[#allocation2] sm:$0x1] %vm254_vm3, %v768_v34 }
 0x11f   : > { %v774_v38 = vld [vmem:[#allocation2] sm:$0x1] }
 0x120   : > { %v775_v39 = vmul.f32 0.00390625, %v774_v38 }
 0x122   : > { %v776_v40 = vpack.c.bf16 %v775_v39, %v775_v39 }
 0x124   : > { %900 = vmatmul.msk.bf16.vlgmr.msrb.gmra.mxu1 %vm698_vm2, %v776_v40 }
 0x1a1   : > { %v798_v42 = vpop.f32.mrf.mxu1 }
 0x1a2   : > { %v799_v43 = vadd.f32 %v798_v42, %v779_v41 }
 0x1a4   : > { %803 = vst.msk [vmem:[%s248_s15] sm:$0x1] %vm802_vm4, %v799_v43 }
 0x1a9   : > { %v800_v45 = vpop.f32.mrf.mxu1 }
 0x1aa PF: > { %s15_s20 = sadd.s32 1, %s964_s20   ;;  %s1213_s18 = smov %s960_s19 }
 0x1ab   : > { %p12_p5 = scmp.ge.s32.totalorder %s15_s20, 4   ;;  %s1214_s19 = smov %s1216_s21 }
 0x1ad   :  { %14 = sbr.rel (!%p12_p5) target bundleno = 2 (0x2), region = 78 }

// kernel: speech_model_forward.4
= control target key start
LH: loop header
LB: loop body
LE: loop exit
PB: predicated region body
PF: predicated region fallthrough
CT: control target
= control target key end

     0   :  { %s4297_s26 = smov 0   ;;  %s4299_s27 = smov 0   ;;  %s5133_s0 = inlined_call_operand.vmem [shape: f32[2,8,32], index: 0, kind: input, shape index: {}, may-alias: {0,1}]   ;;  %s5134_s1 = inlined_call_operand.vmem [shape: f32[2,8,32], index: 1, kind: input, shape index: {}, may-alias: {0,1}]   ;;  %s5135_s2 = inlined_call_operand.vmem [shape: f32[2,1,32], index: 2, kind: input, shape index: {}]   ;;  %s5136_s3 = inlined_call_operand.vmem [shape: f32[2,1,32], index: 3, kind: input, shape index: {}]   ;;  %s5137_s4 = inlined_call_operand.vmem [shape: bf16[2,32,16], index: 4, kind: input, shape index: {}]   ;;  %s5138_s5 = inlined_call_operand.vmem [shape: bf16[2,32,16], index: 5, kind: input, shape index: {}]   ;;  %s5139_s6 = inlined_call_operand.vmem [shape: bf16[2,32,16], index: 6, kind: input, shape index: {}]   ;;  %s5140_s7 = inlined_call_operand.vmem [shape: f32[2,1,16], index: 7, kind: input, shape index: {}]   ;;  %s5141_s8 = inlined_call_operand.vmem [shape: f32[2,1,16], index: 8, kind: input, shape index: {}]   ;;  %s5142_s9 = inlined_call_operand.vmem [shape: f32[2,1,16], index: 9, kind: input, shape index: {}]   ;;  %s5143_s10 = inlined_call_operand.vmem [shape: bf16[2,16,32], index: 10, kind: input, shape index: {}]   ;;  %s5144_s11 = inlined_call_operand.vmem [shape: f32[1,32], index: 11, kind: input, shape index: {}]   ;;  %s5145_s12 = inlined_call_operand.vmem [shape: f32[1,32], index: 12, kind: input, shape index: {}]   ;;  %s5146_s13 = inlined_call_operand.vmem [shape: f32[1,32], index: 13, kind: input, shape index: {}]   ;;  %s5147_s14 = inlined_call_operand.vmem [shape: bf16[32,32], index: 14, kind: input, shape index: {}]   ;;  %s5148_s15 = inlined_call_operand.vmem [shape: f32[1,32], index: 15, kind: input, shape index: {}]   ;;  %s5149_s16 = inlined_call_operand.vmem [shape: f32[1,32], index: 16, kind: input, shape index: {}]   ;;  %s5150_s17 = inlined_call_operand.vmem [shape: f32[1,32], index: 17, kind: input, shape index: {}]   ;;  %s5151_s18 = inlined_call_operand.vmem [shape: bf16[32,2048], index: 18, kind: input, shape index: {}]   ;;  %s5152_s19 = inlined_call_operand.vmem [shape: f32[1,2048], index: 19, kind: input, shape index: {}]   ;;  %s5153_s20 = inlined_call_operand.vmem [shape: bf16[2048,32], index: 20, kind: input, shape index: {}]   ;;  %s5154_s21 = inlined_call_operand.vmem [shape: f32[1,32], index: 21, kind: input, shape index: {}]   ;;  %s5155_s22 = inlined_call_operand.vmem [shape: f32[1,32], index: 22, kind: input, shape index: {}]   ;;  %s5156_s23 = inlined_call_operand.vmem [shape: f32[1,32], index: 23, kind: input, shape index: {}]   ;;  %s5157_s24 = inlined_call_operand.vmem [shape: f32[2,8,32], index: 24, kind: output, shape index: {}]  }
   0x1   :  { %5167 = sst [smem:[#allocation5_spill]] %s5133_s0 }
   0x2   :  { %5168 = sst [smem:[#allocation6_spill]] %s5134_s1 }
   0x3   :  { %5169 = sst [smem:[#allocation7_spill]] %s5135_s2 }
   0x4   :  { %5170 = sst [smem:[#allocation8_spill]] %s5136_s3 }
   0x5   :  { %5171 = sst [smem:[#allocation9_spill]] %s5137_s4 }
   0x6   :  { %5172 = sst [smem:[#allocation10_spill]] %s5138_s5  ;;  %s4295_s5 = smov 0  }
   0x7   :  { %5173 = sst [smem:[#allocation11_spill]] %s5139_s6 }
   0x8   :  { %5174 = sst [smem:[#allocation12_spill]] %s5140_s7 }
   0x9   :  { %5175 = sst [smem:[#allocation13_spill]] %s5141_s8 }
   0xa   :  { %5176 = sst [smem:[#allocation14_spill]] %s5157_s24 }
   0xb LB: > { %5177 = sst [smem:[#allocation2_spill]] %s4163_s26  ;;  %s46_s28 = sadd.s32 1, %s4163_s26  ;;  %s4167_s27 = sphi %s4299_s27, %s34_s27   ;;  %s4163_s26 = sphi %s4297_s26, %s5192_s26   ;;  %s4159_s5 = sphi %s4295_s5, %s5191_s5  }
   0xc   : > { %5178 = sst [smem:[#allocation3_spill]] %s4167_s27  ;;  %p3157_p0 = scmp.ge.s32.totalorder %s4167_s27, 1 }
   0xd   : > { %p48_p1 = scmp.ge.s32.totalorder %s46_s28, 2  ;;  %p705_p2 = scmp.lt.s32.totalorder %s4167_s27, 3 }
   0xf   : > { %s5194_s28 = smov (%p48_p1, %s46_s28), 0  ;;  %p706_p3 = pnand %p3157_p0, %p705_p2 }
  0x10   : > { %5179 = sst [smem:[#allocation4_spill]] %s5194_s28  ;;  %p785_p4 = scmp.lt.s32.totalorder (!%p706_p3), %s4159_s5, 1 }
  0x11   : > { %709 = sbr.rel (%p706_p3) target bundleno = 2374 (0x946), region = 116  ;;  %s5180_s29 = sld [smem:[#allocation9_spill]] (!%p706_p3) }
  0x12   : > { %s5181_s30 = sld [smem:[#allocation10_spill]] (!%p706_p3) }
  0x13   : > { %s5182_s0 = sld [smem:[#allocation7_spill]] (!%p706_p3) }
  0x14   : > { %s5183_s28 = sld [smem:[#allocation5_spill]] (!%p706_p3) }
  0x15   : > { %s5184_s27 = sld [smem:[#allocation6_spill]] (!%p706_p3) }
  0x16   : > { %s5196_s5 = smov (!%p785_p4, %s4159_s5), 1  ;;  %vm840_vm0 = vcmask 261120   ;;  %s5185_s6 = sld [smem:[#allocation12_spill]]  ;;  %vm929_vm1 = vcmask 130048   ;;  %vm949_vm2 = vcmask 64512   ;;  %vm966_vm3 = vcmask 1043456  }
  0x17   : > { %v3914_v0 = vld [vmem:[%s5180_s29 + $0x8] sm:$0xff]  ;;  %v3913_v2 = vld [vmem:[%s5180_s29] sm:$0xff]  ;;  %s4328_s1 = sshll.u32 %s5196_s5, 3  ;;  %s5187_s3 = sld [smem:[#allocation11_spill]]  ;;  %v3921_v30 = vld [vmem:[%s5180_s29 + $0x18] sm:$0xff] }
  0x18   : > { %v3916_v1 = vld [vmem:[%s5181_s30 + $0x8] sm:$0xff]  ;;  %850 = vmatpush.bf16.msra.mxu0 %v3914_v0  ;;  %v3915_v3 = vld [vmem:[%s5181_s30] sm:$0xff]  ;;  %v3923_v25 = vld [vmem:[%s5181_s30 + $0x18] sm:$0xff] }
  0x19   : > { %886 = vmatpush.bf16.msra.mxu1 %v3916_v1  ;;  %s798_s7 = scalar_lea.vmem %s5182_s0, %s5196_s5  ;;  %s5186_s0 = sld [smem:[#allocation13_spill]]  ;;  %v3922_v29 = vld [vmem:[%s5181_s30 + $0x10] sm:$0xff]  ;;  %v4117_v39 = vld [vmem:[%s5142_s9] ss:$0 sm:$0xff]  ;;  %v4120_v62 = vld [vmem:[%s5142_s9 + $0x1] ss:$0 sm:$0xff] }
  0x1a   : > { %s791_s26 = scalar_lea.vmem %s5183_s28, %s4328_s1  ;;  %v4114_v4 = vld [vmem:[%s798_s7] ss:$0 sm:$0xff]  ;;  %v3920_v31 = vld [vmem:[%s5180_s29 + $0x10] sm:$0xff] }
  0x1b   : > { %v810_v5 = vld [vmem:[%s791_s26] sm:$0xff]  ;;  %s795_s24 = scalar_lea.vmem %s5184_s27, %s4328_s1  ;;  %s5188_s27 = sld [smem:[#allocation8_spill]] }
  0x1c   : > { %851 = vmatpush.bf16.msra.mxu0 %v3913_v2  ;;  %v4342_v6 = vadd.f32 %v4114_v4, %v810_v5  ;;  %v811_v7 = vld [vmem:[%s795_s24] sm:$0xff] }
  0x1d   : > { %887 = vmatpush.bf16.msra.mxu1 %v3915_v3  ;;  %v817_v8 = vadd.f32 %v4114_v4, %v811_v7  ;;  %v4115_v11 = vld [vmem:[%s5185_s6] ss:$0 sm:$0xff]  ;;  %v3918_v23 = vld [vmem:[%s5187_s3 + $0x8] sm:$0xff]  ;;  %v3925_v51 = vld [vmem:[%s5187_s3 + $0x18] sm:$0xff] }
  0x1e   : > { %v818_v9 = vpack.c.bf16 %v4342_v6, %v4342_v6  ;;  %919 = vmatpush.bf16.msra.mxu2 %v3918_v23  ;;  %v3917_v24 = vld [vmem:[%s5187_s3] sm:$0xff]  ;;  %v3924_v52 = vld [vmem:[%s5187_s3 + $0x10] sm:$0xff] }
  0x1f   : > { %v4346_v10 = vpack.c.bf16 %v817_v8, %v817_v8  ;;  %v4116_v12 = vld [vmem:[%s5186_s0] ss:$0 sm:$0xff]  ;;  %v4118_v44 = vld [vmem:[%s5186_s0 + $0x1] ss:$0 sm:$0xff] }
  0x20   : > { %3169 = vmatmul.msk.bf16.vlgmr.msra.gmra.mxu0 %vm840_vm0, %v818_v9  ;;  %v4119_v57 = vld [vmem:[%s5185_s6 + $0x1] ss:$0 sm:$0xff] }
  0x21   : > { %3178 = vmatmul.msk.bf16.vlgmr.msra.gmra.mxu1 %vm840_vm0, %v4346_v10  ;;  %v3919_v61 = vld [vmem:[%s5143_s10] sm:$0xff]  ;;  %s801_s2 = scalar_lea.vmem %s5188_s27, %s5196_s5 }
  0x22   : > { %920 = vmatpush.bf16.msra.mxu2 %v3917_v24  ;;  %1014 = vmatpush.bf16.msrb.mxu1 %v3921_v30 }
  0x25   : > { %3187 = vmatmul.msk.bf16.vlgmr.msra.gmra.mxu2 %vm840_vm0, %v4346_v10 }
  0x26   : > { %1049 = vmatpush.bf16.msrb.mxu2 %v3923_v25  ;;  %1015 = vmatpush.bf16.msrb.mxu1 %v3920_v31 }
  0x2a   : > { %1050 = vmatpush.bf16.msrb.mxu2 %v3922_v29 }
  0x31   : > { %3203 = vmatmul.msk.bf16.vlgmr.msrb.gmra.mxu1 %vm840_vm0, %v818_v9 }
  0x35   : > { %3217 = vmatmul.msk.bf16.vlgmr.msrb.gmra.mxu2 %vm840_vm0, %v4346_v10 }
  0x9d   : > { %v853_v13 = vpop.f32.mrf.mxu0 }
  0x9e   : > { %v889_v14 = vpop.f32.mrf.mxu1  ;;  %v854_v15 = vadd.f32 %v4115_v11, %v853_v13 }
  0x9f   : > { %v890_v16 = vadd.f32 %v4116_v12, %v889_v14 }
  0xa0   : > { %v926_v18 = vmul.f32 0.25, %v854_v15 }
  0xa1   : > { %v928_v17 = vpack.c.bf16 %v890_v16, %v890_v16 }
  0xa2   : > { %v927_v22 = vpack.c.bf16 %v926_v18, %v926_v18  ;;  %v3926_v18 = vld [vmem:[%s5143_s10 + $0x8] sm:$0xff] }
  0xa3   : > { %v934_v19 = vsel %vm929_vm1, %v928_v17, 0  ;;  %1165 = vmatpush.bf16.msra.mxu2 %v3926_v18  ;;  %v3954_v18 = vld [vmem:[%s5151_s18 + $0xc4] sm:$0xf0] }
  0xa4   : > { %943 = vmatpush.bf16.xpose.msra.mxu3 %v934_v19 }
  0xa5   : > { %v855_v20 = vpop.f32.mrf.mxu0 }
  0xa6   : > { %v891_v21 = vpop.f32.mrf.mxu1 }
  0xa8   : > { %v922_v32 = vpop.f32.mrf.mxu2 }
  0xa9   : > { %v923_v40 = vadd.f32 %v4117_v39, %v922_v32 }
  0xab   : > { %3188 = vmatmul.msk.bf16.vlgmr.msra.gmra.mxu3 %vm929_vm1, %v927_v22  ;;  %v962_v41 = vpack.c.bf16 %v923_v40, %v923_v40 }
  0xac   : > { %1084 = vmatpush.bf16.msrb.mxu3 %v3925_v51 }
  0xad   : > { %v968_v42 = vsel %vm966_vm3, %v962_v41, 0 }
  0xae   : > { %977 = vmatpush.bf16.msrb.mxu0 %v968_v42  ;;  %v1017_v47 = vpop.f32.mrf.mxu1 }
  0xaf   : > { %v1018_v58 = vadd.f32 %v4119_v57, %v1017_v47 }
  0xb0   : > { %v924_v36 = vpop.f32.mrf.mxu2  ;;  %1085 = vmatpush.bf16.msrb.mxu3 %v3924_v52 }
  0xb1   : > { %v1091_v59 = vmul.f32 0.25, %v1018_v58  ;;  %v1244_v58 = vld [vmem:[%s5148_s15] sm:$0x1] }
  0xb3   : > { %v1092_v60 = vpack.c.bf16 %v1091_v59, %v1091_v59 }
  0xb4   : > { %1187 = vmatpush.bf16.msra.mxu3 %v3919_v61  ;;  %v4122_v61 = vld [vmem:[%s5145_s12] ss:$0 sm:$0xff] }
  0xb6   : > { %v1019_v50 = vpop.f32.mrf.mxu1 }
  0xb8   : > { %v1052_v43 = vpop.f32.mrf.mxu2 }
  0xb9   : > { %v1053_v45 = vadd.f32 %v4118_v44, %v1052_v43 }
  0xbb   : > { %v1093_v46 = vpack.c.bf16 %v1053_v45, %v1053_v45  ;;  %3231 = vmatmul.msk.bf16.vlgmr.msrb.gmra.mxu3 %vm840_vm0, %v4346_v10 }
  0xbd   : > { %v1098_v48 = vsel %vm929_vm1, %v1093_v46, 0 }
  0xbe   : > { %1107 = vmatpush.bf16.xpose.msra.mxu0 %v1098_v48 }
  0xc0   : > { %v1054_v49 = vpop.f32.mrf.mxu2 }
 0x12e   : > { %v945_v26 = vpop.f32.mrf.mxu3 }
 0x12f   : > { %v950_v27 = vsel %vm949_vm2, %v945_v26, -inf }
 0x130   : > { %951 = vmax.xlane.f32.xlu0 %v950_v27 }
 0x136   : > { %v947_v28 = vpop.f32.mrf.mxu3 }
 0x13e   : > { %v1087_v63 = vpop.f32.mrf.mxu3 }
 0x13f   : > { %v1088_v1 = vadd.f32 %v4120_v62, %v1087_v63 }
 0x141   : > { %v1125_v3 = vpack.c.bf16 %v1088_v1, %v1088_v1 }
 0x143   : > { %v1130_v4 = vsel %vm966_vm3, %v1125_v3, 0 }
 0x144   : > { %1139 = vmatpush.bf16.msra.mxu1 %v1130_v4 }
 0x146   : > { %v1089_v5 = vpop.f32.mrf.mxu3 }
 0x1a3   : > { %v952_v33 = vpop.xlane.xlu0 %951 }
 0x1a4   : > { %v953_v34 = vsub.f32 %v945_v26, %v952_v33  ;;  %v4121_v26 = vld [vmem:[%s5144_s11] ss:$0 sm:$0xff]  ;;  %v3928_v33 = vld [vmem:[%s5147_s14 + $0x8] sm:$0xff] }
 0x1a6   : > { %v954_v35 = vmul.f32 1.442695, %v953_v34  ;;  %v4169_v34 = vmov 32.0  }
 0x1a8   : > { %4129 = vpow2.f32 %v954_v35  ;;  %v3927_v35 = vld [vmem:[%s5147_s14] sm:$0xff] }
 0x1ae   : > { %v4130_v37 = vpop.eup %4129 }
 0x1af   : > { %v956_v38 = vsel %vm949_vm2, %v4130_v37, 0.0 }
 0x1b0   : > { %957 = vadd.xlane.f32.xlu0 %v956_v38 }
 0x223   : > { %v958_v53 = vpop.xlane.xlu0 %957 }
 0x224   : > { %4131 = vrcp.f32 %v958_v53 }
 0x22a   : > { %v4132_v54 = vpop.eup %4131 }
 0x22b   : > { %v960_v55 = vmul.f32 %v4132_v54, %v4130_v37 }
 0x22d   : > { %v961_v56 = vpack.c.bf16 %v960_v55, %v960_v55 }
 0x22f   : > { %3189 = vmatmul.msk.bf16.vlgmr.msrb.gmra.mxu0 %vm949_vm2, %v961_v56 }
 0x230   : > { %1266 = vmatpush.bf16.msrb.mxu0 %v3928_v33  ;;  %v3930_v33 = vld [vmem:[%s5151_s18 + $0xc] sm:$0xf] }
 0x234   : > { %1267 = vmatpush.bf16.msrb.mxu0 %v3927_v35 }
 0x23f   : > { %3232 = vmatmul.msk.bf16.vlgmr.msra.gmra.mxu0 %vm929_vm1, %v1092_v60 }
 0x2ac   : > { %v979_v0 = vpop.f32.mrf.mxu0 }
 0x2ad   : > { %v983_v2 = vpack.c.bf16 %v979_v0, %v979_v0  ;;  %v4123_v0 = vld [vmem:[%s5146_s13] ss:$0 sm:$0xff] }
 0x2af   : > { %3245 = vmatmul.msk.bf16.vlgmr.msra.gmra.mxu3 %vm929_vm1, %v983_v2 }
 0x2b4   : > { %v981_v7 = vpop.f32.mrf.mxu0 }
 0x2bc   : > { %v1109_v8 = vpop.f32.mrf.mxu0 }
 0x2bd   : > { %v1113_v9 = vsel %vm949_vm2, %v1109_v8, -inf }
 0x2be   : > { %1114 = vmax.xlane.f32.xlu1 %v1113_v9 }
 0x2c4   : > { %v1111_v10 = vpop.f32.mrf.mxu0 }
 0x331   : > { %v1115_v11 = vpop.xlane.xlu1 %1114 }
 0x332   : > { %v1116_v12 = vsub.f32 %v1109_v8, %v1115_v11  ;;  %v1189_v13 = vpop.f32.mrf.mxu3 }
 0x334   : > { %v1117_v14 = vmul.f32 1.442695, %v1116_v12  ;;  %v3321_v12 = vld [vmem:[%s5151_s18 + $0x80] sm:$0xf] }
 0x336   : > { %4133 = vpow2.f32 %v1117_v14  ;;  %v3945_v14 = vld [vmem:[%s5151_s18 + $0x84] sm:$0xf] }
 0x33a   : > { %v1191_v15 = vpop.f32.mrf.mxu3 }
 0x33c   : > { %v4134_v16 = vpop.eup %4133 }
 0x33d   : > { %v1119_v17 = vsel %vm949_vm2, %v4134_v16, 0.0 }
 0x33e   : > { %1120 = vadd.xlane.f32.xlu1 %v1119_v17  ;;  %v3329_v17 = vld [vmem:[%s5151_s18 + $0x88] sm:$0xf] }
 0x3b1   : > { %v1121_v19 = vpop.xlane.xlu1 %1120 }
 0x3b2   : > { %4135 = vrcp.f32 %v1121_v19 }
 0x3b3   : > { %4137 = vrcp.f32 %v4169_v34  ;;  %v3267_v34 = vld [vmem:[%s5151_s18 + $0x48] sm:$0xf0] }
 0x3b4   : > { %v3270_v35 = vor.u32 %v3930_v33, %v3267_v34 }
 0x3b8   : > { %v4136_v20 = vpop.eup %4135 }
 0x3b9   : > { %v1123_v21 = vmul.f32 %v4136_v20, %v4134_v16  ;;  %v4138_v37 = vpop.eup %4137  ;;  %v3323_v16 = vld [vmem:[%s5151_s18 + $0xc0] sm:$0xf0]  ;;  %v3330_v20 = vor.u32 %v3954_v18, %v3329_v17  ;;  %v3958_v17 = vld [vmem:[%s5151_s18 + $0xe4] sm:$0xf0]  ;;  %v3950_v18 = vld [vmem:[%s5151_s18 + $0xac] sm:$0xf] }
 0x3ba   : > { %v1205_v38 = vmul.f32 32.0, %v4138_v37  ;;  %vm1209_vm4 = vweird.f32 %v4138_v37  ;;  %v3326_v19 = vor.u32 %v3945_v14, %v3323_v16  ;;  %v3949_v14 = vld [vmem:[%s5151_s18 + $0xa4] sm:$0xf] }
 0x3bb   : > { %v1124_v22 = vpack.c.bf16 %v1123_v21, %v1123_v21  ;;  %v3946_v21 = vld [vmem:[%s5151_s18 + $0x8c] sm:$0xf]  ;;  %1571 = vmatpush.bf16.msrb.mxu3 %v3330_v20 }
 0x3bc   : > { %v1206_v39 = vsub.f32 1.0, %v1205_v38  ;;  %1558 = vmatpush.bf16.msrb.mxu2 %v3326_v19  ;;  %v3947_v38 = vld [vmem:[%s5151_s18 + $0x94] sm:$0xf]  ;;  %v3363_v19 = vld [vmem:[%s5151_s18 + $0xe8] sm:$0xf0] }
 0x3bd   : > { %3233 = vmatmul.msk.bf16.vlgmr.msra.gmra.mxu1 %vm949_vm2, %v1124_v22  ;;  %v3331_v22 = vld [vmem:[%s5151_s18 + $0xc8] sm:$0xf0] }
 0x3be   : > { %v1207_v40 = vmul.f32 %v4138_v37, %v1206_v39 }
 0x3c0   : > { %v1208_v41 = vadd.f32 %v4138_v37, %v1207_v40 }
 0x3c2   : > { %v4436_v42 = vsel %vm1209_vm4, %v4138_v37, %v1208_v41  ;;  %v3955_v37 = vld [vmem:[%s5151_s18 + $0xcc] sm:$0xf0]  ;;  %v3339_v41 = vld [vmem:[%s5151_s18 + $0xd0] sm:$0xf0] }
 0x43a   : > { %v1141_v23 = vpop.f32.mrf.mxu1 }
 0x43b   : > { %v1145_v24 = vpack.c.bf16 %v1141_v23, %v1141_v23  ;;  %v3334_v23 = vor.u32 %v3946_v21, %v3331_v22 }
 0x43d   : > { %3240 = vmatmul.msk.bf16.vlgmr.msra.gmra.mxu2 %vm929_vm1, %v1145_v24  ;;  %v3257_v24 = vld [vmem:[%s5151_s18] sm:$0xf]  ;;  %1584 = vmatpush.bf16.msra.mxu0 %v3334_v23 }
 0x43e   : > { %v3289_v23 = vld [vmem:[%s5151_s18 + $0x20] sm:$0xf] }
 0x441   : > { %1585 = vmatpush.bf16.msra.mxu0 %v3270_v35 }
 0x442   : > { %v1143_v25 = vpop.f32.mrf.mxu1 }
 0x443   : > { %v3937_v25 = vld [vmem:[%s5151_s18 + $0x3c] sm:$0xf0] }
 0x4c0   : > { %v1167_v27 = vpop.f32.mrf.mxu2 }
 0x4c1   : > { %v1190_v28 = vadd.f32 %v1189_v13, %v1167_v27  ;;  %v3953_v13 = vld [vmem:[%s5151_s18 + $0xbc] sm:$0xf0]  ;;  %v3258_v27 = vor.u32 %v3937_v25, %v3257_v24 }
 0x4c2   : > { %v3322_v15 = vor.u32 %v3953_v13, %v3321_v12  ;;  %v3353_v12 = vld [vmem:[%s5151_s18 + $0xa0] sm:$0xf] }
 0x4c3   : > { %v1197_v29 = vadd.f32 %v4121_v26, %v1190_v28  ;;  %v3929_v26 = vld [vmem:[%s5151_s18 + $0x4] sm:$0xf]  ;;  %v3957_v13 = vld [vmem:[%s5151_s18 + $0xdc] sm:$0xf0] }
 0x4c4   : > { %1545 = vmatpush.bf16.msrb.mxu1 %v3322_v15  ;;  %v3259_v28 = vld [vmem:[%s5151_s18 + $0x40] sm:$0xf0]  ;;  %v3354_v21 = vor.u32 %v3957_v13, %v3353_v12  ;;  %v3941_v24 = vld [vmem:[%s5151_s18 + $0x5c] sm:$0xf0] }
 0x4c5   : > { %v1198_v30 = vadd.f32 %v1197_v29, %v4342_v6  ;;  %v1238_v6 = vld [vmem:[%s801_s2] sm:$0x1]  ;;  %v3265_v29 = vld [vmem:[%s5151_s18 + $0x8] sm:$0xf]  ;;  %v3355_v15 = vld [vmem:[%s5151_s18 + $0xe0] sm:$0xf0]  ;;  %v3290_v33 = vor.u32 %v3941_v24, %v3289_v23 }
 0x4c6   : > { %v1239_v36 = vpack.c.bf16 %v1238_v6, %v1238_v6  ;;  %v3358_v22 = vor.u32 %v3949_v14, %v3355_v15  ;;  %v3989_v12 = vld [vmem:[%s5153_s20 + $0xe0] sm:$0xff]  ;;  %v3964_v15 = vld [vmem:[%s5153_s20 + $0x18] sm:$0xff]  ;;  %v3962_v23 = vld [vmem:[%s5153_s20 + $0x8] sm:$0xff]  ;;  %s5189_s2 = sld [smem:[#allocation14_spill]] }
 0x4c7   : > { %v1201_v31 = vsel %vm840_vm0, %v1198_v30, 0.0  ;;  %v3973_v13 = vld [vmem:[%s5153_s20 + $0x60] sm:$0xff]  ;;  %v3986_v24 = vld [vmem:[%s5153_s20 + $0xc8] sm:$0xff] }
 0x4c8   : > { %1202 = vadd.xlane.f32.xlu2 %v1201_v31  ;;  %v1169_v32 = vpop.f32.mrf.mxu2  ;;  %3254 = vmatmul.msk.bf16.vlgmr.msrb.gmra.mxu0 %vm840_vm0, %v1239_v36  ;;  %v3262_v31 = vor.u32 %v3929_v26, %v3259_v28  ;;  %v3337_v36 = vld [vmem:[%s5151_s18 + $0x90] sm:$0xf]  ;;  %v3366_v26 = vor.u32 %v3950_v18, %v3363_v19  ;;  %v3291_v28 = vld [vmem:[%s5151_s18 + $0x60] sm:$0xf0]  ;;  %v3980_v18 = vld [vmem:[%s5153_s20 + $0x98] sm:$0xff] }
 0x4c9   : > { %1546 = vmatpush.bf16.msrb.mxu1 %v3258_v27  ;;  %v3338_v40 = vor.u32 %v3955_v37, %v3337_v36  ;;  %v3933_v27 = vld [vmem:[%s5151_s18 + $0x24] sm:$0xf]  ;;  %v3369_v36 = vld [vmem:[%s5151_s18 + $0xb0] sm:$0xf] }
 0x4ca   : > { %1559 = vmatpush.bf16.msrb.mxu2 %v3262_v31  ;;  %v3934_v31 = vld [vmem:[%s5151_s18 + $0x2c] sm:$0xf]  ;;  %v3294_v34 = vor.u32 %v3933_v27, %v3291_v28  ;;  %v3959_v37 = vld [vmem:[%s5151_s18 + $0xec] sm:$0xf0]  ;;  %v3981_v14 = vld [vmem:[%s5153_s20 + $0xa0] sm:$0xff] }
 0x4cb   : > { %v3963_v19 = vld [vmem:[%s5153_s20 + $0x10] sm:$0xff]  ;;  %v3961_v27 = vld [vmem:[%s5153_s20] sm:$0xff] }
 0x4cc   : > { %v3985_v28 = vld [vmem:[%s5153_s20 + $0xc0] sm:$0xff]  ;;  %s808_s24 = scalar_lea.vmem %s5189_s2, %s4328_s1 }
 0x4cd   : > { %1597 = vmatpush.bf16.msra.mxu1 %v3338_v40  ;;  %v3377_v40 = vld [vmem:[%s5151_s18 + $0xb8] sm:$0xf] }
 0x53b   : > { %v1203_v43 = vpop.xlane.xlu2 %1202 }
 0x53c   : > { %v1211_v44 = vmul.f32 %v4436_v42, %v1203_v43  ;;  %v3345_v43 = vld [vmem:[%s5151_s18 + $0x98] sm:$0xf] }
 0x53e   : > { %v1212_v45 = vsub.f32 %v1198_v30, %v1211_v44  ;;  %v3938_v30 = vld [vmem:[%s5151_s18 + $0x44] sm:$0xf0]  ;;  %v3956_v44 = vld [vmem:[%s5151_s18 + $0xd4] sm:$0xf0] }
 0x53f   : > { %v3266_v32 = vor.u32 %v3938_v30, %v3265_v29  ;;  %v3297_v29 = vld [vmem:[%s5151_s18 + $0x28] sm:$0xf] }
 0x540   : > { %v1213_v46 = vmul.f32 %v1212_v45, %v1212_v45  ;;  %v3942_v30 = vld [vmem:[%s5151_s18 + $0x64] sm:$0xf0] }
 0x541   : > { %1572 = vmatpush.bf16.msrb.mxu3 %v3266_v32  ;;  %v3299_v32 = vld [vmem:[%s5151_s18 + $0x68] sm:$0xf0]  ;;  %v3298_v35 = vor.u32 %v3942_v30, %v3297_v29  ;;  %v4000_v29 = vld [vmem:[%s5153_s20 + $0x138] sm:$0xff] }
 0x542   : > { %v1214_v47 = vsel %vm840_vm0, %v1213_v46, 0.0  ;;  %v3346_v46 = vor.u32 %v3956_v44, %v3345_v43  ;;  %v3952_v43 = vld [vmem:[%s5151_s18 + $0xbc] sm:$0xf] }
 0x543   : > { %1215 = vadd.xlane.f32.xlu2 %v1214_v47  ;;  %v3948_v47 = vld [vmem:[%s5151_s18 + $0x9c] sm:$0xf] }
 0x544   : > { %v3379_v44 = vld [vmem:[%s5151_s18 + $0xf8] sm:$0xf0] }
 0x545   : > { %v1269_v48 = vpop.f32.mrf.mxu0  ;;  %1623 = vmatpush.bf16.msra.mxu3 %v3346_v46  ;;  %v4024_v30 = vld [vmem:[%s5153_s20 + $0x1f8] sm:$0xff] }
 0x546   : > { %v1270_v60 = vadd.f32 %v1269_v48, %v1244_v58  ;;  %v3347_v48 = vld [vmem:[%s5151_s18 + $0xd8] sm:$0xf0] }
 0x548   : > { %v1273_v1 = vperm.slane %v1270_v60, 0  ;;  %v3932_v60 = vld [vmem:[%s5151_s18 + $0x1c] sm:$0xf] }
 0x54d   : > { %v1271_v49 = vpop.f32.mrf.mxu0 }
 0x54e   : > { %v3273_v49 = vld [vmem:[%s5151_s18 + $0x10] sm:$0xf] }
 0x5b6   : > { %v1216_v50 = vpop.xlane.xlu2 %1215 }
 0x5b7   : > { %v1217_v51 = vmul.f32 %v1216_v50, %v4436_v42 }
 0x5b9   : > { %v1218_v52 = vadd.f32 1e-05, %v1217_v51  ;;  %v3350_v51 = vor.u32 %v3948_v47, %v3347_v48  ;;  %v3305_v47 = vld [vmem:[%s5151_s18 + $0x30] sm:$0xf] }
 0x5ba   : > { %v3943_v48 = vld [vmem:[%s5151_s18 + $0x6c] sm:$0xf0] }
 0x5bb   : > { %4139 = vrsqrt.f32 %v1218_v52  ;;  %vm1225_vm6 = vweird.f32 %v1218_v52  ;;  %1636 = vmatpush.bf16.msrb.mxu0 %v3350_v51  ;;  %v3935_v51 = vld [vmem:[%s5151_s18 + $0x34] sm:$0xf] }
 0x5c1   : > { %v4140_v53 = vpop.eup %4139 }
 0x5c2   : > { %v1220_v54 = vmul.f32 %v4140_v53, %v1218_v52  ;;  %vm1226_vm5 = vweird.f32 %v4140_v53  ;;  %v3939_v52 = vld [vmem:[%s5151_s18 + $0x4c] sm:$0xf0] }
 0x5c3   : > { %vm1227_vm7 = vmor %vm1225_vm6, %vm1226_vm5 }
 0x5c4   : > { %v1221_v55 = vmul.f32 %v4140_v53, %v1220_v54  ;;  %v3274_v54 = vor.u32 %v3939_v52, %v3273_v49  ;;  %v3307_v52 = vld [vmem:[%s5151_s18 + $0x70] sm:$0xf0] }
 0x5c6   : > { %v1222_v56 = vmul.f32 0.5, %v1221_v55  ;;  %v3275_v55 = vld [vmem:[%s5151_s18 + $0x50] sm:$0xf0]  ;;  %1598 = vmatpush.bf16.msra.mxu1 %v3274_v54  ;;  %v3944_v54 = vld [vmem:[%s5151_s18 + $0x74] sm:$0xf0] }
 0x5c8   : > { %v1223_v57 = vsub.f32 1.5, %v1222_v56  ;;  %v3281_v56 = vld [vmem:[%s5151_s18 + $0x18] sm:$0xf] }
 0x5ca   : > { %v1224_v59 = vmul.f32 %v4140_v53, %v1223_v57  ;;  %v3940_v57 = vld [vmem:[%s5151_s18 + $0x54] sm:$0xf0] }
 0x5cc   : > { %v1228_v62 = vsel %vm1227_vm7, %v4140_v53, %v1224_v59  ;;  %v3931_v53 = vld [vmem:[%s5151_s18 + $0x14] sm:$0xf]  ;;  %v3282_v59 = vor.u32 %v3940_v57, %v3281_v56  ;;  %v3315_v56 = vld [vmem:[%s5151_s18 + $0x78] sm:$0xf0]  ;;  %v3306_v57 = vor.u32 %v3943_v48, %v3305_v47 }
 0x5cd   : > { %v1229_v63 = vmul.f32 %v1228_v62, %v1212_v45  ;;  %v3342_v45 = vor.u32 %v3947_v38, %v3339_v41  ;;  %v3278_v58 = vor.u32 %v3931_v53, %v3275_v55  ;;  %v3951_v38 = vld [vmem:[%s5151_s18 + $0xb4] sm:$0xf]  ;;  %v3960_v41 = vld [vmem:[%s5151_s18 + $0xf4] sm:$0xf0]  ;;  %v3936_v55 = vld [vmem:[%s5151_s18 + $0x3c] sm:$0xf] }
 0x5ce   : > { %1624 = vmatpush.bf16.msra.mxu3 %v3282_v59  ;;  %v3378_v49 = vor.u32 %v3960_v41, %v3377_v40  ;;  %v3313_v53 = vld [vmem:[%s5151_s18 + $0x38] sm:$0xf]  ;;  %v4006_v40 = vld [vmem:[%s5153_s20 + $0x168] sm:$0xff] }
 0x5cf   : > { %v1233_v2 = vmul.f32 %v4122_v61, %v1229_v63  ;;  %1610 = vmatpush.bf16.msra.mxu2 %v3342_v45  ;;  %v3283_v61 = vld [vmem:[%s5151_s18 + $0x58] sm:$0xf0]  ;;  %v3370_v45 = vor.u32 %v3959_v37, %v3369_v36  ;;  %v3314_v59 = vor.u32 %v3944_v54, %v3313_v53  ;;  %v4007_v36 = vld [vmem:[%s5153_s20 + $0x170] sm:$0xff]  ;;  %v4014_v41 = vld [vmem:[%s5153_s20 + $0x1a8] sm:$0xff] }
 0x5d0   : > { %v3286_v62 = vor.u32 %v3932_v60, %v3283_v61  ;;  %v3318_v60 = vor.u32 %v3936_v55, %v3315_v56  ;;  %v3968_v61 = vld [vmem:[%s5153_s20 + $0x38] sm:$0xff]  ;;  %v4015_v37 = vld [vmem:[%s5153_s20 + $0x1b0] sm:$0xff]  ;;  %v3994_v53 = vld [vmem:[%s5153_s20 + $0x108] sm:$0xff] }
 0x5d1   : > { %v1237_v3 = vadd.f32 %v4123_v0, %v1233_v2  ;;  %v3996_v47 = vld [vmem:[%s5153_s20 + $0x118] sm:$0xff]  ;;  %v4018_v54 = vld [vmem:[%s5153_s20 + $0x1c8] sm:$0xff]  ;;  %v4003_v55 = vld [vmem:[%s5153_s20 + $0x150] sm:$0xff] }
 0x5d2   : > { %1637 = vmatpush.bf16.msrb.mxu0 %v3286_v62  ;;  %v3992_v62 = vld [vmem:[%s5153_s20 + $0xf8] sm:$0xff]  ;;  %v4011_v56 = vld [vmem:[%s5153_s20 + $0x190] sm:$0xff] }
 0x5d3   : > { %v1274_v4 = vadd.f32 %v1273_v1, %v1237_v3  ;;  %1611 = vmatpush.bf16.msra.mxu2 %v3278_v58  ;;  %v3310_v58 = vor.u32 %v3935_v51, %v3307_v52  ;;  %v4020_v48 = vld [vmem:[%s5153_s20 + $0x1d8] sm:$0xff] }
 0x5d4   : > { %v4004_v51 = vld [vmem:[%s5153_s20 + $0x158] sm:$0xff] }
 0x5d5   : > { %v1277_v5 = vsel %vm840_vm0, %v1274_v4, 0.0  ;;  %v4012_v52 = vld [vmem:[%s5153_s20 + $0x198] sm:$0xff] }
 0x5d6   : > { %1278 = vadd.xlane.f32.xlu0 %v1277_v5  ;;  %v4124_v5 = vld [vmem:[%s5149_s16] ss:$0 sm:$0xff] }
 0x649   : > { %v1279_v7 = vpop.xlane.xlu0 %1278 }
 0x64a   : > { %v1280_v8 = vmul.f32 %v1279_v7, %v4436_v42 }
 0x64c   : > { %v4452_v9 = vsub.f32 %v1274_v4, %v1280_v8  ;;  %v4125_v8 = vld [vmem:[%s5150_s17] ss:$0 sm:$0xff] }
 0x64e   : > { %v1282_v10 = vmul.f32 %v4452_v9, %v4452_v9 }
 0x650   : > { %v1283_v11 = vsel %vm840_vm0, %v1282_v10, 0.0 }
 0x651   : > { %1284 = vadd.xlane.f32.xlu1 %v1283_v11 }
 0x6c4   : > { %v1285_v6 = vpop.xlane.xlu1 %1284 }
 0x6c5   : > { %v1286_v39 = vmul.f32 %v1285_v6, %v4436_v42  ;;  %v3302_v6 = vor.u32 %v3934_v31, %v3299_v32  ;;  %v3969_v31 = vld [vmem:[%s5153_s20 + $0x40] sm:$0xff] }
 0x6c6   : > { %v3977_v32 = vld [vmem:[%s5153_s20 + $0x80] sm:$0xff] }
 0x6c7   : > { %v1287_v50 = vadd.f32 1e-05, %v1286_v39  ;;  %v3371_v39 = vld [vmem:[%s5151_s18 + $0xf0] sm:$0xf0] }
 0x6c8   : > { %v3374_v46 = vor.u32 %v3951_v38, %v3371_v39  ;;  %v3998_v38 = vld [vmem:[%s5153_s20 + $0x128] sm:$0xff] }
 0x6c9   : > { %4141 = vrsqrt.f32 %v1287_v50  ;;  %vm1294_vm9 = vweird.f32 %v1287_v50  ;;  %v4022_v39 = vld [vmem:[%s5153_s20 + $0x1e8] sm:$0xff] }
 0x6cf   : > { %v4142_v63 = vpop.eup %4141 }
 0x6d0   : > { %v1289_v0 = vmul.f32 %v4142_v63, %v1287_v50  ;;  %vm1295_vm8 = vweird.f32 %v4142_v63  ;;  %v3382_v50 = vor.u32 %v3952_v43, %v3379_v44  ;;  %v3997_v43 = vld [vmem:[%s5153_s20 + $0x120] sm:$0xff] }
 0x6d1   : > { %vm1296_vm10 = vmor %vm1294_vm9, %vm1295_vm8  ;;  %v4021_v44 = vld [vmem:[%s5153_s20 + $0x1e0] sm:$0xff] }
 0x6d2   : > { %v1290_v1 = vmul.f32 %v4142_v63, %v1289_v0  ;;  %v3984_v0 = vld [vmem:[%s5153_s20 + $0xb8] sm:$0xff] }
 0x6d4   : > { %v1291_v2 = vmul.f32 0.5, %v1290_v1  ;;  %v3967_v1 = vld [vmem:[%s5153_s20 + $0x30] sm:$0xff] }
 0x6d6   : > { %v1292_v3 = vsub.f32 1.5, %v1291_v2  ;;  %v3991_v2 = vld [vmem:[%s5153_s20 + $0xf0] sm:$0xff] }
 0x6d8   : > { %v1293_v4 = vmul.f32 %v4142_v63, %v1292_v3  ;;  %v3975_v3 = vld [vmem:[%s5153_s20 + $0x70] sm:$0xff] }
 0x6da   : > { %v1297_v7 = vsel %vm1296_vm10, %v4142_v63, %v1293_v4  ;;  %v3976_v63 = vld [vmem:[%s5153_s20 + $0x78] sm:$0xff]  ;;  %v3983_v4 = vld [vmem:[%s5153_s20 + $0xb0] sm:$0xff] }
 0x6db   : > { %v1298_v10 = vmul.f32 %v1297_v7, %v4452_v9  ;;  %v3361_v9 = vld [vmem:[%s5151_s18 + $0xa8] sm:$0xf] }
 0x6dc   : > { %v3362_v25 = vor.u32 %v3958_v17, %v3361_v9  ;;  %v3990_v7 = vld [vmem:[%s5153_s20 + $0xe8] sm:$0xff]  ;;  %v3988_v9 = vld [vmem:[%s5153_s20 + $0xd8] sm:$0xff] }
 0x6dd   : > { %v1302_v11 = vmul.f32 %v4124_v5, %v1298_v10  ;;  %v3966_v5 = vld [vmem:[%s5153_s20 + $0x28] sm:$0xff]  ;;  %v3972_v17 = vld [vmem:[%s5153_s20 + $0x58] sm:$0xff] }
 0x6de   : > { %v3982_v10 = vld [vmem:[%s5153_s20 + $0xa8] sm:$0xff] }
 0x6df   : > { %v4576_v16 = vadd.f32 %v4125_v8, %v1302_v11  ;;  %v3974_v8 = vld [vmem:[%s5153_s20 + $0x68] sm:$0xff]  ;;  %v3965_v11 = vld [vmem:[%s5153_s20 + $0x20] sm:$0xff] }
 0x6e1   : > { %v4589_v20 = vpack.c.bf16 %v4576_v16, %v4576_v16 }
 0x6e3   : > { %3383 = vmatmul.msk.bf16.vlgmr.msrb.gmra.mxu1 %vm840_vm0, %v4589_v20  ;;  %3384 = vmatmul.msk.bf16.vlgmr.msrb.gmra.mxu2 %vm840_vm0, %v4589_v20 }
 0x6e4   : > { %3385 = vmatmul.msk.bf16.vlgmr.msrb.gmra.mxu3 %vm840_vm0, %v4589_v20  ;;  %3386 = vmatmul.msk.bf16.vlgmr.msra.gmra.mxu0 %vm840_vm0, %v4589_v20 }
 0x6e5   : > { %1649 = vmatpush.bf16.msrb.mxu1 %v3354_v21  ;;  %1662 = vmatpush.bf16.msrb.mxu2 %v3358_v22  ;;  %v3987_v21 = vld [vmem:[%s5153_s20 + $0xd0] sm:$0xff] }
 0x6e6   : > { %1675 = vmatpush.bf16.msrb.mxu3 %v3362_v25  ;;  %1688 = vmatpush.bf16.msra.mxu0 %v3366_v26  ;;  %v3971_v22 = vld [vmem:[%s5153_s20 + $0x50] sm:$0xff]  ;;  %v3970_v25 = vld [vmem:[%s5153_s20 + $0x48] sm:$0xff] }
 0x6e7   : > { %v3978_v26 = vld [vmem:[%s5153_s20 + $0x88] sm:$0xff] }
 0x6e9   : > { %1650 = vmatpush.bf16.msrb.mxu1 %v3290_v33  ;;  %1663 = vmatpush.bf16.msrb.mxu2 %v3294_v34  ;;  %v4008_v33 = vld [vmem:[%s5153_s20 + $0x178] sm:$0xff] }
 0x6ea   : > { %1676 = vmatpush.bf16.msrb.mxu3 %v3298_v35  ;;  %1689 = vmatpush.bf16.msra.mxu0 %v3302_v6  ;;  %v4016_v34 = vld [vmem:[%s5153_s20 + $0x1b8] sm:$0xff]  ;;  %v3999_v35 = vld [vmem:[%s5153_s20 + $0x130] sm:$0xff] }
 0x6eb   : > { %v4023_v6 = vld [vmem:[%s5153_s20 + $0x1f0] sm:$0xff] }
 0x6f3   : > { %3387 = vmatmul.msk.bf16.vlgmr.msra.gmra.mxu1 %vm840_vm0, %v4589_v20  ;;  %3388 = vmatmul.msk.bf16.vlgmr.msra.gmra.mxu2 %vm840_vm0, %v4589_v20 }
 0x6f4   : > { %3389 = vmatmul.msk.bf16.vlgmr.msra.gmra.mxu3 %vm840_vm0, %v4589_v20  ;;  %3390 = vmatmul.msk.bf16.vlgmr.msrb.gmra.mxu0 %vm840_vm0, %v4589_v20 }
 0x6f5   : > { %1701 = vmatpush.bf16.msra.mxu1 %v3370_v45  ;;  %1714 = vmatpush.bf16.msra.mxu2 %v3374_v46  ;;  %v4005_v45 = vld [vmem:[%s5153_s20 + $0x160] sm:$0xff] }
 0x6f6   : > { %1727 = vmatpush.bf16.msra.mxu3 %v3378_v49  ;;  %1740 = vmatpush.bf16.msrb.mxu0 %v3382_v50  ;;  %v4013_v46 = vld [vmem:[%s5153_s20 + $0x1a0] sm:$0xff]  ;;  %v3995_v49 = vld [vmem:[%s5153_s20 + $0x110] sm:$0xff] }
 0x6f7   : > { %v4019_v50 = vld [vmem:[%s5153_s20 + $0x1d0] sm:$0xff] }
 0x6f9   : > { %1702 = vmatpush.bf16.msra.mxu1 %v3306_v57  ;;  %1715 = vmatpush.bf16.msra.mxu2 %v3310_v58  ;;  %v3993_v57 = vld [vmem:[%s5153_s20 + $0x100] sm:$0xff] }
 0x6fa   : > { %1728 = vmatpush.bf16.msra.mxu3 %v3314_v59  ;;  %1741 = vmatpush.bf16.msrb.mxu0 %v3318_v60  ;;  %v4017_v58 = vld [vmem:[%s5153_s20 + $0x1c0] sm:$0xff]  ;;  %v4002_v59 = vld [vmem:[%s5153_s20 + $0x148] sm:$0xff] }
 0x6fb   : > { %v4010_v60 = vld [vmem:[%s5153_s20 + $0x188] sm:$0xff] }
 0x703   : > { %3391 = vmatmul.msk.bf16.vlgmr.msrb.gmra.mxu1 %vm840_vm0, %v4589_v20  ;;  %3392 = vmatmul.msk.bf16.vlgmr.msrb.gmra.mxu2 %vm840_vm0, %v4589_v20 }
 0x704   : > { %3393 = vmatmul.msk.bf16.vlgmr.msrb.gmra.mxu3 %vm840_vm0, %v4589_v20  ;;  %3394 = vmatmul.msk.bf16.vlgmr.msra.gmra.mxu0 %vm840_vm0, %v4589_v20 }
 0x705   : > { %2807 = vmatpush.bf16.msrb.mxu1 %v3968_v61  ;;  %2846 = vmatpush.bf16.msra.mxu0 %v3992_v62  ;;  %v4001_v61 = vld [vmem:[%s5153_s20 + $0x140] sm:$0xff] }
 0x706   : > { %2820 = vmatpush.bf16.msrb.mxu2 %v3976_v63  ;;  %2833 = vmatpush.bf16.msrb.mxu3 %v3984_v0  ;;  %v4009_v62 = vld [vmem:[%s5153_s20 + $0x180] sm:$0xff] }
 0x707   : > { %v4890_v63 = vld [vmem:[%s5152_s19] sm:$0xff] }
 0x708   : > { %v1344_v0 = vperm.slane %v4890_v63, 0 }
 0x709   : > { %2808 = vmatpush.bf16.msrb.mxu1 %v3967_v1  ;;  %2847 = vmatpush.bf16.msra.mxu0 %v3991_v2  ;;  %v1347_v1 = vperm.slane %v4890_v63, 3 }
 0x70a   : > { %2821 = vmatpush.bf16.msrb.mxu2 %v3975_v3  ;;  %2834 = vmatpush.bf16.msrb.mxu3 %v3983_v4 }
 0x70d   : > { %2809 = vmatpush.bf16.msrb.mxu1 %v3966_v5  ;;  %2848 = vmatpush.bf16.msra.mxu0 %v3990_v7 }
 0x70e   : > { %2822 = vmatpush.bf16.msrb.mxu2 %v3974_v8  ;;  %2835 = vmatpush.bf16.msrb.mxu3 %v3982_v10  ;;  %v1345_v8 = vperm.slane %v4890_v63, 1 }
 0x711   : > { %2810 = vmatpush.bf16.msrb.mxu1 %v3965_v11  ;;  %2849 = vmatpush.bf16.msra.mxu0 %v3989_v12  ;;  %v1346_v11 = vperm.slane %v4890_v63, 2  ;;  %v4032_v12 = vld [vmem:[%s5153_s20 + $0x238] sm:$0xff] }
 0x712   : > { %2823 = vmatpush.bf16.msrb.mxu2 %v3973_v13  ;;  %2836 = vmatpush.bf16.msrb.mxu3 %v3981_v14  ;;  %v4056_v14 = vld [vmem:[%s5153_s20 + $0x2f8] sm:$0xff] }
 0x713   : > { %3395 = vmatmul.msk.bf16.vlgmr.msra.gmra.mxu1 %vm840_vm0, %v4589_v20  ;;  %3396 = vmatmul.msk.bf16.vlgmr.msra.gmra.mxu2 %vm840_vm0, %v4589_v20 }
 0x714   : > { %3397 = vmatmul.msk.bf16.vlgmr.msra.gmra.mxu3 %vm840_vm0, %v4589_v20  ;;  %3398 = vmatmul.msk.bf16.vlgmr.msrb.gmra.mxu0 %vm840_vm0, %v4589_v20  ;;  %v3979_v20 = vld [vmem:[%s5153_s20 + $0x90] sm:$0xff] }
 0x715   : > { %2811 = vmatpush.bf16.msrb.mxu1 %v3964_v15  ;;  %2850 = vmatpush.bf16.msra.mxu0 %v3988_v9 }
 0x716   : > { %2824 = vmatpush.bf16.msrb.mxu2 %v3972_v17  ;;  %2837 = vmatpush.bf16.msrb.mxu3 %v3980_v18 }
 0x719   : > { %2812 = vmatpush.bf16.msrb.mxu1 %v3963_v19  ;;  %2851 = vmatpush.bf16.msra.mxu0 %v3987_v21 }
 0x71a   : > { %2825 = vmatpush.bf16.msrb.mxu2 %v3971_v22  ;;  %2838 = vmatpush.bf16.msrb.mxu3 %v3979_v20  ;;  %v4031_v22 = vld [vmem:[%s5153_s20 + $0x230] sm:$0xff] }
 0x71d   : > { %2813 = vmatpush.bf16.msrb.mxu1 %v3962_v23  ;;  %2852 = vmatpush.bf16.msra.mxu0 %v3986_v24  ;;  %v4055_v24 = vld [vmem:[%s5153_s20 + $0x2f0] sm:$0xff] }
 0x71e   : > { %2826 = vmatpush.bf16.msrb.mxu2 %v3970_v25  ;;  %2839 = vmatpush.bf16.msrb.mxu3 %v3978_v26  ;;  %v4040_v26 = vld [vmem:[%s5153_s20 + $0x278] sm:$0xff] }
 0x721   : > { %2814 = vmatpush.bf16.msrb.mxu1 %v3961_v27  ;;  %2853 = vmatpush.bf16.msra.mxu0 %v3985_v28  ;;  %v4048_v28 = vld [vmem:[%s5153_s20 + $0x2b8] sm:$0xff] }
 0x722   : > { %2827 = vmatpush.bf16.msrb.mxu2 %v3969_v31  ;;  %2840 = vmatpush.bf16.msrb.mxu3 %v3977_v32  ;;  %v4054_v31 = vld [vmem:[%s5153_s20 + $0x2e8] sm:$0xff]  ;;  %v1348_v32 = vperm.slane %v4890_v63, 4 }
 0x725   : > { %2859 = vmatpush.bf16.msra.mxu1 %v4000_v29  ;;  %2898 = vmatpush.bf16.msrb.mxu0 %v4024_v30  ;;  %v4030_v30 = vld [vmem:[%s5153_s20 + $0x228] sm:$0xff] }
 0x726   : > { %2872 = vmatpush.bf16.msra.mxu2 %v4008_v33  ;;  %2885 = vmatpush.bf16.msra.mxu3 %v4016_v34  ;;  %v1351_v34 = vperm.slane %v4890_v63, 7 }
 0x729   : > { %2860 = vmatpush.bf16.msra.mxu1 %v3999_v35  ;;  %2899 = vmatpush.bf16.msrb.mxu0 %v4023_v6  ;;  %v4039_v35 = vld [vmem:[%s5153_s20 + $0x270] sm:$0xff] }
 0x72a   : > { %2873 = vmatpush.bf16.msra.mxu2 %v4007_v36  ;;  %2886 = vmatpush.bf16.msra.mxu3 %v4015_v37  ;;  %v4047_v36 = vld [vmem:[%s5153_s20 + $0x2b0] sm:$0xff] }
 0x72d   : > { %2861 = vmatpush.bf16.msra.mxu1 %v3998_v38  ;;  %2900 = vmatpush.bf16.msrb.mxu0 %v4022_v39  ;;  %v4029_v38 = vld [vmem:[%s5153_s20 + $0x220] sm:$0xff] }
 0x72e   : > { %2874 = vmatpush.bf16.msra.mxu2 %v4006_v40  ;;  %2887 = vmatpush.bf16.msra.mxu3 %v4014_v41  ;;  %v4053_v41 = vld [vmem:[%s5153_s20 + $0x2e0] sm:$0xff] }
 0x731   : > { %2862 = vmatpush.bf16.msra.mxu1 %v3997_v43  ;;  %2901 = vmatpush.bf16.msrb.mxu0 %v4021_v44  ;;  %v4038_v44 = vld [vmem:[%s5153_s20 + $0x268] sm:$0xff] }
 0x732   : > { %2875 = vmatpush.bf16.msra.mxu2 %v4005_v45  ;;  %2888 = vmatpush.bf16.msra.mxu3 %v4013_v46  ;;  %v4046_v46 = vld [vmem:[%s5153_s20 + $0x2a8] sm:$0xff] }
 0x735   : > { %2863 = vmatpush.bf16.msra.mxu1 %v3996_v47  ;;  %2902 = vmatpush.bf16.msrb.mxu0 %v4020_v48  ;;  %v1349_v47 = vperm.slane %v4890_v63, 5 }
 0x736   : > { %2876 = vmatpush.bf16.msra.mxu2 %v4004_v51  ;;  %2889 = vmatpush.bf16.msra.mxu3 %v4012_v52  ;;  %v4052_v52 = vld [vmem:[%s5153_s20 + $0x2d8] sm:$0xff] }
 0x739   : > { %2864 = vmatpush.bf16.msra.mxu1 %v3995_v49  ;;  %2903 = vmatpush.bf16.msrb.mxu0 %v4019_v50  ;;  %v1350_v49 = vperm.slane %v4890_v63, 6  ;;  %v4028_v50 = vld [vmem:[%s5153_s20 + $0x218] sm:$0xff] }
 0x73a   : > { %2877 = vmatpush.bf16.msra.mxu2 %v4003_v55  ;;  %2890 = vmatpush.bf16.msra.mxu3 %v4011_v56  ;;  %v4037_v55 = vld [vmem:[%s5153_s20 + $0x260] sm:$0xff] }
 0x73d   : > { %2865 = vmatpush.bf16.msra.mxu1 %v3994_v53  ;;  %2904 = vmatpush.bf16.msrb.mxu0 %v4018_v54 }
 0x73e   : > { %2878 = vmatpush.bf16.msra.mxu2 %v4002_v59  ;;  %2891 = vmatpush.bf16.msra.mxu3 %v4010_v60 }
 0x741   : > { %2866 = vmatpush.bf16.msra.mxu1 %v3993_v57  ;;  %2905 = vmatpush.bf16.msrb.mxu0 %v4017_v58  ;;  %v4045_v58 = vld [vmem:[%s5153_s20 + $0x2a0] sm:$0xff] }
 0x742   : > { %2879 = vmatpush.bf16.msra.mxu2 %v4001_v61  ;;  %2892 = vmatpush.bf16.msra.mxu3 %v4009_v62  ;;  %v4027_v61 = vld [vmem:[%s5153_s20 + $0x210] sm:$0xff] }
 0x760   : > { %v1548_v2 = vpop.f32.mrf.mxu1 }
 0x761   : > { %v1549_v3 = vadd.f32 %v1548_v2, %v1344_v0  ;;  %v1587_v4 = vpop.f32.mrf.mxu0  ;;  %v4051_v0 = vld [vmem:[%s5153_s20 + $0x2d0] sm:$0xff]  ;;  %v4036_v2 = vld [vmem:[%s5153_s20 + $0x258] sm:$0xff] }
 0x762   : > { %v1588_v5 = vadd.f32 %v1587_v4, %v1347_v1 }
 0x763   : > { %v1747_v7 = vmax.f32 %v1549_v3, 0.0  ;;  %v4966_v3 = vld [vmem:[%s5152_s19 + $0x8] sm:$0xff] }
 0x764   : > { %v1750_v10 = vmax.f32 %v1588_v5, 0.0  ;;  %v4044_v5 = vld [vmem:[%s5153_s20 + $0x298] sm:$0xff] }
 0x765   : > { %v1763_v13 = vpack.c.bf16 %v1747_v7, %v1747_v7 }
 0x766   : > { %v1766_v15 = vpack.c.bf16 %v1750_v10, %v1750_v10  ;;  %v1561_v9 = vpop.f32.mrf.mxu2  ;;  %v4050_v10 = vld [vmem:[%s5153_s20 + $0x2c8] sm:$0xff] }
 0x767   : > { %v1562_v17 = vadd.f32 %v1561_v9, %v1345_v8  ;;  %v1574_v18 = vpop.f32.mrf.mxu3  ;;  %2815 = vmatmul.bf16.vlgmr.msrb.gmra.mxu1 %v1763_v13  ;;  %v4026_v8 = vld [vmem:[%s5153_s20 + $0x208] sm:$0xff]  ;;  %v1355_v13 = vperm.slane %v4966_v3, 3  ;;  %v4043_v9 = vld [vmem:[%s5153_s20 + $0x290] sm:$0xff] }
 0x768   : > { %v1575_v19 = vadd.f32 %v1574_v18, %v1346_v11  ;;  %2854 = vmatmul.bf16.vlgmr.msra.gmra.mxu0 %v1766_v15  ;;  %2911 = vmatpush.bf16.msrb.mxu1 %v4032_v12  ;;  %v1550_v21 = vpop.f32.mrf.mxu1  ;;  %v1352_v11 = vperm.slane %v4966_v3, 0  ;;  %v4025_v18 = vld [vmem:[%s5153_s20 + $0x200] sm:$0xff] }
 0x769   : > { %v1748_v20 = vmax.f32 %v1562_v17, 0.0  ;;  %2950 = vmatpush.bf16.msra.mxu0 %v4056_v14  ;;  %v1589_v23 = vpop.f32.mrf.mxu0  ;;  %v4035_v14 = vld [vmem:[%s5153_s20 + $0x250] sm:$0xff] }
 0x76a   : > { %v1749_v25 = vmax.f32 %v1575_v19, 0.0 }
 0x76b   : > { %v1764_v27 = vpack.c.bf16 %v1748_v20, %v1748_v20  ;;  %v4064_v20 = vld [vmem:[%s5153_s20 + $0x338] sm:$0xff] }
 0x76c   : > { %v1765_v29 = vpack.c.bf16 %v1749_v25, %v1749_v25  ;;  %2912 = vmatpush.bf16.msrb.mxu1 %v4031_v22  ;;  %v4049_v22 = vld [vmem:[%s5153_s20 + $0x2c0] sm:$0xff]  ;;  %v4034_v25 = vld [vmem:[%s5153_s20 + $0x248] sm:$0xff] }
 0x76d   : > { %2951 = vmatpush.bf16.msra.mxu0 %v4055_v24  ;;  %2828 = vmatmul.bf16.vlgmr.msrb.gmra.mxu2 %v1764_v27  ;;  %v4088_v24 = vld [vmem:[%s5153_s20 + $0x3f8] sm:$0xff]  ;;  %v4042_v27 = vld [vmem:[%s5153_s20 + $0x288] sm:$0xff] }
 0x76e   : > { %2841 = vmatmul.bf16.vlgmr.msrb.gmra.mxu3 %v1765_v29  ;;  %2924 = vmatpush.bf16.msrb.mxu2 %v4040_v26  ;;  %v1563_v33 = vpop.f32.mrf.mxu2 }
 0x76f   : > { %2937 = vmatpush.bf16.msrb.mxu3 %v4048_v28  ;;  %v1576_v6 = vpop.f32.mrf.mxu3  ;;  %v1353_v28 = vperm.slane %v4966_v3, 1 }
 0x770   : > { %2913 = vmatpush.bf16.msrb.mxu1 %v4030_v30  ;;  %v1600_v37 = vpop.f32.mrf.mxu1  ;;  %v1354_v30 = vperm.slane %v4966_v3, 2  ;;  %v4033_v6 = vld [vmem:[%s5153_s20 + $0x240] sm:$0xff] }
 0x771   : > { %2952 = vmatpush.bf16.msra.mxu0 %v4054_v31  ;;  %v1601_v39 = vadd.f32 %v1600_v37, %v1348_v32  ;;  %v1639_v40 = vpop.f32.mrf.mxu0  ;;  %v4063_v32 = vld [vmem:[%s5153_s20 + $0x330] sm:$0xff] }
 0x772   : > { %v1640_v43 = vadd.f32 %v1639_v40, %v1351_v34  ;;  %2925 = vmatpush.bf16.msrb.mxu2 %v4039_v35  ;;  %v4087_v35 = vld [vmem:[%s5153_s20 + $0x3f0] sm:$0xff] }
 0x773   : > { %v1751_v45 = vmax.f32 %v1601_v39, 0.0  ;;  %2938 = vmatpush.bf16.msrb.mxu3 %v4047_v36  ;;  %v4072_v39 = vld [vmem:[%s5153_s20 + $0x378] sm:$0xff] }
 0x774   : > { %v1754_v48 = vmax.f32 %v1640_v43, 0.0  ;;  %2914 = vmatpush.bf16.msrb.mxu1 %v4029_v38  ;;  %v4041_v38 = vld [vmem:[%s5153_s20 + $0x280] sm:$0xff]  ;;  %v4080_v43 = vld [vmem:[%s5153_s20 + $0x3b8] sm:$0xff] }
 0x775   : > { %v1767_v51 = vpack.c.bf16 %v1751_v45, %v1751_v45  ;;  %2953 = vmatpush.bf16.msra.mxu0 %v4053_v41 }
 0x776   : > { %v1770_v53 = vpack.c.bf16 %v1754_v48, %v1754_v48  ;;  %2926 = vmatpush.bf16.msrb.mxu2 %v4038_v44  ;;  %v1613_v54 = vpop.f32.mrf.mxu2  ;;  %v4086_v48 = vld [vmem:[%s5153_s20 + $0x3e8] sm:$0xff] }
 0x777   : > { %2939 = vmatpush.bf16.msrb.mxu3 %v4046_v46  ;;  %v1614_v56 = vadd.f32 %v1613_v54, %v1349_v47  ;;  %v1626_v57 = vpop.f32.mrf.mxu3  ;;  %2867 = vmatmul.bf16.vlgmr.msra.gmra.mxu1 %v1767_v51  ;;  %v4062_v46 = vld [vmem:[%s5153_s20 + $0x328] sm:$0xff] }
 0x778   : > { %v1627_v59 = vadd.f32 %v1626_v57, %v1350_v49  ;;  %2906 = vmatmul.bf16.vlgmr.msrb.gmra.mxu0 %v1770_v53  ;;  %2915 = vmatpush.bf16.msrb.mxu1 %v4028_v50  ;;  %v1602_v60 = vpop.f32.mrf.mxu1  ;;  %v4071_v50 = vld [vmem:[%s5153_s20 + $0x370] sm:$0xff]  ;;  %v4061_v53 = vld [vmem:[%s5153_s20 + $0x320] sm:$0xff]  ;;  %v4070_v57 = vld [vmem:[%s5153_s20 + $0x368] sm:$0xff] }
 0x779   : > { %v1752_v62 = vmax.f32 %v1614_v56, 0.0  ;;  %2954 = vmatpush.bf16.msra.mxu0 %v4052_v52  ;;  %v1641_v63 = vpop.f32.mrf.mxu0  ;;  %v4079_v52 = vld [vmem:[%s5153_s20 + $0x3b0] sm:$0xff] }
 0x77a   : > { %v1753_v1 = vmax.f32 %v1627_v59, 0.0  ;;  %2927 = vmatpush.bf16.msrb.mxu2 %v4037_v55  ;;  %v4085_v55 = vld [vmem:[%s5153_s20 + $0x3e0] sm:$0xff]  ;;  %v4078_v59 = vld [vmem:[%s5153_s20 + $0x3a8] sm:$0xff] }
 0x77b   : > { %v1768_v4 = vpack.c.bf16 %v1752_v62, %v1752_v62  ;;  %2940 = vmatpush.bf16.msrb.mxu3 %v4045_v58  ;;  %v4084_v62 = vld [vmem:[%s5153_s20 + $0x3d8] sm:$0xff]  ;;  %v4069_v63 = vld [vmem:[%s5153_s20 + $0x360] sm:$0xff] }
 0x77c   : > { %v1769_v7 = vpack.c.bf16 %v1753_v1, %v1753_v1  ;;  %2916 = vmatpush.bf16.msrb.mxu1 %v4027_v61  ;;  %v4060_v61 = vld [vmem:[%s5153_s20 + $0x318] sm:$0xff]  ;;  %v4059_v1 = vld [vmem:[%s5153_s20 + $0x310] sm:$0xff] }
 0x77d   : > { %2955 = vmatpush.bf16.msra.mxu0 %v4051_v0  ;;  %2880 = vmatmul.bf16.vlgmr.msra.gmra.mxu2 %v1768_v4  ;;  %v4077_v0 = vld [vmem:[%s5153_s20 + $0x3a0] sm:$0xff] }
 0x77e   : > { %2893 = vmatmul.bf16.vlgmr.msra.gmra.mxu3 %v1769_v7  ;;  %2928 = vmatpush.bf16.msrb.mxu2 %v4036_v2  ;;  %v1615_v12 = vpop.f32.mrf.mxu2  ;;  %v1356_v2 = vperm.slane %v4966_v3, 4  ;;  %v1359_v7 = vperm.slane %v4966_v3, 7 }
 0x77f   : > { %2941 = vmatpush.bf16.msrb.mxu3 %v4044_v5  ;;  %v1628_v15 = vpop.f32.mrf.mxu3  ;;  %v4083_v5 = vld [vmem:[%s5153_s20 + $0x3d0] sm:$0xff]  ;;  %v4076_v12 = vld [vmem:[%s5153_s20 + $0x398] sm:$0xff] }
 0x780   : > { %2917 = vmatpush.bf16.msrb.mxu1 %v4026_v8  ;;  %v1652_v17 = vpop.f32.mrf.mxu1 }
 0x781   : > { %2956 = vmatpush.bf16.msra.mxu0 %v4050_v10  ;;  %v1653_v19 = vadd.f32 %v1652_v17, %v1352_v11  ;;  %v1691_v21 = vpop.f32.mrf.mxu0  ;;  %v4068_v10 = vld [vmem:[%s5153_s20 + $0x358] sm:$0xff] }
 0x782   : > { %v1692_v23 = vadd.f32 %v1691_v21, %v1355_v13  ;;  %2929 = vmatpush.bf16.msrb.mxu2 %v4035_v14  ;;  %v4058_v14 = vld [vmem:[%s5153_s20 + $0x308] sm:$0xff]  ;;  %v4075_v21 = vld [vmem:[%s5153_s20 + $0x390] sm:$0xff] }
 0x783   : > { %v1755_v26 = vmax.f32 %v1653_v19, 0.0  ;;  %2942 = vmatpush.bf16.msrb.mxu3 %v4043_v9  ;;  %v4082_v9 = vld [vmem:[%s5153_s20 + $0x3c8] sm:$0xff]  ;;  %v1357_v19 = vperm.slane %v4966_v3, 5 }
 0x784   : > { %v1758_v29 = vmax.f32 %v1692_v23, 0.0  ;;  %2918 = vmatpush.bf16.msrb.mxu1 %v4025_v18  ;;  %v4067_v18 = vld [vmem:[%s5153_s20 + $0x350] sm:$0xff] }
 0x785   : > { %v1771_v31 = vpack.c.bf16 %v1755_v26, %v1755_v26  ;;  %2957 = vmatpush.bf16.msra.mxu0 %v4049_v22  ;;  %v1358_v22 = vperm.slane %v4966_v3, 6 }
 0x786   : > { %v1774_v33 = vpack.c.bf16 %v1758_v29, %v1758_v29  ;;  %2930 = vmatpush.bf16.msrb.mxu2 %v4034_v25  ;;  %v1665_v34 = vpop.f32.mrf.mxu2  ;;  %v4081_v25 = vld [vmem:[%s5153_s20 + $0x3c0] sm:$0xff]  ;;  %v4074_v29 = vld [vmem:[%s5153_s20 + $0x388] sm:$0xff] }
 0x787   : > { %2943 = vmatpush.bf16.msrb.mxu3 %v4042_v27  ;;  %v1666_v36 = vadd.f32 %v1665_v34, %v1353_v28  ;;  %v1678_v37 = vpop.f32.mrf.mxu3  ;;  %2919 = vmatmul.bf16.vlgmr.msrb.gmra.mxu1 %v1771_v31  ;;  %v4066_v28 = vld [vmem:[%s5153_s20 + $0x348] sm:$0xff] }
 0x788   : > { %2963 = vmatpush.bf16.msra.mxu1 %v4064_v20  ;;  %v1679_v40 = vadd.f32 %v1678_v37, %v1354_v30  ;;  %2958 = vmatmul.bf16.vlgmr.msra.gmra.mxu0 %v1774_v33  ;;  %v1654_v41 = vpop.f32.mrf.mxu1  ;;  %v4057_v20 = vld [vmem:[%s5153_s20 + $0x300] sm:$0xff] }
 0x789   : > { %3002 = vmatpush.bf16.msrb.mxu0 %v4088_v24  ;;  %v1756_v44 = vmax.f32 %v1666_v36, 0.0  ;;  %v1693_v45 = vpop.f32.mrf.mxu0  ;;  %v4065_v33 = vld [vmem:[%s5153_s20 + $0x340] sm:$0xff] }
 0x78a   : > { %v1757_v47 = vmax.f32 %v1679_v40, 0.0  ;;  %2931 = vmatpush.bf16.msrb.mxu2 %v4033_v6 }
 0x78b   : > { %v1772_v49 = vpack.c.bf16 %v1756_v44, %v1756_v44  ;;  %2944 = vmatpush.bf16.msrb.mxu3 %v4041_v38 }
 0x78c   : > { %2964 = vmatpush.bf16.msra.mxu1 %v4063_v32  ;;  %v1773_v51 = vpack.c.bf16 %v1757_v47, %v1757_v47 }
 0x78d   : > { %3003 = vmatpush.bf16.msrb.mxu0 %v4087_v35  ;;  %2932 = vmatmul.bf16.vlgmr.msrb.gmra.mxu2 %v1772_v49  ;;  %v4073_v35 = vld [vmem:[%s5153_s20 + $0x380] sm:$0xff] }
 0x78e   : > { %2976 = vmatpush.bf16.msra.mxu2 %v4072_v39  ;;  %2945 = vmatmul.bf16.vlgmr.msrb.gmra.mxu3 %v1773_v51  ;;  %v1667_v54 = vpop.f32.mrf.mxu2  ;;  %v4126_v51 = vld [vmem:[%s5154_s21] ss:$0 sm:$0xff] }
 0x78f   : > { %2989 = vmatpush.bf16.msra.mxu3 %v4080_v43  ;;  %v1680_v56 = vpop.f32.mrf.mxu3 }
 0x790   : > { %2965 = vmatpush.bf16.msra.mxu1 %v4062_v46  ;;  %v1704_v58 = vpop.f32.mrf.mxu1 }
 0x791   : > { %3004 = vmatpush.bf16.msrb.mxu0 %v4086_v48  ;;  %v1743_v60 = vpop.f32.mrf.mxu0  ;;  %v1705_v15 = vadd.f32 %v1704_v58, %v1356_v2 }
 0x792   : > { %2977 = vmatpush.bf16.msra.mxu2 %v4071_v50  ;;  %v1744_v17 = vadd.f32 %v1743_v60, %v1359_v7 }
 0x793   : > { %2990 = vmatpush.bf16.msra.mxu3 %v4079_v52  ;;  %v1759_v23 = vmax.f32 %v1705_v15, 0.0 }
 0x794   : > { %2966 = vmatpush.bf16.msra.mxu1 %v4061_v53  ;;  %v1762_v26 = vmax.f32 %v1744_v17, 0.0 }
 0x795   : > { %3005 = vmatpush.bf16.msrb.mxu0 %v4085_v55  ;;  %v1775_v31 = vpack.c.bf16 %v1759_v23, %v1759_v23 }
 0x796   : > { %2978 = vmatpush.bf16.msra.mxu2 %v4070_v57  ;;  %v1717_v4 = vpop.f32.mrf.mxu2  ;;  %v1778_v32 = vpack.c.bf16 %v1762_v26, %v1762_v26 }
 0x797   : > { %2991 = vmatpush.bf16.msra.mxu3 %v4078_v59  ;;  %v1730_v8 = vpop.f32.mrf.mxu3  ;;  %v1718_v3 = vadd.f32 %v1717_v4, %v1357_v19 }
 0x798   : > { %2967 = vmatpush.bf16.msra.mxu1 %v4060_v61  ;;  %v1706_v11 = vpop.f32.mrf.mxu1  ;;  %v1731_v30 = vadd.f32 %v1730_v8, %v1358_v22 }
 0x799   : > { %3006 = vmatpush.bf16.msrb.mxu0 %v4084_v62  ;;  %v1745_v13 = vpop.f32.mrf.mxu0  ;;  %v1760_v34 = vmax.f32 %v1718_v3, 0.0 }
 0x79a   : > { %2979 = vmatpush.bf16.msra.mxu2 %v4069_v63  ;;  %v1761_v6 = vmax.f32 %v1731_v30, 0.0 }
 0x79b   : > { %2992 = vmatpush.bf16.msra.mxu3 %v4077_v0  ;;  %v1776_v36 = vpack.c.bf16 %v1760_v34, %v1760_v34 }
 0x79c   : > { %2968 = vmatpush.bf16.msra.mxu1 %v4059_v1  ;;  %v1777_v37 = vpack.c.bf16 %v1761_v6, %v1761_v6 }
 0x79d   : > { %3007 = vmatpush.bf16.msrb.mxu0 %v4083_v5 }
 0x79e   : > { %2980 = vmatpush.bf16.msra.mxu2 %v4068_v10  ;;  %v1719_v24 = vpop.f32.mrf.mxu2 }
 0x79f   : > { %2993 = vmatpush.bf16.msra.mxu3 %v4076_v12  ;;  %v1732_v27 = vpop.f32.mrf.mxu3 }
 0x7a0   : > { %2969 = vmatpush.bf16.msra.mxu1 %v4058_v14 }
 0x7a1   : > { %3008 = vmatpush.bf16.msrb.mxu0 %v4082_v9 }
 0x7a2   : > { %2981 = vmatpush.bf16.msra.mxu2 %v4067_v18 }
 0x7a3   : > { %2994 = vmatpush.bf16.msra.mxu3 %v4075_v21 }
 0x7a4   : > { %2970 = vmatpush.bf16.msra.mxu1 %v4057_v20 }
 0x7a5   : > { %3009 = vmatpush.bf16.msrb.mxu0 %v4081_v25 }
 0x7a6   : > { %2982 = vmatpush.bf16.msra.mxu2 %v4066_v28 }
 0x7a7   : > { %2995 = vmatpush.bf16.msra.mxu3 %v4074_v29  ;;  %2971 = vmatmul.bf16.vlgmr.msra.gmra.mxu1 %v1775_v31 }
 0x7a8   : > { %3010 = vmatmul.bf16.vlgmr.msrb.gmra.mxu0 %v1778_v32 }
 0x7aa   : > { %2983 = vmatpush.bf16.msra.mxu2 %v4065_v33 }
 0x7ab   : > { %2996 = vmatpush.bf16.msra.mxu3 %v4073_v35 }
 0x7ad   : > { %2984 = vmatmul.bf16.vlgmr.msra.gmra.mxu2 %v1776_v36 }
 0x7ae   : > { %2997 = vmatmul.bf16.vlgmr.msra.gmra.mxu3 %v1777_v37 }
 0x7e4   : > { %v2816_v38 = vpop.f32.mrf.mxu1 }
 0x7e5   : > { %v2855_v39 = vpop.f32.mrf.mxu0  ;;  %v2817_v54 = vadd.f32 %v4126_v51, %v2816_v38 }
 0x7ec   : > { %v2818_v40 = vpop.f32.mrf.mxu1 }
 0x7ed   : > { %v2857_v41 = vpop.f32.mrf.mxu0  ;;  %v4127_v40 = vld [vmem:[%s5155_s22] ss:$0 sm:$0xff] }
 0x7f0   : > { %v2829_v43 = vpop.f32.mrf.mxu2 }
 0x7f1   : > { %v2842_v44 = vpop.f32.mrf.mxu3  ;;  %v2830_v57 = vadd.f32 %v2829_v43, %v2817_v54 }
 0x7f3   : > { %v2843_v60 = vadd.f32 %v2842_v44, %v2830_v57 }
 0x7f4   : > { %v2868_v45 = vpop.f32.mrf.mxu1 }
 0x7f5   : > { %v2907_v46 = vpop.f32.mrf.mxu0  ;;  %v2856_v63 = vadd.f32 %v2855_v39, %v2843_v60 }
 0x7f7   : > { %v2869_v2 = vadd.f32 %v2868_v45, %v2856_v63 }
 0x7f8   : > { %v2831_v47 = vpop.f32.mrf.mxu2 }
 0x7f9   : > { %v2844_v48 = vpop.f32.mrf.mxu3 }
 0x7fc   : > { %v2870_v49 = vpop.f32.mrf.mxu1 }
 0x7fd   : > { %v2909_v50 = vpop.f32.mrf.mxu0 }
 0x800   : > { %v2881_v52 = vpop.f32.mrf.mxu2 }
 0x801   : > { %v2894_v53 = vpop.f32.mrf.mxu3  ;;  %v2882_v4 = vadd.f32 %v2881_v52, %v2869_v2 }
 0x803   : > { %v2895_v5 = vadd.f32 %v2894_v53, %v2882_v4 }
 0x804   : > { %v2920_v55 = vpop.f32.mrf.mxu1 }
 0x805   : > { %v2959_v56 = vpop.f32.mrf.mxu0  ;;  %v2908_v10 = vadd.f32 %v2907_v46, %v2895_v5 }
 0x807   : > { %v2921_v11 = vadd.f32 %v2920_v55, %v2908_v10 }
 0x808   : > { %v2883_v58 = vpop.f32.mrf.mxu2 }
 0x809   : > { %v2896_v59 = vpop.f32.mrf.mxu3 }
 0x80c   : > { %v2922_v61 = vpop.f32.mrf.mxu1 }
 0x80d   : > { %v2961_v62 = vpop.f32.mrf.mxu0 }
 0x810   : > { %v2933_v0 = vpop.f32.mrf.mxu2 }
 0x811   : > { %v2946_v1 = vpop.f32.mrf.mxu3  ;;  %v2934_v13 = vadd.f32 %v2933_v0, %v2921_v11 }
 0x813   : > { %v2947_v15 = vadd.f32 %v2946_v1, %v2934_v13 }
 0x815   : > { %v2960_v17 = vadd.f32 %v2959_v56, %v2947_v15 }
 0x818   : > { %v2935_v7 = vpop.f32.mrf.mxu2 }
 0x819   : > { %v2948_v8 = vpop.f32.mrf.mxu3 }
 0x824   : > { %v2972_v12 = vpop.f32.mrf.mxu1 }
 0x825   : > { %v3011_v14 = vpop.f32.mrf.mxu0  ;;  %v2973_v19 = vadd.f32 %v2972_v12, %v2960_v17 }
 0x82c   : > { %v2974_v9 = vpop.f32.mrf.mxu1 }
 0x82d   : > { %v3013_v18 = vpop.f32.mrf.mxu0 }
 0x830   : > { %v2985_v21 = vpop.f32.mrf.mxu2 }
 0x831   : > { %v2986_v22 = vadd.f32 %v2985_v21, %v2973_v19  ;;  %v2998_v20 = vpop.f32.mrf.mxu3 }
 0x833   : > { %v2999_v23 = vadd.f32 %v2998_v20, %v2986_v22 }
 0x835   : > { %v3012_v24 = vadd.f32 %v3011_v14, %v2999_v23 }
 0x837   : > { %v3015_v25 = vadd.f32 %v3012_v24, %v4576_v16 }
 0x838   : > { %v2987_v26 = vpop.f32.mrf.mxu2 }
 0x839   : > { %v3000_v27 = vpop.f32.mrf.mxu3  ;;  %v3018_v28 = vsel %vm840_vm0, %v3015_v25, 0.0 }
 0x83a   : > { %3019 = vadd.xlane.f32.xlu2 %v3018_v28 }
 0x8ad   : > { %v3020_v3 = vpop.xlane.xlu2 %3019 }
 0x8ae   : > { %v3021_v29 = vmul.f32 %v3020_v3, %v4436_v42 }
 0x8b0   : > { %v3022_v30 = vsub.f32 %v3015_v25, %v3021_v29 }
 0x8b2   : > { %v3023_v31 = vmul.f32 %v3022_v30, %v3022_v30 }
 0x8b4   : > { %v3024_v32 = vsel %vm840_vm0, %v3023_v31, 0.0 }
 0x8b5   : > { %3025 = vadd.xlane.f32.xlu0 %v3024_v32 }
 0x928   : > { %v3026_v33 = vpop.xlane.xlu0 %3025 }
 0x929   : > { %v3027_v34 = vmul.f32 %v3026_v33, %v4436_v42  ;;  %v4128_v42 = vld [vmem:[%s5156_s23] ss:$0 sm:$0xff] }
 0x92b   : > { %v3028_v35 = vadd.f32 1e-05, %v3027_v34 }
 0x92d   : > { %4143 = vrsqrt.f32 %v3028_v35  ;;  %vm3035_vm12 = vweird.f32 %v3028_v35 }
 0x933   : > { %v4144_v16 = vpop.eup %4143 }
 0x934   : > { %v3030_v6 = vmul.f32 %v4144_v16, %v3028_v35  ;;  %vm3036_vm11 = vweird.f32 %v4144_v16 }
 0x935   : > { %vm3037_vm13 = vmor %vm3035_vm12, %vm3036_vm11 }
 0x936   : > { %v3031_v36 = vmul.f32 %v4144_v16, %v3030_v6 }
 0x938   : > { %v3032_v37 = vmul.f32 0.5, %v3031_v36 }
 0x93a   : > { %v3033_v38 = vsub.f32 1.5, %v3032_v37 }
 0x93c   : > { %v3034_v39 = vmul.f32 %v4144_v16, %v3033_v38 }
 0x93e   : > { %v3038_v41 = vsel %vm3037_vm13, %v4144_v16, %v3034_v39 }
 0x93f   : > { %v3039_v43 = vmul.f32 %v3038_v41, %v3022_v30 }
 0x941   : > { %v3043_v44 = vmul.f32 %v4127_v40, %v3039_v43 }
 0x943   : > { %v3047_v45 = vadd.f32 %v4128_v42, %v3043_v44 }
 0x945   : > { %3048 = vst.msk [vmem:[%s808_s24] sm:$0xff] %vm840_vm0, %v3047_v45 }
 0x946 PF: > { %s5190_s7 = sld [smem:[#allocation3_spill]] }
 0x947   : > { %s5191_s5 = sld [smem:[#allocation2_spill]] }
 0x948   : > { %s5192_s26 = sld [smem:[#allocation4_spill]] }
 0x94c   : > { %s34_s27 = sadd.s32 1, %s5190_s7  }
 0x94d   : > { %p31_p5 = scmp.ge.s32.totalorder %s34_s27, 4  }
 0x94f   :  { %33 = sbr.rel (!%p31_p5) target bundleno = 11 (0xb), region = 162 }

// kernel: speech_model_forward.5
= control target key start
LH: loop header
LB: loop body
LE: loop exit
PB: predicated region body
PF: predicated region fallthrough
CT: control target
= control target key end

     0   :  { %s5346_s0 = inlined_call_operand.vmem [shape: f32[2,8,32], index: 0, kind: input, shape index: {}, may-alias: {0,1}]   ;;  %s5347_s1 = inlined_call_operand.vmem [shape: f32[2,8,32], index: 1, kind: input, shape index: {}, may-alias: {0,1}]   ;;  %s5348_s2 = inlined_call_operand.vmem [shape: f32[2,1,32], index: 2, kind: input, shape index: {}]   ;;  %s5349_s3 = inlined_call_operand.vmem [shape: bf16[2,32,16], index: 3, kind: input, shape index: {}]   ;;  %s5350_s4 = inlined_call_operand.vmem [shape: bf16[2,32,16], index: 4, kind: input, shape index: {}]   ;;  %s5351_s5 = inlined_call_operand.vmem [shape: bf16[2,32,16], index: 5, kind: input, shape index: {}]   ;;  %s5352_s6 = inlined_call_operand.vmem [shape: f32[2,1,16], index: 6, kind: input, shape index: {}]   ;;  %s5353_s7 = inlined_call_operand.vmem [shape: f32[2,1,16], index: 7, kind: input, shape index: {}]   ;;  %s5354_s8 = inlined_call_operand.vmem [shape: f32[2,1,16], index: 8, kind: input, shape index: {}]   ;;  %s5355_s9 = inlined_call_operand.vmem [shape: bf16[2,16,32], index: 9, kind: input, shape index: {}]   ;;  %s5356_s10 = inlined_call_operand.vmem [shape: f32[1,32], index: 10, kind: input, shape index: {}]   ;;  %s5357_s11 = inlined_call_operand.vmem [shape: f32[1,32], index: 11, kind: input, shape index: {}]   ;;  %s5358_s12 = inlined_call_operand.vmem [shape: f32[1,32], index: 12, kind: input, shape index: {}]   ;;  %s5359_s13 = inlined_call_operand.vmem [shape: bf16[32,32], index: 13, kind: input, shape index: {}]   ;;  %s5360_s14 = inlined_call_operand.vmem [shape: f32[1,32], index: 14, kind: input, shape index: {}]   ;;  %s5361_s15 = inlined_call_operand.vmem [shape: f32[1,32], index: 15, kind: input, shape index: {}]   ;;  %s5362_s16 = inlined_call_operand.vmem [shape: f32[1,32], index: 16, kind: input, shape index: {}]   ;;  %s5363_s17 = inlined_call_operand.vmem [shape: bf16[32,2048], index: 17, kind: input, shape index: {}]   ;;  %s5364_s18 = inlined_call_operand.vmem [shape: f32[1,2048], index: 18, kind: input, shape index: {}]   ;;  %s5365_s19 = inlined_call_operand.vmem [shape: bf16[2048,32], index: 19, kind: input, shape index: {}]   ;;  %s5366_s20 = inlined_call_operand.vmem [shape: f32[1,32], index: 20, kind: input, shape index: {}]   ;;  %s5367_s21 = inlined_call_operand.vmem [shape: f32[1,32], index: 21, kind: input, shape index: {}]   ;;  %s5368_s22 = inlined_call_operand.vmem [shape: f32[1,32], index: 22, kind: input, shape index: {}]   ;;  %s5369_s23 = inlined_call_operand.vmem [shape: bf16[32,32], index: 23, kind: input, shape index: {}]   ;;  %s5370_s24 = inlined_call_operand.vmem [shape: f32[1,32], index: 24, kind: input, shape index: {}]   ;;  %s5371_s25 = inlined_call_operand.hbm [shape: f32[2,8,32], index: 25, kind: output, shape index: {}]  }
   0x1   :  { %5392 = sst [smem:[#allocation13_spill]] %s5346_s0 }
   0x2   :  { %5393 = sst [smem:[#allocation14_spill]] %s5347_s1 }
   0x3   :  { %5394 = sst [smem:[#allocation15_spill]] %s5348_s2 }
   0x4   :  { %5395 = sst [smem:[#allocation16_spill]] %s5349_s3 }
   0x5   :  { %5396 = sst [smem:[#allocation17_spill]] %s5350_s4 }
   0x6   :  { %5397 = sst [smem:[#allocation18_spill]] %s5351_s5 }
   0x7   :  { %5398 = sst [smem:[#allocation19_spill]] %s5352_s6 }
   0x8   :  { %5399 = sst [smem:[#allocation20_spill]] %s5353_s7 }
   0x9   :  { %5400 = sst [smem:[#allocation21_spill]] %s5354_s8 }
   0xa   :  { %5401 = sst [smem:[#allocation22_spill]] %s5355_s9 }
   0xb   :  { %5402 = sst [smem:[#allocation23_spill]] %s5356_s10 }
   0xc   :  { %5403 = sst [smem:[#allocation24_spill]] %s5357_s11 }
   0xd   :  { %5404 = sst [smem:[#allocation25_spill]] %s5358_s12 }
   0xe   :  { %5405 = sst [smem:[#allocation26_spill]] %s5359_s13 }
   0xf   :  { %5406 = sst [smem:[#allocation27_spill]] %s5368_s22 }
  0x10   :  { %5407 = sst [smem:[#allocation28_spill]] %s5370_s24 }
  0x11   :  { %5408 = sst [smem:[#allocation29_spill]] %s5371_s25 }
  0x12   :  { %30 = vsyncpa [#allocation3], 0 }
  0x13   :  { %32 = vsyncpa [#allocation3 + $0x1], 0  ;;  %s4443_s29 = smov 0   ;;  %s4445_s2 = smov 0  }
  0x14   :  { %s4447_s6 = smov 0   ;;  %s4449_s30 = smov 0  }
  0x15   :  { %s4451_s7 = smov 0   ;;  %s4453_s3 = smov 0  }
  0x16 LB: > { %5409 = sst [smem:[#allocation5_spill]] %s4290_s29  ;;  %s3196_s26 = sadd.s32 4294967295, %s4310_s3   ;;  %s4310_s3 = sphi %s4453_s3, %s38_s3   ;;  %s4306_s7 = sphi %s4451_s7, %s5447_s7   ;;  %s4302_s30 = sphi %s4449_s30, %s5446_s30   ;;  %s4298_s6 = sphi %s4447_s6, %s5445_s6   ;;  %s4294_s2 = sphi %s4445_s2, %s5449_s2   ;;  %s4290_s29 = sphi %s4443_s29, %s5448_s29  }
  0x17   : > { %5410 = sst [smem:[#allocation6_spill]] %s4298_s6  ;;  %s3197_s1 = sadd.s32 4294967294, %s4310_s3  }
  0x18   : > { %5411 = sst [smem:[#allocation7_spill]] %s4306_s7  ;;  %s50_s8 = sadd.s32 1, %s4306_s7 }
  0x19   : > { %5412 = sst [smem:[#allocation8_spill]] %s4310_s3  ;;  %s601_s27 = sadd.s32 1, %s4298_s6 }
  0x1a   : > { %p52_p0 = scmp.ge.s32.totalorder %s50_s8, 2  ;;  %p611_p1 = scmp.ne.s32.totalorder %s4298_s6, %s4294_s2 }
  0x1b   : > { %p612_p2 = scmp.eq.s32.totalorder %s3196_s26, 1  ;;  %p617_p3 = scmp.ne.s32.totalorder %s4294_s2, %s4290_s29 }
  0x1c   : > { %s5451_s8 = smov (%p52_p0, %s50_s8), 0  ;;  %p618_p5 = scmp.eq.s32.totalorder %s3197_s1, 1 }
  0x1d   : > { %5413 = sst [smem:[#allocation9_spill]] %s5451_s8  ;;  %p4483_p4 = por %p612_p2, %p611_p1 }
  0x1e   : > { %s596_s28 = ssub.s32 %s4306_s7, %s5451_s8  ;;  %p3200_p6 = scmp.ge.s32.totalorder %s4310_s3, 1 }
  0x1f   : > { %s5414_s4 = scalar_select %p4483_p4, 1, 0 }
  0x20   : > { %p599_p7 = scmp.eq.s32.totalorder %s596_s28, 0  ;;  %p4490_p8 = por %p618_p5, %p617_p3 }
  0x21   : > { %5415 = sst [smem:[#allocation10_spill]] %s5414_s4  ;;  %p725_p9 = scmp.lt.s32.totalorder %s4310_s3, 3 }
  0x22   : > { %s5416_s9 = scalar_select %p4490_p8, 1, 0 }
  0x23   : > { %s4496_s5 = scalar_select %p599_p7, %s4298_s6, %s601_s27  }
  0x24   : > { %5417 = sst [smem:[#allocation11_spill]] %s5416_s9  ;;  %p726_p10 = pnand %p3200_p6, %p725_p9 }
  0x25   : > { %5418 = sst [smem:[#allocation12_spill]] %s4496_s5  ;;  %p802_p11 = scmp.lt.s32.totalorder (!%p726_p10), %s4302_s30, 1 }
  0x26   : > { %729 = sbr.rel (%p726_p10) target bundleno = 2529 (0x9e1), region = 120  ;;  %s5419_s29 = sld [smem:[#allocation16_spill]] (!%p726_p10) }
  0x27   : > { %s5421_s8 = sld [smem:[#allocation17_spill]] (!%p726_p10) }
  0x28   : > { %s5422_s9 = sld [smem:[#allocation13_spill]] (!%p726_p10) }
  0x29   : > { %s5423_s25 = sld [smem:[#allocation14_spill]] (!%p726_p10) }
  0x2a   : > { %s5424_s3 = sld [smem:[#allocation19_spill]] (!%p726_p10) }
  0x2b   : > { %s4512_s6 = scalar_select %p802_p11, %s4302_s30, 1  ;;  %vm841_vm0 = vcmask 261120   ;;  %vm930_vm1 = vcmask 130048   ;;  %vm950_vm2 = vcmask 64512   ;;  %vm967_vm3 = vcmask 1043456  }
  0x2c   : > { %s5420_s24 = smov %s5419_s29  ;;  %v3968_v0 = vld [vmem:[%s5419_s29 + $0x8] sm:$0xff]  ;;  %s5426_s27 = sld [smem:[#allocation20_spill]] }
  0x2d   : > { %v3970_v1 = vld [vmem:[%s5421_s8 + $0x8] sm:$0xff]  ;;  %v3967_v2 = vld [vmem:[%s5420_s24] sm:$0xff]  ;;  %851 = vmatpush.bf16.msra.mxu0 %v3968_v0  ;;  %s3202_s0 = sshll.u32 %s4512_s6, 3  ;;  %s5427_s29 = sld [smem:[#allocation18_spill]]  ;;  %v3977_v22 = vld [vmem:[%s5421_s8 + $0x18] sm:$0xff] }
  0x2e   : > { %887 = vmatpush.bf16.msra.mxu1 %v3970_v1  ;;  %v3969_v3 = vld [vmem:[%s5421_s8] sm:$0xff]  ;;  %s808_s4 = scalar_lea.vmem %s5422_s9, %s3202_s0  ;;  %v3976_v26 = vld [vmem:[%s5421_s8 + $0x10] sm:$0xff]  ;;  %v3975_v27 = vld [vmem:[%s5420_s24 + $0x18] sm:$0xff]  ;;  %s5429_s7 = sld [smem:[#allocation21_spill]] }
  0x2f   : > { %s812_s22 = scalar_lea.vmem %s5423_s25, %s3202_s0  ;;  %v4521_v4 = vld [vmem:[%s808_s4] sm:$0xff]  ;;  %v3974_v28 = vld [vmem:[%s5420_s24 + $0x10] sm:$0xff]  ;;  %s5431_s25 = sld [smem:[#allocation22_spill]] }
  0x30   : > { %v818_v5 = vld [vmem:[%s812_s22] sm:$0xff]  ;;  %v819_v6 = vpack.c.bf16 %v4521_v4, %v4521_v4  ;;  %s5425_s5 = smov %s5424_s3  ;;  %s5432_s10 = sld [smem:[#allocation23_spill]] }
  0x31   : > { %852 = vmatpush.bf16.msra.mxu0 %v3967_v2  ;;  %v4525_v7 = vpack.c.bf16 %v818_v5, %v818_v5  ;;  %v4201_v8 = vld [vmem:[%s5424_s3] ss:$0 sm:$0xff]  ;;  %v4205_v54 = vld [vmem:[%s5425_s5 + $0x1] ss:$0 sm:$0xff]  ;;  %s5433_s28 = sld [smem:[#allocation15_spill]]  ;;  %s3964_s5 = sshll.u32 %s4302_s30, 3 }
  0x32   : > { %888 = vmatpush.bf16.msra.mxu1 %v3969_v3  ;;  %v4202_v9 = vld [vmem:[%s5426_s27] ss:$0 sm:$0xff]  ;;  %v4204_v41 = vld [vmem:[%s5426_s27 + $0x1] ss:$0 sm:$0xff]  ;;  %s5434_s13 = sld [smem:[#allocation26_spill]] }
  0x33   : > { %s5428_s26 = smov %s5427_s29  ;;  %v3972_v20 = vld [vmem:[%s5427_s29 + $0x8] sm:$0xff]  ;;  %s5435_s11 = sld [smem:[#allocation24_spill]] }
  0x34   : > { %3212 = vmatmul.msk.bf16.vlgmr.msra.gmra.mxu0 %vm841_vm0, %v819_v6  ;;  %920 = vmatpush.bf16.msra.mxu2 %v3972_v20  ;;  %v3971_v21 = vld [vmem:[%s5428_s26] sm:$0xff]  ;;  %s5430_s9 = smov %s5429_s7  ;;  %v3979_v48 = vld [vmem:[%s5428_s26 + $0x18] sm:$0xff]  ;;  %v3978_v49 = vld [vmem:[%s5428_s26 + $0x10] sm:$0xff]  ;;  %s5436_s12 = sld [smem:[#allocation25_spill]] }
  0x35   : > { %3221 = vmatmul.msk.bf16.vlgmr.msra.gmra.mxu1 %vm841_vm0, %v4525_v7  ;;  %v4203_v36 = vld [vmem:[%s5429_s7] ss:$0 sm:$0xff]  ;;  %v4206_v59 = vld [vmem:[%s5430_s9 + $0x1] ss:$0 sm:$0xff]  ;;  %s799_s7 = sand.u32 1, %s4294_s2   ;;  %s5438_s9 = sld [smem:[#allocation29_spill]] }
  0x36   : > { %1015 = vmatpush.bf16.msrb.mxu1 %v3975_v27  ;;  %v3973_v58 = vld [vmem:[%s5431_s25] sm:$0xff]  ;;  %s3201_s3 = sshll.u32 %s799_s7, 3  ;;  %s3088_s30 = scalar_lea.sflag [#allocation3], %s799_s7 }
  0x37   : > { %s815_s22 = scalar_lea.vmem %s5433_s28, %s4512_s6  ;;  %s5437_s6 = sld [smem:[#allocation27_spill]] }
  0x38   : > { %921 = vmatpush.bf16.msra.mxu2 %v3971_v21 }
  0x3a   : > { %1016 = vmatpush.bf16.msrb.mxu1 %v3974_v28 }
  0x3b   : > { %3230 = vmatmul.msk.bf16.vlgmr.msra.gmra.mxu2 %vm841_vm0, %v4525_v7  ;;  %s3099_s0 = scalar_lea.hbm %s5438_s9, %s3964_s5 }
  0x3c   : > { %1050 = vmatpush.bf16.msrb.mxu2 %v3977_v22  ;;  %s3103_s1 = sshll.u32 %s3099_s0, 4  ;;  %s3104_s1 = int_to_ptr.hbm [resolvable:$true] %s3103_s1 }
  0x40   : > { %1051 = vmatpush.bf16.msrb.mxu2 %v3976_v26 }
  0x45   : > { %3246 = vmatmul.msk.bf16.vlgmr.msrb.gmra.mxu1 %vm841_vm0, %v819_v6 }
  0x4b   : > { %3260 = vmatmul.msk.bf16.vlgmr.msrb.gmra.mxu2 %vm841_vm0, %v4525_v7 }
  0xb1   : > { %v854_v10 = vpop.f32.mrf.mxu0 }
  0xb2   : > { %v890_v11 = vpop.f32.mrf.mxu1  ;;  %v855_v12 = vadd.f32 %v4201_v8, %v854_v10 }
  0xb3   : > { %v891_v13 = vadd.f32 %v4202_v9, %v890_v11 }
  0xb4   : > { %v927_v15 = vmul.f32 0.25, %v855_v12 }
  0xb5   : > { %v929_v14 = vpack.c.bf16 %v891_v13, %v891_v13 }
  0xb6   : > { %v928_v19 = vpack.c.bf16 %v927_v15, %v927_v15  ;;  %v3980_v15 = vld [vmem:[%s5431_s25 + $0x8] sm:$0xff] }
  0xb7   : > { %v935_v16 = vsel %vm930_vm1, %v929_v14, 0  ;;  %1166 = vmatpush.bf16.msra.mxu2 %v3980_v15  ;;  %v4008_v15 = vld [vmem:[%s5363_s17 + $0xc4] sm:$0xf0] }
  0xb8   : > { %944 = vmatpush.bf16.xpose.msra.mxu3 %v935_v16 }
  0xb9   : > { %v856_v17 = vpop.f32.mrf.mxu0 }
  0xba   : > { %v892_v18 = vpop.f32.mrf.mxu1 }
  0xbe   : > { %v923_v29 = vpop.f32.mrf.mxu2 }
  0xbf   : > { %3231 = vmatmul.msk.bf16.vlgmr.msra.gmra.mxu3 %vm930_vm1, %v928_v19  ;;  %v924_v37 = vadd.f32 %v4203_v36, %v923_v29 }
  0xc0   : > { %1085 = vmatpush.bf16.msrb.mxu3 %v3979_v48 }
  0xc1   : > { %v963_v38 = vpack.c.bf16 %v924_v37, %v924_v37 }
  0xc2   : > { %v1018_v44 = vpop.f32.mrf.mxu1 }
  0xc3   : > { %v969_v39 = vsel %vm967_vm3, %v963_v38, 0  ;;  %v1019_v55 = vadd.f32 %v4205_v54, %v1018_v44 }
  0xc4   : > { %978 = vmatpush.bf16.msrb.mxu0 %v969_v39  ;;  %1086 = vmatpush.bf16.msrb.mxu3 %v3978_v49 }
  0xc5   : > { %v1092_v56 = vmul.f32 0.25, %v1019_v55  ;;  %v1245_v55 = vld [vmem:[%s5360_s14] sm:$0x1] }
  0xc6   : > { %v925_v33 = vpop.f32.mrf.mxu2 }
  0xc7   : > { %v1093_v57 = vpack.c.bf16 %v1092_v56, %v1092_v56 }
  0xc8   : > { %1188 = vmatpush.bf16.msra.mxu3 %v3973_v58  ;;  %v4208_v58 = vld [vmem:[%s5435_s11] ss:$0 sm:$0xff]  ;;  %s5440_s11 = sld [smem:[#allocation28_spill]] }
  0xca   : > { %v1020_v47 = vpop.f32.mrf.mxu1 }
  0xce   : > { %v1053_v40 = vpop.f32.mrf.mxu2 }
  0xcf   : > { %v1054_v42 = vadd.f32 %v4204_v41, %v1053_v40  ;;  %3274 = vmatmul.msk.bf16.vlgmr.msrb.gmra.mxu3 %vm841_vm0, %v4525_v7 }
  0xd1   : > { %v1094_v43 = vpack.c.bf16 %v1054_v42, %v1054_v42 }
  0xd3   : > { %v1099_v45 = vsel %vm930_vm1, %v1094_v43, 0 }
  0xd4   : > { %1108 = vmatpush.bf16.xpose.msra.mxu0 %v1099_v45 }
  0xd6   : > { %v1055_v46 = vpop.f32.mrf.mxu2 }
 0x142   : > { %v946_v23 = vpop.f32.mrf.mxu3 }
 0x143   : > { %v951_v24 = vsel %vm950_vm2, %v946_v23, -inf }
 0x144   : > { %952 = vmax.xlane.f32.xlu0 %v951_v24 }
 0x14a   : > { %v948_v25 = vpop.f32.mrf.mxu3 }
 0x152   : > { %v1088_v60 = vpop.f32.mrf.mxu3 }
 0x153   : > { %v1089_v62 = vadd.f32 %v4206_v59, %v1088_v60 }
 0x155   : > { %v1126_v0 = vpack.c.bf16 %v1089_v62, %v1089_v62 }
 0x157   : > { %v1131_v1 = vsel %vm967_vm3, %v1126_v0, 0 }
 0x158   : > { %1140 = vmatpush.bf16.msra.mxu1 %v1131_v1 }
 0x15a   : > { %v1090_v2 = vpop.f32.mrf.mxu3 }
 0x1b7   : > { %v953_v30 = vpop.xlane.xlu0 %952 }
 0x1b8   : > { %v954_v31 = vsub.f32 %v946_v23, %v953_v30  ;;  %v4207_v23 = vld [vmem:[%s5432_s10] ss:$0 sm:$0xff]  ;;  %v3982_v30 = vld [vmem:[%s5434_s13 + $0x8] sm:$0xff] }
 0x1ba   : > { %v955_v32 = vmul.f32 1.442695, %v954_v31  ;;  %v4312_v31 = vmov 32.0  }
 0x1bc   : > { %4216 = vpow2.f32 %v955_v32  ;;  %v1239_v32 = vld [vmem:[%s815_s22] sm:$0x1] }
 0x1bd   : > { %v1240_v33 = vpack.c.bf16 %v1239_v32, %v1239_v32 }
 0x1c2   : > { %v4217_v34 = vpop.eup %4216 }
 0x1c3   : > { %v957_v35 = vsel %vm950_vm2, %v4217_v34, 0.0 }
 0x1c4   : > { %958 = vadd.xlane.f32.xlu0 %v957_v35 }
 0x237   : > { %v959_v50 = vpop.xlane.xlu0 %958 }
 0x238   : > { %4218 = vrcp.f32 %v959_v50 }
 0x23e   : > { %v4219_v51 = vpop.eup %4218 }
 0x23f   : > { %v961_v52 = vmul.f32 %v4219_v51, %v4217_v34 }
 0x241   : > { %v962_v53 = vpack.c.bf16 %v961_v52, %v961_v52 }
 0x243   : > { %3232 = vmatmul.msk.bf16.vlgmr.msrb.gmra.mxu0 %vm950_vm2, %v962_v53 }
 0x244   : > { %1267 = vmatpush.bf16.msrb.mxu0 %v3982_v30  ;;  %v3984_v30 = vld [vmem:[%s5363_s17 + $0xc] sm:$0xf] }
 0x253   : > { %3275 = vmatmul.msk.bf16.vlgmr.msra.gmra.mxu0 %vm930_vm1, %v1093_v57 }
 0x2c0   : > { %v980_v61 = vpop.f32.mrf.mxu0 }
 0x2c1   : > { %v984_v63 = vpack.c.bf16 %v980_v61, %v980_v61  ;;  %v4209_v61 = vld [vmem:[%s5436_s12] ss:$0 sm:$0xff]  ;;  %s801_s12 = scalar_lea.vmem [#allocation2], %s3201_s3 }
 0x2c2   : > { %s3101_s4 = sshll.u32 %s801_s12, 4  ;;  %s3102_s4 = int_to_ptr.vmem [resolvable:$true] %s3101_s4 }
 0x2c3   : > { %3288 = vmatmul.msk.bf16.vlgmr.msra.gmra.mxu3 %vm930_vm1, %v984_v63 }
 0x2c8   : > { %v982_v3 = vpop.f32.mrf.mxu0 }
 0x2d0   : > { %v1110_v5 = vpop.f32.mrf.mxu0 }
 0x2d1   : > { %v1114_v6 = vsel %vm950_vm2, %v1110_v5, -inf }
 0x2d2   : > { %1115 = vmax.xlane.f32.xlu1 %v1114_v6 }
 0x2d8   : > { %v1112_v7 = vpop.f32.mrf.mxu0 }
 0x345   : > { %v1116_v8 = vpop.xlane.xlu1 %1115 }
 0x346   : > { %v1117_v9 = vsub.f32 %v1110_v5, %v1116_v8  ;;  %v1190_v10 = vpop.f32.mrf.mxu3 }
 0x348   : > { %v1118_v11 = vmul.f32 1.442695, %v1117_v9  ;;  %v3364_v9 = vld [vmem:[%s5363_s17 + $0x80] sm:$0xf] }
 0x34a   : > { %4220 = vpow2.f32 %v1118_v11  ;;  %v3999_v11 = vld [vmem:[%s5363_s17 + $0x84] sm:$0xf] }
 0x34e   : > { %v1192_v12 = vpop.f32.mrf.mxu3 }
 0x350   : > { %v4221_v13 = vpop.eup %4220 }
 0x351   : > { %v1120_v14 = vsel %vm950_vm2, %v4221_v13, 0.0 }
 0x352   : > { %1121 = vadd.xlane.f32.xlu1 %v1120_v14  ;;  %v3372_v14 = vld [vmem:[%s5363_s17 + $0x88] sm:$0xf] }
 0x3c5   : > { %v1122_v16 = vpop.xlane.xlu1 %1121 }
 0x3c6   : > { %4222 = vrcp.f32 %v1122_v16 }
 0x3c7   : > { %4224 = vrcp.f32 %v4312_v31  ;;  %v3310_v31 = vld [vmem:[%s5363_s17 + $0x48] sm:$0xf0] }
 0x3c8   : > { %v3313_v32 = vor.u32 %v3984_v30, %v3310_v31 }
 0x3cc   : > { %v4223_v17 = vpop.eup %4222 }
 0x3cd   : > { %v1124_v18 = vmul.f32 %v4223_v17, %v4221_v13  ;;  %v4225_v34 = vpop.eup %4224  ;;  %v3366_v13 = vld [vmem:[%s5363_s17 + $0xc0] sm:$0xf0]  ;;  %v3373_v17 = vor.u32 %v4008_v15, %v3372_v14  ;;  %v4012_v14 = vld [vmem:[%s5363_s17 + $0xe4] sm:$0xf0]  ;;  %v4004_v15 = vld [vmem:[%s5363_s17 + $0xac] sm:$0xf] }
 0x3ce   : > { %v1206_v35 = vmul.f32 32.0, %v4225_v34  ;;  %vm1210_vm4 = vweird.f32 %v4225_v34  ;;  %v3369_v16 = vor.u32 %v3999_v11, %v3366_v13  ;;  %v4003_v11 = vld [vmem:[%s5363_s17 + $0xa4] sm:$0xf] }
 0x3cf   : > { %v1125_v19 = vpack.c.bf16 %v1124_v18, %v1124_v18  ;;  %v4000_v18 = vld [vmem:[%s5363_s17 + $0x8c] sm:$0xf]  ;;  %1572 = vmatpush.bf16.msrb.mxu3 %v3373_v17 }
 0x3d0   : > { %v1207_v36 = vsub.f32 1.0, %v1206_v35  ;;  %1559 = vmatpush.bf16.msrb.mxu2 %v3369_v16  ;;  %v4001_v35 = vld [vmem:[%s5363_s17 + $0x94] sm:$0xf]  ;;  %v3406_v16 = vld [vmem:[%s5363_s17 + $0xe8] sm:$0xf0] }
 0x3d1   : > { %3276 = vmatmul.msk.bf16.vlgmr.msra.gmra.mxu1 %vm950_vm2, %v1125_v19  ;;  %v3374_v19 = vld [vmem:[%s5363_s17 + $0xc8] sm:$0xf0] }
 0x3d2   : > { %v1208_v37 = vmul.f32 %v4225_v34, %v1207_v36 }
 0x3d4   : > { %v1209_v38 = vadd.f32 %v4225_v34, %v1208_v37 }
 0x3d6   : > { %v4615_v39 = vsel %vm1210_vm4, %v4225_v34, %v1209_v38  ;;  %v4009_v34 = vld [vmem:[%s5363_s17 + $0xcc] sm:$0xf0]  ;;  %v3382_v38 = vld [vmem:[%s5363_s17 + $0xd0] sm:$0xf0] }
 0x44e   : > { %v1142_v20 = vpop.f32.mrf.mxu1 }
 0x44f   : > { %v1146_v21 = vpack.c.bf16 %v1142_v20, %v1142_v20  ;;  %v3377_v20 = vor.u32 %v4000_v18, %v3374_v19 }
 0x451   : > { %3283 = vmatmul.msk.bf16.vlgmr.msra.gmra.mxu2 %vm930_vm1, %v1146_v21  ;;  %v3300_v21 = vld [vmem:[%s5363_s17] sm:$0xf] }
 0x456   : > { %v1144_v22 = vpop.f32.mrf.mxu1 }
 0x457   : > { %v3991_v22 = vld [vmem:[%s5363_s17 + $0x3c] sm:$0xf0] }
 0x4d4   : > { %v1168_v24 = vpop.f32.mrf.mxu2 }
 0x4d5   : > { %v1191_v25 = vadd.f32 %v1190_v10, %v1168_v24  ;;  %v4007_v10 = vld [vmem:[%s5363_s17 + $0xbc] sm:$0xf0]  ;;  %v3301_v24 = vor.u32 %v3991_v22, %v3300_v21 }
 0x4d6   : > { %v3365_v12 = vor.u32 %v4007_v10, %v3364_v9  ;;  %v3396_v9 = vld [vmem:[%s5363_s17 + $0xa0] sm:$0xf] }
 0x4d7   : > { %v1198_v26 = vadd.f32 %v4207_v23, %v1191_v25  ;;  %v3983_v23 = vld [vmem:[%s5363_s17 + $0x4] sm:$0xf]  ;;  %v4011_v10 = vld [vmem:[%s5363_s17 + $0xdc] sm:$0xf0] }
 0x4d8   : > { %1546 = vmatpush.bf16.msrb.mxu1 %v3365_v12  ;;  %v3302_v25 = vld [vmem:[%s5363_s17 + $0x40] sm:$0xf0]  ;;  %v3397_v18 = vor.u32 %v4011_v10, %v3396_v9  ;;  %v3995_v21 = vld [vmem:[%s5363_s17 + $0x5c] sm:$0xf0] }
 0x4d9   : > { %v1199_v27 = vadd.f32 %v1198_v26, %v4521_v4  ;;  %v3981_v4 = vld [vmem:[%s5434_s13] sm:$0xff]  ;;  %v3308_v26 = vld [vmem:[%s5363_s17 + $0x8] sm:$0xf] }
 0x4da   : > { %1268 = vmatpush.bf16.msrb.mxu0 %v3981_v4  ;;  %v3398_v12 = vld [vmem:[%s5363_s17 + $0xe0] sm:$0xf0] }
 0x4db   : > { %v1202_v28 = vsel %vm841_vm0, %v1199_v27, 0.0  ;;  %v3401_v19 = vor.u32 %v4003_v11, %v3398_v12  ;;  %v4043_v9 = vld [vmem:[%s5365_s19 + $0xe0] sm:$0xff]  ;;  %v4018_v12 = vld [vmem:[%s5365_s19 + $0x18] sm:$0xff] }
 0x4dc   : > { %1203 = vadd.xlane.f32.xlu2 %v1202_v28  ;;  %v1170_v29 = vpop.f32.mrf.mxu2  ;;  %v3305_v28 = vor.u32 %v3983_v23, %v3302_v25  ;;  %1547 = vmatpush.bf16.msrb.mxu1 %v3301_v24  ;;  %v3409_v23 = vor.u32 %v4004_v15, %v3406_v16  ;;  %v3987_v24 = vld [vmem:[%s5363_s17 + $0x24] sm:$0xf]  ;;  %v4034_v15 = vld [vmem:[%s5365_s19 + $0x98] sm:$0xff]  ;;  %v4017_v16 = vld [vmem:[%s5365_s19 + $0x10] sm:$0xff] }
 0x4dd   : > { %3297 = vmatmul.msk.bf16.vlgmr.msrb.gmra.mxu0 %vm841_vm0, %v1240_v33  ;;  %v3380_v33 = vld [vmem:[%s5363_s17 + $0x90] sm:$0xf]  ;;  %v3334_v25 = vld [vmem:[%s5363_s17 + $0x60] sm:$0xf0] }
 0x4de   : > { %1585 = vmatpush.bf16.msra.mxu0 %v3377_v20  ;;  %1560 = vmatpush.bf16.msrb.mxu2 %v3305_v28  ;;  %v3381_v37 = vor.u32 %v4009_v34, %v3380_v33  ;;  %v3332_v20 = vld [vmem:[%s5363_s17 + $0x20] sm:$0xf]  ;;  %v3988_v28 = vld [vmem:[%s5363_s17 + $0x2c] sm:$0xf]  ;;  %v3337_v31 = vor.u32 %v3987_v24, %v3334_v25  ;;  %v3412_v33 = vld [vmem:[%s5363_s17 + $0xb0] sm:$0xf] }
 0x4df   : > { %v3333_v30 = vor.u32 %v3995_v21, %v3332_v20  ;;  %v4013_v34 = vld [vmem:[%s5363_s17 + $0xec] sm:$0xf0]  ;;  %v4027_v10 = vld [vmem:[%s5365_s19 + $0x60] sm:$0xff]  ;;  %v4016_v20 = vld [vmem:[%s5365_s19 + $0x8] sm:$0xff] }
 0x4e0   : > { %1598 = vmatpush.bf16.msra.mxu1 %v3381_v37  ;;  %v3420_v37 = vld [vmem:[%s5363_s17 + $0xb8] sm:$0xf]  ;;  %v4035_v11 = vld [vmem:[%s5365_s19 + $0xa0] sm:$0xff]  ;;  %v4040_v21 = vld [vmem:[%s5365_s19 + $0xc8] sm:$0xff] }
 0x4e1   : > { %v4015_v24 = vld [vmem:[%s5365_s19] sm:$0xff] }
 0x4e2   : > { %1586 = vmatpush.bf16.msra.mxu0 %v3313_v32  ;;  %v4039_v25 = vld [vmem:[%s5365_s19 + $0xc0] sm:$0xff] }
 0x54f   : > { %v1204_v40 = vpop.xlane.xlu2 %1203 }
 0x550   : > { %v1212_v41 = vmul.f32 %v4615_v39, %v1204_v40  ;;  %v3388_v40 = vld [vmem:[%s5363_s17 + $0x98] sm:$0xf] }
 0x552   : > { %v1213_v42 = vsub.f32 %v1199_v27, %v1212_v41  ;;  %v3992_v27 = vld [vmem:[%s5363_s17 + $0x44] sm:$0xf0]  ;;  %v4010_v41 = vld [vmem:[%s5363_s17 + $0xd4] sm:$0xf0] }
 0x553   : > { %v3309_v29 = vor.u32 %v3992_v27, %v3308_v26  ;;  %v3340_v26 = vld [vmem:[%s5363_s17 + $0x28] sm:$0xf] }
 0x554   : > { %v1214_v43 = vmul.f32 %v1213_v42, %v1213_v42  ;;  %v3996_v27 = vld [vmem:[%s5363_s17 + $0x64] sm:$0xf0] }
 0x555   : > { %1573 = vmatpush.bf16.msrb.mxu3 %v3309_v29  ;;  %v3342_v29 = vld [vmem:[%s5363_s17 + $0x68] sm:$0xf0]  ;;  %v3341_v32 = vor.u32 %v3996_v27, %v3340_v26  ;;  %v4054_v26 = vld [vmem:[%s5365_s19 + $0x138] sm:$0xff] }
 0x556   : > { %v1215_v44 = vsel %vm841_vm0, %v1214_v43, 0.0  ;;  %v3389_v43 = vor.u32 %v4010_v41, %v3388_v40  ;;  %v4006_v40 = vld [vmem:[%s5363_s17 + $0xbc] sm:$0xf] }
 0x557   : > { %1216 = vadd.xlane.f32.xlu2 %v1215_v44  ;;  %v4002_v44 = vld [vmem:[%s5363_s17 + $0x9c] sm:$0xf] }
 0x558   : > { %v3422_v41 = vld [vmem:[%s5363_s17 + $0xf8] sm:$0xf0] }
 0x559   : > { %1624 = vmatpush.bf16.msra.mxu3 %v3389_v43  ;;  %v4078_v27 = vld [vmem:[%s5365_s19 + $0x1f8] sm:$0xff] }
 0x55a   : > { %v1270_v45 = vpop.f32.mrf.mxu0 }
 0x55b   : > { %v1271_v57 = vadd.f32 %v1270_v45, %v1245_v55  ;;  %v3390_v45 = vld [vmem:[%s5363_s17 + $0xd8] sm:$0xf0] }
 0x55d   : > { %v1274_v62 = vperm.slane %v1271_v57, 0  ;;  %v3986_v57 = vld [vmem:[%s5363_s17 + $0x1c] sm:$0xf] }
 0x562   : > { %v1272_v46 = vpop.f32.mrf.mxu0 }
 0x563   : > { %v3316_v46 = vld [vmem:[%s5363_s17 + $0x10] sm:$0xf] }
 0x5ca   : > { %v1217_v47 = vpop.xlane.xlu2 %1216 }
 0x5cb   : > { %v1218_v48 = vmul.f32 %v1217_v47, %v4615_v39 }
 0x5cd   : > { %v1219_v49 = vadd.f32 1e-05, %v1218_v48  ;;  %v3393_v48 = vor.u32 %v4002_v44, %v3390_v45  ;;  %v3348_v44 = vld [vmem:[%s5363_s17 + $0x30] sm:$0xf] }
 0x5ce   : > { %v3997_v45 = vld [vmem:[%s5363_s17 + $0x6c] sm:$0xf0] }
 0x5cf   : > { %4226 = vrsqrt.f32 %v1219_v49  ;;  %vm1226_vm6 = vweird.f32 %v1219_v49  ;;  %1637 = vmatpush.bf16.msrb.mxu0 %v3393_v48  ;;  %v3989_v48 = vld [vmem:[%s5363_s17 + $0x34] sm:$0xf] }
 0x5d5   : > { %v4227_v50 = vpop.eup %4226 }
 0x5d6   : > { %v1221_v51 = vmul.f32 %v4227_v50, %v1219_v49  ;;  %vm1227_vm5 = vweird.f32 %v4227_v50  ;;  %v3993_v49 = vld [vmem:[%s5363_s17 + $0x4c] sm:$0xf0] }
 0x5d7   : > { %vm1228_vm7 = vmor %vm1226_vm6, %vm1227_vm5 }
 0x5d8   : > { %v1222_v52 = vmul.f32 %v4227_v50, %v1221_v51  ;;  %v3317_v51 = vor.u32 %v3993_v49, %v3316_v46  ;;  %v3350_v49 = vld [vmem:[%s5363_s17 + $0x70] sm:$0xf0] }
 0x5da   : > { %v1223_v53 = vmul.f32 0.5, %v1222_v52  ;;  %v3318_v52 = vld [vmem:[%s5363_s17 + $0x50] sm:$0xf0]  ;;  %1599 = vmatpush.bf16.msra.mxu1 %v3317_v51  ;;  %v3998_v51 = vld [vmem:[%s5363_s17 + $0x74] sm:$0xf0] }
 0x5dc   : > { %v1224_v54 = vsub.f32 1.5, %v1223_v53  ;;  %v3324_v53 = vld [vmem:[%s5363_s17 + $0x18] sm:$0xf] }
 0x5de   : > { %v1225_v56 = vmul.f32 %v4227_v50, %v1224_v54  ;;  %v3994_v54 = vld [vmem:[%s5363_s17 + $0x54] sm:$0xf0] }
 0x5e0   : > { %v1229_v59 = vsel %vm1228_vm7, %v4227_v50, %v1225_v56  ;;  %v3985_v50 = vld [vmem:[%s5363_s17 + $0x14] sm:$0xf]  ;;  %v3325_v56 = vor.u32 %v3994_v54, %v3324_v53  ;;  %v3358_v53 = vld [vmem:[%s5363_s17 + $0x78] sm:$0xf0]  ;;  %v3349_v54 = vor.u32 %v3997_v45, %v3348_v44 }
 0x5e1   : > { %v1230_v60 = vmul.f32 %v1229_v59, %v1213_v42  ;;  %v3385_v42 = vor.u32 %v4001_v35, %v3382_v38  ;;  %v3321_v55 = vor.u32 %v3985_v50, %v3318_v52  ;;  %v4005_v35 = vld [vmem:[%s5363_s17 + $0xb4] sm:$0xf]  ;;  %v4014_v38 = vld [vmem:[%s5363_s17 + $0xf4] sm:$0xf0]  ;;  %v3990_v52 = vld [vmem:[%s5363_s17 + $0x3c] sm:$0xf] }
 0x5e2   : > { %1625 = vmatpush.bf16.msra.mxu3 %v3325_v56  ;;  %v3421_v46 = vor.u32 %v4014_v38, %v3420_v37  ;;  %v3356_v50 = vld [vmem:[%s5363_s17 + $0x38] sm:$0xf]  ;;  %v4060_v37 = vld [vmem:[%s5365_s19 + $0x168] sm:$0xff] }
 0x5e3   : > { %v1234_v63 = vmul.f32 %v4208_v58, %v1230_v60  ;;  %1611 = vmatpush.bf16.msra.mxu2 %v3385_v42  ;;  %v3326_v58 = vld [vmem:[%s5363_s17 + $0x58] sm:$0xf0]  ;;  %v3413_v42 = vor.u32 %v4013_v34, %v3412_v33  ;;  %v3357_v56 = vor.u32 %v3998_v51, %v3356_v50  ;;  %v4061_v33 = vld [vmem:[%s5365_s19 + $0x170] sm:$0xff]  ;;  %v4068_v38 = vld [vmem:[%s5365_s19 + $0x1a8] sm:$0xff] }
 0x5e4   : > { %v3329_v59 = vor.u32 %v3986_v57, %v3326_v58  ;;  %v3361_v57 = vor.u32 %v3990_v52, %v3358_v53  ;;  %v4022_v58 = vld [vmem:[%s5365_s19 + $0x38] sm:$0xff]  ;;  %v4069_v34 = vld [vmem:[%s5365_s19 + $0x1b0] sm:$0xff]  ;;  %v4048_v50 = vld [vmem:[%s5365_s19 + $0x108] sm:$0xff] }
 0x5e5   : > { %v1238_v0 = vadd.f32 %v4209_v61, %v1234_v63  ;;  %v4050_v44 = vld [vmem:[%s5365_s19 + $0x118] sm:$0xff]  ;;  %v4072_v51 = vld [vmem:[%s5365_s19 + $0x1c8] sm:$0xff]  ;;  %v4057_v52 = vld [vmem:[%s5365_s19 + $0x150] sm:$0xff] }
 0x5e6   : > { %1638 = vmatpush.bf16.msrb.mxu0 %v3329_v59  ;;  %v4046_v59 = vld [vmem:[%s5365_s19 + $0xf8] sm:$0xff]  ;;  %v4065_v53 = vld [vmem:[%s5365_s19 + $0x190] sm:$0xff] }
 0x5e7   : > { %v1275_v1 = vadd.f32 %v1274_v62, %v1238_v0  ;;  %1612 = vmatpush.bf16.msra.mxu2 %v3321_v55  ;;  %v3353_v55 = vor.u32 %v3989_v48, %v3350_v49  ;;  %v4074_v45 = vld [vmem:[%s5365_s19 + $0x1d8] sm:$0xff] }
 0x5e8   : > { %v4058_v48 = vld [vmem:[%s5365_s19 + $0x158] sm:$0xff] }
 0x5e9   : > { %v1278_v2 = vsel %vm841_vm0, %v1275_v1, 0.0  ;;  %v4066_v49 = vld [vmem:[%s5365_s19 + $0x198] sm:$0xff] }
 0x5ea   : > { %1279 = vadd.xlane.f32.xlu0 %v1278_v2  ;;  %v4210_v2 = vld [vmem:[%s5361_s15] ss:$0 sm:$0xff] }
 0x65d   : > { %v1280_v3 = vpop.xlane.xlu0 %1279 }
 0x65e   : > { %v1281_v5 = vmul.f32 %v1280_v3, %v4615_v39 }
 0x660   : > { %v4631_v6 = vsub.f32 %v1275_v1, %v1281_v5  ;;  %v4211_v5 = vld [vmem:[%s5362_s16] ss:$0 sm:$0xff] }
 0x662   : > { %v1283_v7 = vmul.f32 %v4631_v6, %v4631_v6 }
 0x664   : > { %v1284_v8 = vsel %vm841_vm0, %v1283_v7, 0.0 }
 0x665   : > { %1285 = vadd.xlane.f32.xlu1 %v1284_v8 }
 0x6d8   : > { %v1286_v4 = vpop.xlane.xlu1 %1285 }
 0x6d9   : > { %v1287_v36 = vmul.f32 %v1286_v4, %v4615_v39  ;;  %v3345_v4 = vor.u32 %v3988_v28, %v3342_v29  ;;  %v4023_v28 = vld [vmem:[%s5365_s19 + $0x40] sm:$0xff] }
 0x6da   : > { %v4031_v29 = vld [vmem:[%s5365_s19 + $0x80] sm:$0xff] }
 0x6db   : > { %v1288_v47 = vadd.f32 1e-05, %v1287_v36  ;;  %v3414_v36 = vld [vmem:[%s5363_s17 + $0xf0] sm:$0xf0] }
 0x6dc   : > { %v3417_v43 = vor.u32 %v4005_v35, %v3414_v36  ;;  %v4052_v35 = vld [vmem:[%s5365_s19 + $0x128] sm:$0xff] }
 0x6dd   : > { %4228 = vrsqrt.f32 %v1288_v47  ;;  %vm1295_vm9 = vweird.f32 %v1288_v47  ;;  %v4076_v36 = vld [vmem:[%s5365_s19 + $0x1e8] sm:$0xff] }
 0x6e3   : > { %v4229_v60 = vpop.eup %4228 }
 0x6e4   : > { %v1290_v61 = vmul.f32 %v4229_v60, %v1288_v47  ;;  %vm1296_vm8 = vweird.f32 %v4229_v60  ;;  %v3425_v47 = vor.u32 %v4006_v40, %v3422_v41  ;;  %v4051_v40 = vld [vmem:[%s5365_s19 + $0x120] sm:$0xff] }
 0x6e5   : > { %vm1297_vm10 = vmor %vm1295_vm9, %vm1296_vm8  ;;  %v4075_v41 = vld [vmem:[%s5365_s19 + $0x1e0] sm:$0xff] }
 0x6e6   : > { %v1291_v62 = vmul.f32 %v4229_v60, %v1290_v61  ;;  %v4038_v61 = vld [vmem:[%s5365_s19 + $0xb8] sm:$0xff] }
 0x6e8   : > { %v1292_v63 = vmul.f32 0.5, %v1291_v62  ;;  %v4021_v62 = vld [vmem:[%s5365_s19 + $0x30] sm:$0xff] }
 0x6ea   : > { %v1293_v0 = vsub.f32 1.5, %v1292_v63  ;;  %v4045_v63 = vld [vmem:[%s5365_s19 + $0xf0] sm:$0xff] }
 0x6ec   : > { %v1294_v1 = vmul.f32 %v4229_v60, %v1293_v0  ;;  %v4029_v0 = vld [vmem:[%s5365_s19 + $0x70] sm:$0xff] }
 0x6ee   : > { %v1298_v3 = vsel %vm1297_vm10, %v4229_v60, %v1294_v1  ;;  %v4030_v60 = vld [vmem:[%s5365_s19 + $0x78] sm:$0xff]  ;;  %v4037_v1 = vld [vmem:[%s5365_s19 + $0xb0] sm:$0xff] }
 0x6ef   : > { %v1299_v7 = vmul.f32 %v1298_v3, %v4631_v6  ;;  %v3404_v6 = vld [vmem:[%s5363_s17 + $0xa8] sm:$0xf] }
 0x6f0   : > { %v3405_v22 = vor.u32 %v4012_v14, %v3404_v6  ;;  %v4044_v3 = vld [vmem:[%s5365_s19 + $0xe8] sm:$0xff]  ;;  %v4042_v6 = vld [vmem:[%s5365_s19 + $0xd8] sm:$0xff] }
 0x6f1   : > { %v1303_v8 = vmul.f32 %v4210_v2, %v1299_v7  ;;  %v4020_v2 = vld [vmem:[%s5365_s19 + $0x28] sm:$0xff]  ;;  %v4026_v14 = vld [vmem:[%s5365_s19 + $0x58] sm:$0xff] }
 0x6f2   : > { %v4036_v7 = vld [vmem:[%s5365_s19 + $0xa8] sm:$0xff] }
 0x6f3   : > { %v4755_v13 = vadd.f32 %v4211_v5, %v1303_v8  ;;  %v4028_v5 = vld [vmem:[%s5365_s19 + $0x68] sm:$0xff]  ;;  %v4019_v8 = vld [vmem:[%s5365_s19 + $0x20] sm:$0xff] }
 0x6f5   : > { %v4768_v17 = vpack.c.bf16 %v4755_v13, %v4755_v13 }
 0x6f7   : > { %3426 = vmatmul.msk.bf16.vlgmr.msrb.gmra.mxu1 %vm841_vm0, %v4768_v17  ;;  %3427 = vmatmul.msk.bf16.vlgmr.msrb.gmra.mxu2 %vm841_vm0, %v4768_v17 }
 0x6f8   : > { %3428 = vmatmul.msk.bf16.vlgmr.msrb.gmra.mxu3 %vm841_vm0, %v4768_v17  ;;  %3429 = vmatmul.msk.bf16.vlgmr.msra.gmra.mxu0 %vm841_vm0, %v4768_v17 }
 0x6f9   : > { %1650 = vmatpush.bf16.msrb.mxu1 %v3397_v18  ;;  %1663 = vmatpush.bf16.msrb.mxu2 %v3401_v19  ;;  %v4041_v18 = vld [vmem:[%s5365_s19 + $0xd0] sm:$0xff] }
 0x6fa   : > { %1676 = vmatpush.bf16.msrb.mxu3 %v3405_v22  ;;  %1689 = vmatpush.bf16.msra.mxu0 %v3409_v23  ;;  %v4025_v19 = vld [vmem:[%s5365_s19 + $0x50] sm:$0xff]  ;;  %v4024_v22 = vld [vmem:[%s5365_s19 + $0x48] sm:$0xff] }
 0x6fb   : > { %v4032_v23 = vld [vmem:[%s5365_s19 + $0x88] sm:$0xff] }
 0x6fd   : > { %1651 = vmatpush.bf16.msrb.mxu1 %v3333_v30  ;;  %1664 = vmatpush.bf16.msrb.mxu2 %v3337_v31  ;;  %v4062_v30 = vld [vmem:[%s5365_s19 + $0x178] sm:$0xff] }
 0x6fe   : > { %1677 = vmatpush.bf16.msrb.mxu3 %v3341_v32  ;;  %1690 = vmatpush.bf16.msra.mxu0 %v3345_v4  ;;  %v4070_v31 = vld [vmem:[%s5365_s19 + $0x1b8] sm:$0xff]  ;;  %v4053_v32 = vld [vmem:[%s5365_s19 + $0x130] sm:$0xff] }
 0x6ff   : > { %v4077_v4 = vld [vmem:[%s5365_s19 + $0x1f0] sm:$0xff] }
 0x707   : > { %3430 = vmatmul.msk.bf16.vlgmr.msra.gmra.mxu1 %vm841_vm0, %v4768_v17  ;;  %3431 = vmatmul.msk.bf16.vlgmr.msra.gmra.mxu2 %vm841_vm0, %v4768_v17 }
 0x708   : > { %3432 = vmatmul.msk.bf16.vlgmr.msra.gmra.mxu3 %vm841_vm0, %v4768_v17  ;;  %3433 = vmatmul.msk.bf16.vlgmr.msrb.gmra.mxu0 %vm841_vm0, %v4768_v17 }
 0x709   : > { %1702 = vmatpush.bf16.msra.mxu1 %v3413_v42  ;;  %1715 = vmatpush.bf16.msra.mxu2 %v3417_v43  ;;  %v4059_v42 = vld [vmem:[%s5365_s19 + $0x160] sm:$0xff] }
 0x70a   : > { %1728 = vmatpush.bf16.msra.mxu3 %v3421_v46  ;;  %1741 = vmatpush.bf16.msrb.mxu0 %v3425_v47  ;;  %v4067_v43 = vld [vmem:[%s5365_s19 + $0x1a0] sm:$0xff]  ;;  %v4049_v46 = vld [vmem:[%s5365_s19 + $0x110] sm:$0xff] }
 0x70b   : > { %v4073_v47 = vld [vmem:[%s5365_s19 + $0x1d0] sm:$0xff] }
 0x70d   : > { %1703 = vmatpush.bf16.msra.mxu1 %v3349_v54  ;;  %1716 = vmatpush.bf16.msra.mxu2 %v3353_v55  ;;  %v4047_v54 = vld [vmem:[%s5365_s19 + $0x100] sm:$0xff] }
 0x70e   : > { %1729 = vmatpush.bf16.msra.mxu3 %v3357_v56  ;;  %1742 = vmatpush.bf16.msrb.mxu0 %v3361_v57  ;;  %v4071_v55 = vld [vmem:[%s5365_s19 + $0x1c0] sm:$0xff]  ;;  %v4056_v56 = vld [vmem:[%s5365_s19 + $0x148] sm:$0xff] }
 0x70f   : > { %v4064_v57 = vld [vmem:[%s5365_s19 + $0x188] sm:$0xff] }
 0x717   : > { %3434 = vmatmul.msk.bf16.vlgmr.msrb.gmra.mxu1 %vm841_vm0, %v4768_v17  ;;  %3435 = vmatmul.msk.bf16.vlgmr.msrb.gmra.mxu2 %vm841_vm0, %v4768_v17 }
 0x718   : > { %3436 = vmatmul.msk.bf16.vlgmr.msrb.gmra.mxu3 %vm841_vm0, %v4768_v17  ;;  %3437 = vmatmul.msk.bf16.vlgmr.msra.gmra.mxu0 %vm841_vm0, %v4768_v17 }
 0x719   : > { %2808 = vmatpush.bf16.msrb.mxu1 %v4022_v58  ;;  %2847 = vmatpush.bf16.msra.mxu0 %v4046_v59  ;;  %v4055_v58 = vld [vmem:[%s5365_s19 + $0x140] sm:$0xff] }
 0x71a   : > { %2821 = vmatpush.bf16.msrb.mxu2 %v4030_v60  ;;  %2834 = vmatpush.bf16.msrb.mxu3 %v4038_v61  ;;  %v4063_v59 = vld [vmem:[%s5365_s19 + $0x180] sm:$0xff] }
 0x71b   : > { %v5069_v60 = vld [vmem:[%s5364_s18] sm:$0xff] }
 0x71c   : > { %v1345_v61 = vperm.slane %v5069_v60, 0 }
 0x71d   : > { %2809 = vmatpush.bf16.msrb.mxu1 %v4021_v62  ;;  %2848 = vmatpush.bf16.msra.mxu0 %v4045_v63  ;;  %v1348_v62 = vperm.slane %v5069_v60, 3 }
 0x71e   : > { %2822 = vmatpush.bf16.msrb.mxu2 %v4029_v0  ;;  %2835 = vmatpush.bf16.msrb.mxu3 %v4037_v1 }
 0x721   : > { %2810 = vmatpush.bf16.msrb.mxu1 %v4020_v2  ;;  %2849 = vmatpush.bf16.msra.mxu0 %v4044_v3 }
 0x722   : > { %2823 = vmatpush.bf16.msrb.mxu2 %v4028_v5  ;;  %2836 = vmatpush.bf16.msrb.mxu3 %v4036_v7  ;;  %v1346_v5 = vperm.slane %v5069_v60, 1 }
 0x725   : > { %2811 = vmatpush.bf16.msrb.mxu1 %v4019_v8  ;;  %2850 = vmatpush.bf16.msra.mxu0 %v4043_v9  ;;  %v1347_v8 = vperm.slane %v5069_v60, 2  ;;  %v4086_v9 = vld [vmem:[%s5365_s19 + $0x238] sm:$0xff] }
 0x726   : > { %2824 = vmatpush.bf16.msrb.mxu2 %v4027_v10  ;;  %2837 = vmatpush.bf16.msrb.mxu3 %v4035_v11  ;;  %v4110_v11 = vld [vmem:[%s5365_s19 + $0x2f8] sm:$0xff] }
 0x727   : > { %3438 = vmatmul.msk.bf16.vlgmr.msra.gmra.mxu1 %vm841_vm0, %v4768_v17  ;;  %3439 = vmatmul.msk.bf16.vlgmr.msra.gmra.mxu2 %vm841_vm0, %v4768_v17 }
 0x728   : > { %3440 = vmatmul.msk.bf16.vlgmr.msra.gmra.mxu3 %vm841_vm0, %v4768_v17  ;;  %3441 = vmatmul.msk.bf16.vlgmr.msrb.gmra.mxu0 %vm841_vm0, %v4768_v17  ;;  %v4033_v17 = vld [vmem:[%s5365_s19 + $0x90] sm:$0xff] }
 0x729   : > { %2812 = vmatpush.bf16.msrb.mxu1 %v4018_v12  ;;  %2851 = vmatpush.bf16.msra.mxu0 %v4042_v6 }
 0x72a   : > { %2825 = vmatpush.bf16.msrb.mxu2 %v4026_v14  ;;  %2838 = vmatpush.bf16.msrb.mxu3 %v4034_v15 }
 0x72d   : > { %2813 = vmatpush.bf16.msrb.mxu1 %v4017_v16  ;;  %2852 = vmatpush.bf16.msra.mxu0 %v4041_v18 }
 0x72e   : > { %2826 = vmatpush.bf16.msrb.mxu2 %v4025_v19  ;;  %2839 = vmatpush.bf16.msrb.mxu3 %v4033_v17  ;;  %v4085_v19 = vld [vmem:[%s5365_s19 + $0x230] sm:$0xff] }
 0x731   : > { %2814 = vmatpush.bf16.msrb.mxu1 %v4016_v20  ;;  %2853 = vmatpush.bf16.msra.mxu0 %v4040_v21  ;;  %v4109_v21 = vld [vmem:[%s5365_s19 + $0x2f0] sm:$0xff] }
 0x732   : > { %2827 = vmatpush.bf16.msrb.mxu2 %v4024_v22  ;;  %2840 = vmatpush.bf16.msrb.mxu3 %v4032_v23  ;;  %v4094_v23 = vld [vmem:[%s5365_s19 + $0x278] sm:$0xff] }
 0x735   : > { %2815 = vmatpush.bf16.msrb.mxu1 %v4015_v24  ;;  %2854 = vmatpush.bf16.msra.mxu0 %v4039_v25  ;;  %v4102_v25 = vld [vmem:[%s5365_s19 + $0x2b8] sm:$0xff] }
 0x736   : > { %2828 = vmatpush.bf16.msrb.mxu2 %v4023_v28  ;;  %2841 = vmatpush.bf16.msrb.mxu3 %v4031_v29  ;;  %v4108_v28 = vld [vmem:[%s5365_s19 + $0x2e8] sm:$0xff]  ;;  %v1349_v29 = vperm.slane %v5069_v60, 4 }
 0x739   : > { %2860 = vmatpush.bf16.msra.mxu1 %v4054_v26  ;;  %2899 = vmatpush.bf16.msrb.mxu0 %v4078_v27  ;;  %v4084_v27 = vld [vmem:[%s5365_s19 + $0x228] sm:$0xff] }
 0x73a   : > { %2873 = vmatpush.bf16.msra.mxu2 %v4062_v30  ;;  %2886 = vmatpush.bf16.msra.mxu3 %v4070_v31  ;;  %v1352_v31 = vperm.slane %v5069_v60, 7 }
 0x73d   : > { %2861 = vmatpush.bf16.msra.mxu1 %v4053_v32  ;;  %2900 = vmatpush.bf16.msrb.mxu0 %v4077_v4  ;;  %v4093_v32 = vld [vmem:[%s5365_s19 + $0x270] sm:$0xff] }
 0x73e   : > { %2874 = vmatpush.bf16.msra.mxu2 %v4061_v33  ;;  %2887 = vmatpush.bf16.msra.mxu3 %v4069_v34  ;;  %v4101_v33 = vld [vmem:[%s5365_s19 + $0x2b0] sm:$0xff] }
 0x741   : > { %2862 = vmatpush.bf16.msra.mxu1 %v4052_v35  ;;  %2901 = vmatpush.bf16.msrb.mxu0 %v4076_v36  ;;  %v4083_v35 = vld [vmem:[%s5365_s19 + $0x220] sm:$0xff] }
 0x742   : > { %2875 = vmatpush.bf16.msra.mxu2 %v4060_v37  ;;  %2888 = vmatpush.bf16.msra.mxu3 %v4068_v38  ;;  %v4107_v38 = vld [vmem:[%s5365_s19 + $0x2e0] sm:$0xff] }
 0x745   : > { %2863 = vmatpush.bf16.msra.mxu1 %v4051_v40  ;;  %2902 = vmatpush.bf16.msrb.mxu0 %v4075_v41  ;;  %v4092_v41 = vld [vmem:[%s5365_s19 + $0x268] sm:$0xff] }
 0x746   : > { %2876 = vmatpush.bf16.msra.mxu2 %v4059_v42  ;;  %2889 = vmatpush.bf16.msra.mxu3 %v4067_v43  ;;  %v4100_v43 = vld [vmem:[%s5365_s19 + $0x2a8] sm:$0xff] }
 0x749   : > { %2864 = vmatpush.bf16.msra.mxu1 %v4050_v44  ;;  %2903 = vmatpush.bf16.msrb.mxu0 %v4074_v45  ;;  %v1350_v44 = vperm.slane %v5069_v60, 5 }
 0x74a   : > { %2877 = vmatpush.bf16.msra.mxu2 %v4058_v48  ;;  %2890 = vmatpush.bf16.msra.mxu3 %v4066_v49  ;;  %v4106_v49 = vld [vmem:[%s5365_s19 + $0x2d8] sm:$0xff] }
 0x74d   : > { %2865 = vmatpush.bf16.msra.mxu1 %v4049_v46  ;;  %2904 = vmatpush.bf16.msrb.mxu0 %v4073_v47  ;;  %v1351_v46 = vperm.slane %v5069_v60, 6  ;;  %v4082_v47 = vld [vmem:[%s5365_s19 + $0x218] sm:$0xff] }
 0x74e   : > { %2878 = vmatpush.bf16.msra.mxu2 %v4057_v52  ;;  %2891 = vmatpush.bf16.msra.mxu3 %v4065_v53  ;;  %v4091_v52 = vld [vmem:[%s5365_s19 + $0x260] sm:$0xff] }
 0x751   : > { %2866 = vmatpush.bf16.msra.mxu1 %v4048_v50  ;;  %2905 = vmatpush.bf16.msrb.mxu0 %v4072_v51 }
 0x752   : > { %2879 = vmatpush.bf16.msra.mxu2 %v4056_v56  ;;  %2892 = vmatpush.bf16.msra.mxu3 %v4064_v57 }
 0x755   : > { %2867 = vmatpush.bf16.msra.mxu1 %v4047_v54  ;;  %2906 = vmatpush.bf16.msrb.mxu0 %v4071_v55  ;;  %v4099_v55 = vld [vmem:[%s5365_s19 + $0x2a0] sm:$0xff] }
 0x756   : > { %2880 = vmatpush.bf16.msra.mxu2 %v4055_v58  ;;  %2893 = vmatpush.bf16.msra.mxu3 %v4063_v59  ;;  %v4081_v58 = vld [vmem:[%s5365_s19 + $0x210] sm:$0xff] }
 0x774   : > { %v1549_v63 = vpop.f32.mrf.mxu1 }
 0x775   : > { %v1550_v0 = vadd.f32 %v1549_v63, %v1345_v61  ;;  %v1588_v1 = vpop.f32.mrf.mxu0  ;;  %v4105_v61 = vld [vmem:[%s5365_s19 + $0x2d0] sm:$0xff]  ;;  %v4090_v63 = vld [vmem:[%s5365_s19 + $0x258] sm:$0xff] }
 0x776   : > { %v1589_v2 = vadd.f32 %v1588_v1, %v1348_v62 }
 0x777   : > { %v1748_v3 = vmax.f32 %v1550_v0, 0.0  ;;  %v5145_v0 = vld [vmem:[%s5364_s18 + $0x8] sm:$0xff] }
 0x778   : > { %v1751_v7 = vmax.f32 %v1589_v2, 0.0  ;;  %v4098_v2 = vld [vmem:[%s5365_s19 + $0x298] sm:$0xff] }
 0x779   : > { %v1764_v10 = vpack.c.bf16 %v1748_v3, %v1748_v3 }
 0x77a   : > { %v1767_v12 = vpack.c.bf16 %v1751_v7, %v1751_v7  ;;  %v1562_v6 = vpop.f32.mrf.mxu2  ;;  %v4104_v7 = vld [vmem:[%s5365_s19 + $0x2c8] sm:$0xff] }
 0x77b   : > { %v1563_v14 = vadd.f32 %v1562_v6, %v1346_v5  ;;  %v1575_v15 = vpop.f32.mrf.mxu3  ;;  %2816 = vmatmul.bf16.vlgmr.msrb.gmra.mxu1 %v1764_v10  ;;  %v4080_v5 = vld [vmem:[%s5365_s19 + $0x208] sm:$0xff]  ;;  %v1356_v10 = vperm.slane %v5145_v0, 3  ;;  %v4097_v6 = vld [vmem:[%s5365_s19 + $0x290] sm:$0xff] }
 0x77c   : > { %v1576_v16 = vadd.f32 %v1575_v15, %v1347_v8  ;;  %2855 = vmatmul.bf16.vlgmr.msra.gmra.mxu0 %v1767_v12  ;;  %2912 = vmatpush.bf16.msrb.mxu1 %v4086_v9  ;;  %v1551_v18 = vpop.f32.mrf.mxu1  ;;  %v1353_v8 = vperm.slane %v5145_v0, 0  ;;  %v4079_v15 = vld [vmem:[%s5365_s19 + $0x200] sm:$0xff] }
 0x77d   : > { %v1749_v17 = vmax.f32 %v1563_v14, 0.0  ;;  %2951 = vmatpush.bf16.msra.mxu0 %v4110_v11  ;;  %v1590_v20 = vpop.f32.mrf.mxu0  ;;  %v4089_v11 = vld [vmem:[%s5365_s19 + $0x250] sm:$0xff] }
 0x77e   : > { %v1750_v22 = vmax.f32 %v1576_v16, 0.0 }
 0x77f   : > { %v1765_v24 = vpack.c.bf16 %v1749_v17, %v1749_v17  ;;  %v4118_v17 = vld [vmem:[%s5365_s19 + $0x338] sm:$0xff] }
 0x780   : > { %v1766_v26 = vpack.c.bf16 %v1750_v22, %v1750_v22  ;;  %2913 = vmatpush.bf16.msrb.mxu1 %v4085_v19  ;;  %v4103_v19 = vld [vmem:[%s5365_s19 + $0x2c0] sm:$0xff]  ;;  %v4088_v22 = vld [vmem:[%s5365_s19 + $0x248] sm:$0xff] }
 0x781   : > { %2952 = vmatpush.bf16.msra.mxu0 %v4109_v21  ;;  %2829 = vmatmul.bf16.vlgmr.msrb.gmra.mxu2 %v1765_v24  ;;  %v4142_v21 = vld [vmem:[%s5365_s19 + $0x3f8] sm:$0xff]  ;;  %v4096_v24 = vld [vmem:[%s5365_s19 + $0x288] sm:$0xff] }
 0x782   : > { %2842 = vmatmul.bf16.vlgmr.msrb.gmra.mxu3 %v1766_v26  ;;  %2925 = vmatpush.bf16.msrb.mxu2 %v4094_v23  ;;  %v1564_v30 = vpop.f32.mrf.mxu2 }
 0x783   : > { %2938 = vmatpush.bf16.msrb.mxu3 %v4102_v25  ;;  %v1577_v4 = vpop.f32.mrf.mxu3  ;;  %v1354_v25 = vperm.slane %v5145_v0, 1 }
 0x784   : > { %2914 = vmatpush.bf16.msrb.mxu1 %v4084_v27  ;;  %v1601_v34 = vpop.f32.mrf.mxu1  ;;  %v1355_v27 = vperm.slane %v5145_v0, 2  ;;  %v4087_v4 = vld [vmem:[%s5365_s19 + $0x240] sm:$0xff] }
 0x785   : > { %2953 = vmatpush.bf16.msra.mxu0 %v4108_v28  ;;  %v1602_v36 = vadd.f32 %v1601_v34, %v1349_v29  ;;  %v1640_v37 = vpop.f32.mrf.mxu0  ;;  %v4117_v29 = vld [vmem:[%s5365_s19 + $0x330] sm:$0xff] }
 0x786   : > { %v1641_v40 = vadd.f32 %v1640_v37, %v1352_v31  ;;  %2926 = vmatpush.bf16.msrb.mxu2 %v4093_v32  ;;  %v4141_v32 = vld [vmem:[%s5365_s19 + $0x3f0] sm:$0xff] }
 0x787   : > { %v1752_v42 = vmax.f32 %v1602_v36, 0.0  ;;  %2939 = vmatpush.bf16.msrb.mxu3 %v4101_v33  ;;  %v4126_v36 = vld [vmem:[%s5365_s19 + $0x378] sm:$0xff] }
 0x788   : > { %v1755_v45 = vmax.f32 %v1641_v40, 0.0  ;;  %2915 = vmatpush.bf16.msrb.mxu1 %v4083_v35  ;;  %v4095_v35 = vld [vmem:[%s5365_s19 + $0x280] sm:$0xff]  ;;  %v4134_v40 = vld [vmem:[%s5365_s19 + $0x3b8] sm:$0xff] }
 0x789   : > { %v1768_v48 = vpack.c.bf16 %v1752_v42, %v1752_v42  ;;  %2954 = vmatpush.bf16.msra.mxu0 %v4107_v38 }
 0x78a   : > { %v1771_v50 = vpack.c.bf16 %v1755_v45, %v1755_v45  ;;  %2927 = vmatpush.bf16.msrb.mxu2 %v4092_v41  ;;  %v1614_v51 = vpop.f32.mrf.mxu2  ;;  %v4140_v45 = vld [vmem:[%s5365_s19 + $0x3e8] sm:$0xff] }
 0x78b   : > { %2940 = vmatpush.bf16.msrb.mxu3 %v4100_v43  ;;  %v1615_v53 = vadd.f32 %v1614_v51, %v1350_v44  ;;  %v1627_v54 = vpop.f32.mrf.mxu3  ;;  %2868 = vmatmul.bf16.vlgmr.msra.gmra.mxu1 %v1768_v48  ;;  %v4116_v43 = vld [vmem:[%s5365_s19 + $0x328] sm:$0xff] }
 0x78c   : > { %v1628_v56 = vadd.f32 %v1627_v54, %v1351_v46  ;;  %2907 = vmatmul.bf16.vlgmr.msrb.gmra.mxu0 %v1771_v50  ;;  %2916 = vmatpush.bf16.msrb.mxu1 %v4082_v47  ;;  %v1603_v57 = vpop.f32.mrf.mxu1  ;;  %v4125_v47 = vld [vmem:[%s5365_s19 + $0x370] sm:$0xff]  ;;  %v4115_v50 = vld [vmem:[%s5365_s19 + $0x320] sm:$0xff]  ;;  %v4124_v54 = vld [vmem:[%s5365_s19 + $0x368] sm:$0xff] }
 0x78d   : > { %v1753_v59 = vmax.f32 %v1615_v53, 0.0  ;;  %2955 = vmatpush.bf16.msra.mxu0 %v4106_v49  ;;  %v1642_v60 = vpop.f32.mrf.mxu0  ;;  %v4133_v49 = vld [vmem:[%s5365_s19 + $0x3b0] sm:$0xff] }
 0x78e   : > { %v1754_v62 = vmax.f32 %v1628_v56, 0.0  ;;  %2928 = vmatpush.bf16.msrb.mxu2 %v4091_v52  ;;  %v4139_v52 = vld [vmem:[%s5365_s19 + $0x3e0] sm:$0xff]  ;;  %v4132_v56 = vld [vmem:[%s5365_s19 + $0x3a8] sm:$0xff] }
 0x78f   : > { %v1769_v1 = vpack.c.bf16 %v1753_v59, %v1753_v59  ;;  %2941 = vmatpush.bf16.msrb.mxu3 %v4099_v55  ;;  %v4138_v59 = vld [vmem:[%s5365_s19 + $0x3d8] sm:$0xff]  ;;  %v4123_v60 = vld [vmem:[%s5365_s19 + $0x360] sm:$0xff] }
 0x790   : > { %v1770_v3 = vpack.c.bf16 %v1754_v62, %v1754_v62  ;;  %2917 = vmatpush.bf16.msrb.mxu1 %v4081_v58  ;;  %v4114_v58 = vld [vmem:[%s5365_s19 + $0x318] sm:$0xff]  ;;  %v4113_v62 = vld [vmem:[%s5365_s19 + $0x310] sm:$0xff] }
 0x791   : > { %2956 = vmatpush.bf16.msra.mxu0 %v4105_v61  ;;  %2881 = vmatmul.bf16.vlgmr.msra.gmra.mxu2 %v1769_v1  ;;  %v4131_v61 = vld [vmem:[%s5365_s19 + $0x3a0] sm:$0xff] }
 0x792   : > { %2894 = vmatmul.bf16.vlgmr.msra.gmra.mxu3 %v1770_v3  ;;  %2929 = vmatpush.bf16.msrb.mxu2 %v4090_v63  ;;  %v1616_v9 = vpop.f32.mrf.mxu2  ;;  %v1357_v63 = vperm.slane %v5145_v0, 4  ;;  %v1360_v3 = vperm.slane %v5145_v0, 7 }
 0x793   : > { %2942 = vmatpush.bf16.msrb.mxu3 %v4098_v2  ;;  %v1629_v12 = vpop.f32.mrf.mxu3  ;;  %v4137_v2 = vld [vmem:[%s5365_s19 + $0x3d0] sm:$0xff]  ;;  %v4130_v9 = vld [vmem:[%s5365_s19 + $0x398] sm:$0xff] }
 0x794   : > { %2918 = vmatpush.bf16.msrb.mxu1 %v4080_v5  ;;  %v1653_v14 = vpop.f32.mrf.mxu1 }
 0x795   : > { %2957 = vmatpush.bf16.msra.mxu0 %v4104_v7  ;;  %v1654_v16 = vadd.f32 %v1653_v14, %v1353_v8  ;;  %v1692_v18 = vpop.f32.mrf.mxu0  ;;  %v4122_v7 = vld [vmem:[%s5365_s19 + $0x358] sm:$0xff] }
 0x796   : > { %v1693_v20 = vadd.f32 %v1692_v18, %v1356_v10  ;;  %2930 = vmatpush.bf16.msrb.mxu2 %v4089_v11  ;;  %v4112_v11 = vld [vmem:[%s5365_s19 + $0x308] sm:$0xff]  ;;  %v4129_v18 = vld [vmem:[%s5365_s19 + $0x390] sm:$0xff] }
 0x797   : > { %v1756_v23 = vmax.f32 %v1654_v16, 0.0  ;;  %2943 = vmatpush.bf16.msrb.mxu3 %v4097_v6  ;;  %v4136_v6 = vld [vmem:[%s5365_s19 + $0x3c8] sm:$0xff]  ;;  %v1358_v16 = vperm.slane %v5145_v0, 5 }
 0x798   : > { %v1759_v26 = vmax.f32 %v1693_v20, 0.0  ;;  %2919 = vmatpush.bf16.msrb.mxu1 %v4079_v15  ;;  %v4121_v15 = vld [vmem:[%s5365_s19 + $0x350] sm:$0xff] }
 0x799   : > { %v1772_v28 = vpack.c.bf16 %v1756_v23, %v1756_v23  ;;  %2958 = vmatpush.bf16.msra.mxu0 %v4103_v19  ;;  %v1359_v19 = vperm.slane %v5145_v0, 6 }
 0x79a   : > { %v1775_v30 = vpack.c.bf16 %v1759_v26, %v1759_v26  ;;  %2931 = vmatpush.bf16.msrb.mxu2 %v4088_v22  ;;  %v1666_v31 = vpop.f32.mrf.mxu2  ;;  %v4135_v22 = vld [vmem:[%s5365_s19 + $0x3c0] sm:$0xff]  ;;  %v4128_v26 = vld [vmem:[%s5365_s19 + $0x388] sm:$0xff] }
 0x79b   : > { %2944 = vmatpush.bf16.msrb.mxu3 %v4096_v24  ;;  %v1667_v33 = vadd.f32 %v1666_v31, %v1354_v25  ;;  %v1679_v34 = vpop.f32.mrf.mxu3  ;;  %2920 = vmatmul.bf16.vlgmr.msrb.gmra.mxu1 %v1772_v28  ;;  %v4120_v25 = vld [vmem:[%s5365_s19 + $0x348] sm:$0xff] }
 0x79c   : > { %2964 = vmatpush.bf16.msra.mxu1 %v4118_v17  ;;  %v1680_v37 = vadd.f32 %v1679_v34, %v1355_v27  ;;  %2959 = vmatmul.bf16.vlgmr.msra.gmra.mxu0 %v1775_v30  ;;  %v1655_v38 = vpop.f32.mrf.mxu1  ;;  %v4111_v17 = vld [vmem:[%s5365_s19 + $0x300] sm:$0xff] }
 0x79d   : > { %3003 = vmatpush.bf16.msrb.mxu0 %v4142_v21  ;;  %v1757_v41 = vmax.f32 %v1667_v33, 0.0  ;;  %v1694_v42 = vpop.f32.mrf.mxu0  ;;  %v4119_v30 = vld [vmem:[%s5365_s19 + $0x340] sm:$0xff] }
 0x79e   : > { %v1758_v44 = vmax.f32 %v1680_v37, 0.0  ;;  %2932 = vmatpush.bf16.msrb.mxu2 %v4087_v4 }
 0x79f   : > { %v1773_v46 = vpack.c.bf16 %v1757_v41, %v1757_v41  ;;  %2945 = vmatpush.bf16.msrb.mxu3 %v4095_v35 }
 0x7a0   : > { %2965 = vmatpush.bf16.msra.mxu1 %v4117_v29  ;;  %v1774_v48 = vpack.c.bf16 %v1758_v44, %v1758_v44 }
 0x7a1   : > { %3004 = vmatpush.bf16.msrb.mxu0 %v4141_v32  ;;  %2933 = vmatmul.bf16.vlgmr.msrb.gmra.mxu2 %v1773_v46  ;;  %v4127_v32 = vld [vmem:[%s5365_s19 + $0x380] sm:$0xff] }
 0x7a2   : > { %2977 = vmatpush.bf16.msra.mxu2 %v4126_v36  ;;  %2946 = vmatmul.bf16.vlgmr.msrb.gmra.mxu3 %v1774_v48  ;;  %v1668_v51 = vpop.f32.mrf.mxu2  ;;  %v4212_v48 = vld [vmem:[%s5366_s20] ss:$0 sm:$0xff] }
 0x7a3   : > { %2990 = vmatpush.bf16.msra.mxu3 %v4134_v40  ;;  %v1681_v53 = vpop.f32.mrf.mxu3 }
 0x7a4   : > { %2966 = vmatpush.bf16.msra.mxu1 %v4116_v43  ;;  %v1705_v55 = vpop.f32.mrf.mxu1 }
 0x7a5   : > { %3005 = vmatpush.bf16.msrb.mxu0 %v4140_v45  ;;  %v1744_v57 = vpop.f32.mrf.mxu0  ;;  %v1706_v12 = vadd.f32 %v1705_v55, %v1357_v63 }
 0x7a6   : > { %2978 = vmatpush.bf16.msra.mxu2 %v4125_v47  ;;  %v1745_v14 = vadd.f32 %v1744_v57, %v1360_v3 }
 0x7a7   : > { %2991 = vmatpush.bf16.msra.mxu3 %v4133_v49  ;;  %v1760_v20 = vmax.f32 %v1706_v12, 0.0 }
 0x7a8   : > { %2967 = vmatpush.bf16.msra.mxu1 %v4115_v50  ;;  %v1763_v23 = vmax.f32 %v1745_v14, 0.0 }
 0x7a9   : > { %3006 = vmatpush.bf16.msrb.mxu0 %v4139_v52  ;;  %v1776_v28 = vpack.c.bf16 %v1760_v20, %v1760_v20 }
 0x7aa   : > { %2979 = vmatpush.bf16.msra.mxu2 %v4124_v54  ;;  %v1718_v1 = vpop.f32.mrf.mxu2  ;;  %v1779_v29 = vpack.c.bf16 %v1763_v23, %v1763_v23 }
 0x7ab   : > { %2992 = vmatpush.bf16.msra.mxu3 %v4132_v56  ;;  %v1731_v5 = vpop.f32.mrf.mxu3  ;;  %v1719_v0 = vadd.f32 %v1718_v1, %v1358_v16 }
 0x7ac   : > { %2968 = vmatpush.bf16.msra.mxu1 %v4114_v58  ;;  %v1707_v8 = vpop.f32.mrf.mxu1  ;;  %v1732_v27 = vadd.f32 %v1731_v5, %v1359_v19 }
 0x7ad   : > { %3007 = vmatpush.bf16.msrb.mxu0 %v4138_v59  ;;  %v1746_v10 = vpop.f32.mrf.mxu0  ;;  %v1761_v31 = vmax.f32 %v1719_v0, 0.0 }
 0x7ae   : > { %2980 = vmatpush.bf16.msra.mxu2 %v4123_v60  ;;  %v1762_v4 = vmax.f32 %v1732_v27, 0.0 }
 0x7af   : > { %2993 = vmatpush.bf16.msra.mxu3 %v4131_v61  ;;  %v1777_v33 = vpack.c.bf16 %v1761_v31, %v1761_v31 }
 0x7b0   : > { %2969 = vmatpush.bf16.msra.mxu1 %v4113_v62  ;;  %v1778_v34 = vpack.c.bf16 %v1762_v4, %v1762_v4 }
 0x7b1   : > { %3008 = vmatpush.bf16.msrb.mxu0 %v4137_v2 }
 0x7b2   : > { %2981 = vmatpush.bf16.msra.mxu2 %v4122_v7  ;;  %v1720_v21 = vpop.f32.mrf.mxu2 }
 0x7b3   : > { %2994 = vmatpush.bf16.msra.mxu3 %v4130_v9  ;;  %v1733_v24 = vpop.f32.mrf.mxu3 }
 0x7b4   : > { %2970 = vmatpush.bf16.msra.mxu1 %v4112_v11 }
 0x7b5   : > { %3009 = vmatpush.bf16.msrb.mxu0 %v4136_v6 }
 0x7b6   : > { %2982 = vmatpush.bf16.msra.mxu2 %v4121_v15 }
 0x7b7   : > { %2995 = vmatpush.bf16.msra.mxu3 %v4129_v18 }
 0x7b8   : > { %2971 = vmatpush.bf16.msra.mxu1 %v4111_v17 }
 0x7b9   : > { %3010 = vmatpush.bf16.msrb.mxu0 %v4135_v22 }
 0x7ba   : > { %2983 = vmatpush.bf16.msra.mxu2 %v4120_v25 }
 0x7bb   : > { %2996 = vmatpush.bf16.msra.mxu3 %v4128_v26  ;;  %2972 = vmatmul.bf16.vlgmr.msra.gmra.mxu1 %v1776_v28 }
 0x7bc   : > { %3011 = vmatmul.bf16.vlgmr.msrb.gmra.mxu0 %v1779_v29 }
 0x7be   : > { %2984 = vmatpush.bf16.msra.mxu2 %v4119_v30  ;;  %v4144_v30 = vld [vmem:[%s5369_s23 + $0x8] sm:$0xff] }
 0x7bf   : > { %2997 = vmatpush.bf16.msra.mxu3 %v4127_v32  ;;  %3079 = vmatpush.bf16.msrb.mxu1 %v4144_v30 }
 0x7c1   : > { %2985 = vmatmul.bf16.vlgmr.msra.gmra.mxu2 %v1777_v33 }
 0x7c2   : > { %2998 = vmatmul.bf16.vlgmr.msra.gmra.mxu3 %v1778_v34 }
 0x7f8   : > { %v2817_v35 = vpop.f32.mrf.mxu1 }
 0x7f9   : > { %v2856_v36 = vpop.f32.mrf.mxu0  ;;  %v2818_v51 = vadd.f32 %v4212_v48, %v2817_v35 }
 0x800   : > { %v2819_v37 = vpop.f32.mrf.mxu1 }
 0x801   : > { %v2858_v38 = vpop.f32.mrf.mxu0 }
 0x804   : > { %v2830_v40 = vpop.f32.mrf.mxu2 }
 0x805   : > { %v2843_v41 = vpop.f32.mrf.mxu3  ;;  %v2831_v54 = vadd.f32 %v2830_v40, %v2818_v51  ;;  %v4213_v40 = vld [vmem:[%s5367_s21] ss:$0 sm:$0xff] }
 0x807   : > { %v2844_v57 = vadd.f32 %v2843_v41, %v2831_v54 }
 0x808   : > { %v2869_v42 = vpop.f32.mrf.mxu1 }
 0x809   : > { %v2908_v43 = vpop.f32.mrf.mxu0  ;;  %v2857_v60 = vadd.f32 %v2856_v36, %v2844_v57 }
 0x80b   : > { %v2870_v63 = vadd.f32 %v2869_v42, %v2857_v60 }
 0x80c   : > { %v2832_v44 = vpop.f32.mrf.mxu2 }
 0x80d   : > { %v2845_v45 = vpop.f32.mrf.mxu3 }
 0x810   : > { %v2871_v46 = vpop.f32.mrf.mxu1 }
 0x811   : > { %v2910_v47 = vpop.f32.mrf.mxu0  ;;  %v4215_v46 = vld [vmem:[%s5440_s11] ss:$0 sm:$0xff]  ;;  %s4252_s11 = scalar_lea.hbm %s5438_s9, 16 }
 0x814   : > { %v2882_v49 = vpop.f32.mrf.mxu2 }
 0x815   : > { %v2895_v50 = vpop.f32.mrf.mxu3  ;;  %v2883_v1 = vadd.f32 %v2882_v49, %v2870_v63 }
 0x817   : > { %v2896_v2 = vadd.f32 %v2895_v50, %v2883_v1 }
 0x818   : > { %v2921_v52 = vpop.f32.mrf.mxu1 }
 0x819   : > { %v2960_v53 = vpop.f32.mrf.mxu0  ;;  %v2909_v7 = vadd.f32 %v2908_v43, %v2896_v2 }
 0x81b   : > { %v2922_v8 = vadd.f32 %v2921_v52, %v2909_v7 }
 0x81c   : > { %v2884_v55 = vpop.f32.mrf.mxu2 }
 0x81d   : > { %v2897_v56 = vpop.f32.mrf.mxu3 }
 0x820   : > { %v2923_v58 = vpop.f32.mrf.mxu1 }
 0x821   : > { %v2962_v59 = vpop.f32.mrf.mxu0 }
 0x824   : > { %v2934_v61 = vpop.f32.mrf.mxu2 }
 0x825   : > { %v2947_v62 = vpop.f32.mrf.mxu3  ;;  %v2935_v10 = vadd.f32 %v2934_v61, %v2922_v8 }
 0x827   : > { %v2948_v12 = vadd.f32 %v2947_v62, %v2935_v10 }
 0x829   : > { %v2961_v14 = vadd.f32 %v2960_v53, %v2948_v12 }
 0x82c   : > { %v2936_v3 = vpop.f32.mrf.mxu2 }
 0x82d   : > { %v2949_v5 = vpop.f32.mrf.mxu3 }
 0x838   : > { %v2973_v9 = vpop.f32.mrf.mxu1 }
 0x839   : > { %v3012_v11 = vpop.f32.mrf.mxu0  ;;  %v2974_v16 = vadd.f32 %v2973_v9, %v2961_v14 }
 0x840   : > { %v2975_v6 = vpop.f32.mrf.mxu1 }
 0x841   : > { %v3014_v15 = vpop.f32.mrf.mxu0 }
 0x844   : > { %v2986_v18 = vpop.f32.mrf.mxu2 }
 0x845   : > { %v2987_v19 = vadd.f32 %v2986_v18, %v2974_v16  ;;  %v2999_v17 = vpop.f32.mrf.mxu3 }
 0x847   : > { %v3000_v20 = vadd.f32 %v2999_v17, %v2987_v19 }
 0x849   : > { %v3013_v21 = vadd.f32 %v3012_v11, %v3000_v20 }
 0x84b   : > { %v3016_v22 = vadd.f32 %v3013_v21, %v4755_v13  ;;  %v4143_v13 = vld [vmem:[%s5369_s23] sm:$0xff] }
 0x84c   : > { %v2988_v23 = vpop.f32.mrf.mxu2  ;;  %3080 = vmatpush.bf16.msrb.mxu1 %v4143_v13 }
 0x84d   : > { %v3001_v24 = vpop.f32.mrf.mxu3  ;;  %v3019_v25 = vsel %vm841_vm0, %v3016_v22, 0.0 }
 0x84e   : > { %3020 = vadd.xlane.f32.xlu2 %v3019_v25 }
 0x8c1   : > { %v3021_v0 = vpop.xlane.xlu2 %3020 }
 0x8c2   : > { %v3022_v26 = vmul.f32 %v3021_v0, %v4615_v39 }
 0x8c4   : > { %v3023_v27 = vsub.f32 %v3016_v22, %v3022_v26 }
 0x8c6   : > { %v3024_v28 = vmul.f32 %v3023_v27, %v3023_v27 }
 0x8c8   : > { %v3025_v29 = vsel %vm841_vm0, %v3024_v28, 0.0 }
 0x8c9   : > { %3026 = vadd.xlane.f32.xlu0 %v3025_v29 }
 0x93c   : > { %v3027_v31 = vpop.xlane.xlu0 %3026 }
 0x93d   : > { %v3028_v32 = vmul.f32 %v3027_v31, %v4615_v39  ;;  %v4214_v39 = vld [vmem:[%s5437_s6] ss:$0 sm:$0xff]  ;;  %s4246_s6 = sshra.s32 %s3104_s1, 4  ;;  %s4247_s6 = int_to_ptr.hbm [resolvable:$true] %s4246_s6 }
 0x93e   : > { %s4248_s13 = scalar_lea.hbm %s4247_s6, 8  ;;  %p4253_p1 = scmp.lt.s32.totalorder %s4247_s6, %s5438_s9 }
 0x93f   : > { %v3029_v4 = vadd.f32 1e-05, %v3028_v32  ;;  %p4249_p12 = scmp.ne.s32.totalorder %s4247_s6, %s4248_s13  ;;  %p4254_p2 = scmp.lt.s32.totalorder %s4252_s11, %s4248_s13 }
 0x941   : > { %4230 = vrsqrt.f32 %v3029_v4  ;;  %vm3036_vm12 = vweird.f32 %v3029_v4  ;;  %p4250_p13 = pnand %p4249_p12, %p4483_p4  ;;  %p4255_p3 = por %p4254_p2, %p4253_p1 }
 0x943   : > { %p4251_p0 = pneg %p4250_p13 }
 0x945   : > { %p4256_p5 = pnand %p4255_p3, %p4251_p0 }
 0x947   : > { %v4231_v33 = vpop.eup %4230 }
 0x948   : > { %v3031_v34 = vmul.f32 %v4231_v33, %v3029_v4  ;;  %vm3037_vm11 = vweird.f32 %v4231_v33 }
 0x949   : > { %vm3038_vm13 = vmor %vm3036_vm12, %vm3037_vm11 }
 0x94a   : > { %v3032_v35 = vmul.f32 %v4231_v33, %v3031_v34 }
 0x94c   : > { %v3033_v36 = vmul.f32 0.5, %v3032_v35 }
 0x94e   : > { %v3034_v37 = vsub.f32 1.5, %v3033_v36 }
 0x950   : > { %v3035_v38 = vmul.f32 %v4231_v33, %v3034_v37 }
 0x952   : > { %v3039_v41 = vsel %vm3038_vm13, %v4231_v33, %v3035_v38 }
 0x953   : > { %v3040_v42 = vmul.f32 %v3039_v41, %v3023_v27 }
 0x955   : > { %v3044_v43 = vmul.f32 %v4213_v40, %v3040_v42 }
 0x957   : > { %v3048_v44 = vadd.f32 %v4214_v39, %v3044_v43 }
 0x959   : > { %v3049_v45 = vpack.c.bf16 %v3048_v44, %v3048_v44 }
 0x95b   : > { %3962 = vmatmul.msk.bf16.vlgmr.msrb.gmra.mxu1 %vm841_vm0, %v3049_v45 }
 0x9d8   : > { %v3082_v47 = vpop.f32.mrf.mxu1 }
 0x9d9   : > { %v3083_v48 = vadd.f32 %v4215_v46, %v3082_v47 }
 0x9db   : > { %3086 = vst.msk [vmem:[%s801_s12] sm:$0xff] %vm841_vm0, %v3083_v48 }
 0x9dc   : > { %4259 = shalt.err (!%p4256_p5)
}
 0x9dd   : > { %4145 = dma.vmem_to_hbm [thread:$0]  (%p4483_p4), %s3102_s4, 128, %s3104_s1, %s3088_s30  }
 0x9e0   : > { %v3084_v49 = vpop.f32.mrf.mxu1 }
 0x9e1 PF: > { %s5441_s12 = sld [smem:[#allocation8_spill]] }
 0x9e2   : > { %s5442_s7 = sld [smem:[#allocation5_spill]] }
 0x9e7   : > { %p4151_p6 = scmp.ge.s32.totalorder %s5441_s12, 2 }
 0x9e8   : > { %s3115_s0 = sand.u32 1, %s5442_s7  }
 0x9e9   : > { %p4148_p7 = pnand %p4151_p6, %p4490_p8  ;;  %s3116_s29 = scalar_lea.sflag [#allocation3], %s3115_s0 }
 0x9eb   : > { %p4149_p9 = pneg %p4148_p7 }
 0x9ed   : > { %4285 = dma.done.wait (%p4149_p9), %s3116_s29, 128  }
 0x9ee   : > { %4287 = vsyncadd (%p4149_p9), %s3116_s29, 4294967168  ;;  %s38_s3 = sadd.s32 1, %s5441_s12   ;;  %s5444_s13 = sld [smem:[#allocation6_spill]] }
 0x9ef   : > { %p35_p10 = scmp.ge.s32.totalorder %s38_s3, 4   ;;  %s5445_s6 = sld [smem:[#allocation12_spill]] }
 0x9f0   : > { %s5446_s30 = sld [smem:[#allocation7_spill]]  ;;  %s5448_s29 = smov %s4294_s2 }
 0x9f1   : > { %s5447_s7 = sld [smem:[#allocation9_spill]]  ;;  %37 = sbr.rel (!%p35_p10) target bundleno = 22 (0x16), region = 168 }
 0x9f4   : > { %s5449_s2 = smov %s5444_s13 }
 0x9f6   :  { %3122 = vsyncpa [#allocation3], 1 }
 0x9f7   :  { %3124 = vsyncpa [#allocation3 + $0x1], 1 }

</bundles_post_ra>
